<compile_context>
chip_gen: v6e
topology: v6e:2x2x1
jax: 0.10.0
libtpu: 0.0.40
codegen_flags: <defaults>
</compile_context>

<pallas_src>
import jax
import jax.numpy as jnp
from jax.experimental import pallas as pl
from jax.experimental.pallas import tpu as pltpu

IN_FEATURES = 28 * 28      # 784
IN_PADDED = 896            # 7 * 128, lane-aligned K for layer 1
H1, H2, H3 = 1024, 512, 256


def _leaky_relu(x, slope=0.2):
    return jnp.where(x > 0, x, slope * x)


def discriminator_kernel(
    x_ref,
    w1_ref, b1_ref,
    w2_ref, b2_ref,
    w3_ref, b3_ref,
    w4_ref, b4_ref,
    o_ref,
):
    # x tile: (TB, 896) f32, features 784..895 are zero-padded.
    x = x_ref[...]

    # Layer 1: 896 -> 1024 (bf16 MXU, f32 accumulate); bias + LeakyReLU in f32.
    h = jnp.dot(x.astype(jnp.bfloat16), w1_ref[...],
                preferred_element_type=jnp.float32) + b1_ref[...]
    h = _leaky_relu(h)

    # Layer 2: 1024 -> 512
    h = jnp.dot(h.astype(jnp.bfloat16), w2_ref[...],
                preferred_element_type=jnp.float32) + b2_ref[...]
    h = _leaky_relu(h)

    # Layer 3: 512 -> 256
    h = jnp.dot(h.astype(jnp.bfloat16), w3_ref[...],
                preferred_element_type=jnp.float32) + b3_ref[...]
    h = _leaky_relu(h)

    # Layer 4: 256 -> 1 as a VPU/XLU lane reduction (avoids an N=1 MXU matmul).
    # w4 is stored as a (1, 256) row.
    w4_row = w4_ref[...].astype(jnp.float32)
    logits = jnp.sum(h * w4_row, axis=-1, keepdims=True) + b4_ref[...]
    o_ref[...] = jax.nn.sigmoid(logits)


def discriminator_forward(x, params, *, tb=256):
    """x: any shape flattening to (B, 784) row-major (PyTorch x.view(-1, 28*28))."""
    x2d = x.reshape(-1, IN_FEATURES).astype(jnp.float32)
    B = x2d.shape[0]

    # Modest batch tile (<= 256) keeps VMEM bounded regardless of B; round to 8.
    tb_eff = min(tb, max(8, ((B + 7) // 8) * 8))
    b_pad = ((B + tb_eff - 1) // tb_eff) * tb_eff

    # Pad batch rows and feature dim 784 -> 896 with zeros once, outside the
    # kernel, so every tile is (8, 128)-aligned.
    x_pad = jnp.zeros((b_pad, IN_PADDED), jnp.float32).at[:B, :IN_FEATURES].set(x2d)

    (w1, b1), (w2, b2), (w3, b3), (w4, b4) = params

    grid = (b_pad // tb_eff,)
    const2d = lambda arr: pl.BlockSpec(arr.shape, lambda i: (0, 0))

    out = pl.pallas_call(
        discriminator_kernel,
        out_shape=jax.ShapeDtypeStruct((b_pad, 1), jnp.float32),
        grid=grid,
        in_specs=[
            pl.BlockSpec((tb_eff, IN_PADDED), lambda i: (i, 0)),
            const2d(w1), const2d(b1),
            const2d(w2), const2d(b2),
            const2d(w3), const2d(b3),
            const2d(w4), const2d(b4),
        ],
        out_specs=pl.BlockSpec((tb_eff, 1), lambda i: (i, 0)),
        compiler_params=pltpu.CompilerParams(
            dimension_semantics=("parallel",),
            vmem_limit_bytes=32 << 20,
        ),
    )(x_pad, w1, b1, w2, b2, w3, b3, w4, b4)

    return out[:B]


def init_params(key):
    """Deterministic init matching nn.Linear's default U(-1/sqrt(fan_in), 1/sqrt(fan_in)).

    Weights stored as (in_features, out_features) in bf16 (layer 1 zero-padded to
    896 input rows; layer 4 stored as a (1, 256) row).  Biases are f32 (1, out).
    """
    dims = [(IN_FEATURES, H1), (H1, H2), (H2, H3), (H3, 1)]
    params = []
    for li, (fan_in, fan_out) in enumerate(dims):
        key, kw, kb = jax.random.split(key, 3)
        bound = 1.0 / jnp.sqrt(jnp.float32(fan_in))
        w = jax.random.uniform(kw, (fan_in, fan_out), jnp.float32, -bound, bound)
        b = jax.random.uniform(kb, (1, fan_out), jnp.float32, -bound, bound)
        if li == 0:
            # Zero-pad K: 784 -> 896 to match the lane-padded input.
            w = jnp.zeros((IN_PADDED, fan_out), jnp.float32).at[:fan_in, :].set(w)
        if li == 3:
            # Final layer as a (1, 256) row for the VPU lane reduction.
            w = w.T
        params.append((w.astype(jnp.bfloat16), b))
    return params


if __name__ == "__main__":
    key = jax.random.PRNGKey(0)
    key, kx = jax.random.split(key)

    # Small MNIST-like input: (B, C, H, W) = (2, 1, 28, 28) -> flattened to (2, 784).
    x = jax.random.normal(kx, (2, 1, 28, 28), jnp.float32)

    params = init_params(key)
    out = discriminator_forward(x, params)
    out = jax.block_until_ready(out)

    assert out.shape == (2, 1), out.shape
    assert bool(jnp.all((out >= 0.0) & (out <= 1.0)))

    print("KERNEL_OK")
</pallas_src>

<mosaic_0001>
module attributes {stable_mosaic.version = 11 : i64} {
  func.func @discriminator_kernel(%arg0: i32, %arg1: memref<8x896xf32, #tpu.memory_space<vmem>>, %arg2: memref<896x1024xbf16, #tpu.memory_space<vmem>>, %arg3: memref<1x1024xf32, #tpu.memory_space<vmem>>, %arg4: memref<1024x512xbf16, #tpu.memory_space<vmem>>, %arg5: memref<1x512xf32, #tpu.memory_space<vmem>>, %arg6: memref<512x256xbf16, #tpu.memory_space<vmem>>, %arg7: memref<1x256xf32, #tpu.memory_space<vmem>>, %arg8: memref<1x256xbf16, #tpu.memory_space<vmem>>, %arg9: memref<1x1xf32, #tpu.memory_space<vmem>>, %arg10: memref<8x1xf32, #tpu.memory_space<vmem>>) attributes {dimension_semantics = [#tpu.dimension_semantics<parallel>], iteration_bounds = array<i64: 1>, scalar_prefetch = 0 : i64, scratch_operands = 0 : i64, tpu.core_type = #tpu.core_type<tc>, window_params = [{transform_indices = @transform_0, window_bounds = array<i64: 8, 896>}, {pipeline_mode = #tpu.pipeline_mode<synchronous>, transform_indices = @transform_1, window_bounds = array<i64: 896, 1024>}, {pipeline_mode = #tpu.pipeline_mode<synchronous>, transform_indices = @transform_2, window_bounds = array<i64: 1, 1024>}, {pipeline_mode = #tpu.pipeline_mode<synchronous>, transform_indices = @transform_3, window_bounds = array<i64: 1024, 512>}, {pipeline_mode = #tpu.pipeline_mode<synchronous>, transform_indices = @transform_4, window_bounds = array<i64: 1, 512>}, {pipeline_mode = #tpu.pipeline_mode<synchronous>, transform_indices = @transform_5, window_bounds = array<i64: 512, 256>}, {pipeline_mode = #tpu.pipeline_mode<synchronous>, transform_indices = @transform_6, window_bounds = array<i64: 1, 256>}, {pipeline_mode = #tpu.pipeline_mode<synchronous>, transform_indices = @transform_7, window_bounds = array<i64: 1, 256>}, {pipeline_mode = #tpu.pipeline_mode<synchronous>, transform_indices = @transform_8, window_bounds = array<i64: 1, 1>}, {transform_indices = @transform_9, window_bounds = array<i64: 8, 1>}]} {
    %c0 = arith.constant 0 : index
    %c0_0 = arith.constant 0 : index
    %0 = vector.load %arg1[%c0, %c0_0] : memref<8x896xf32, #tpu.memory_space<vmem>>, vector<8x896xf32>
    %1 = arith.truncf %0 : vector<8x896xf32> to vector<8x896xbf16>
    %c0_1 = arith.constant 0 : index
    %c0_2 = arith.constant 0 : index
    %2 = vector.load %arg2[%c0_1, %c0_2] : memref<896x1024xbf16, #tpu.memory_space<vmem>>, vector<896x1024xbf16>
    %cst = arith.constant dense<0.000000e+00> : vector<8x1024xf32>
    %3 = tpu.matmul %1, %2, %cst {dimension_numbers = #tpu.dot_dimension_numbers<[1], [0], [0], [1], [0, 0, 1, 1], [], []>} : vector<8x896xbf16>, vector<896x1024xbf16>, vector<8x1024xf32> -> vector<8x1024xf32>
    %c0_3 = arith.constant 0 : index
    %c0_4 = arith.constant 0 : index
    %4 = vector.load %arg3[%c0_3, %c0_4] : memref<1x1024xf32, #tpu.memory_space<vmem>>, vector<1x1024xf32>
    %5 = vector.broadcast %4 : vector<1x1024xf32> to vector<8x1024xf32>
    %6 = arith.addf %3, %5 : vector<8x1024xf32>
    %cst_5 = arith.constant 0.000000e+00 : f32
    %7 = vector.broadcast %cst_5 : f32 to vector<8x1024xf32>
    %8 = arith.cmpf ogt, %6, %7 : vector<8x1024xf32>
    %cst_6 = arith.constant 2.000000e-01 : f32
    %9 = vector.broadcast %cst_6 : f32 to vector<8x1024xf32>
    %10 = arith.mulf %9, %6 : vector<8x1024xf32>
    %11 = arith.select %8, %6, %10 : vector<8x1024xi1>, vector<8x1024xf32>
    %12 = arith.truncf %11 : vector<8x1024xf32> to vector<8x1024xbf16>
    %c0_7 = arith.constant 0 : index
    %c0_8 = arith.constant 0 : index
    %13 = vector.load %arg4[%c0_7, %c0_8] : memref<1024x512xbf16, #tpu.memory_space<vmem>>, vector<1024x512xbf16>
    %cst_9 = arith.constant dense<0.000000e+00> : vector<8x512xf32>
    %14 = tpu.matmul %12, %13, %cst_9 {dimension_numbers = #tpu.dot_dimension_numbers<[1], [0], [0], [1], [0, 0, 1, 1], [], []>} : vector<8x1024xbf16>, vector<1024x512xbf16>, vector<8x512xf32> -> vector<8x512xf32>
    %c0_10 = arith.constant 0 : index
    %c0_11 = arith.constant 0 : index
    %15 = vector.load %arg5[%c0_10, %c0_11] : memref<1x512xf32, #tpu.memory_space<vmem>>, vector<1x512xf32>
    %16 = vector.broadcast %15 : vector<1x512xf32> to vector<8x512xf32>
    %17 = arith.addf %14, %16 : vector<8x512xf32>
    %cst_12 = arith.constant 0.000000e+00 : f32
    %18 = vector.broadcast %cst_12 : f32 to vector<8x512xf32>
    %19 = arith.cmpf ogt, %17, %18 : vector<8x512xf32>
    %cst_13 = arith.constant 2.000000e-01 : f32
    %20 = vector.broadcast %cst_13 : f32 to vector<8x512xf32>
    %21 = arith.mulf %20, %17 : vector<8x512xf32>
    %22 = arith.select %19, %17, %21 : vector<8x512xi1>, vector<8x512xf32>
    %23 = arith.truncf %22 : vector<8x512xf32> to vector<8x512xbf16>
    %c0_14 = arith.constant 0 : index
    %c0_15 = arith.constant 0 : index
    %24 = vector.load %arg6[%c0_14, %c0_15] : memref<512x256xbf16, #tpu.memory_space<vmem>>, vector<512x256xbf16>
    %cst_16 = arith.constant dense<0.000000e+00> : vector<8x256xf32>
    %25 = tpu.matmul %23, %24, %cst_16 {dimension_numbers = #tpu.dot_dimension_numbers<[1], [0], [0], [1], [0, 0, 1, 1], [], []>} : vector<8x512xbf16>, vector<512x256xbf16>, vector<8x256xf32> -> vector<8x256xf32>
    %c0_17 = arith.constant 0 : index
    %c0_18 = arith.constant 0 : index
    %26 = vector.load %arg7[%c0_17, %c0_18] : memref<1x256xf32, #tpu.memory_space<vmem>>, vector<1x256xf32>
    %27 = vector.broadcast %26 : vector<1x256xf32> to vector<8x256xf32>
    %28 = arith.addf %25, %27 : vector<8x256xf32>
    %cst_19 = arith.constant 0.000000e+00 : f32
    %29 = vector.broadcast %cst_19 : f32 to vector<8x256xf32>
    %30 = arith.cmpf ogt, %28, %29 : vector<8x256xf32>
    %cst_20 = arith.constant 2.000000e-01 : f32
    %31 = vector.broadcast %cst_20 : f32 to vector<8x256xf32>
    %32 = arith.mulf %31, %28 : vector<8x256xf32>
    %33 = arith.select %30, %28, %32 : vector<8x256xi1>, vector<8x256xf32>
    %c0_21 = arith.constant 0 : index
    %c0_22 = arith.constant 0 : index
    %34 = vector.load %arg8[%c0_21, %c0_22] : memref<1x256xbf16, #tpu.memory_space<vmem>>, vector<1x256xbf16>
    %35 = arith.extf %34 : vector<1x256xbf16> to vector<1x256xf32>
    %36 = vector.broadcast %35 : vector<1x256xf32> to vector<8x256xf32>
    %37 = arith.mulf %33, %36 : vector<8x256xf32>
    %cst_23 = arith.constant dense<0.000000e+00> : vector<8xf32>
    %38 = vector.multi_reduction <add>, %37, %cst_23 [1] : vector<8x256xf32> to vector<8xf32>
    %39 = vector.shape_cast %38 : vector<8xf32> to vector<8x1xf32>
    %c0_24 = arith.constant 0 : index
    %c0_25 = arith.constant 0 : index
    %40 = vector.load %arg9[%c0_24, %c0_25] : memref<1x1xf32, #tpu.memory_space<vmem>>, vector<1x1xf32>
    %41 = vector.broadcast %40 : vector<1x1xf32> to vector<8x1xf32>
    %42 = arith.addf %39, %41 : vector<8x1xf32>
    %43 = arith.negf %42 : vector<8x1xf32>
    %44 = math.exp %43 : vector<8x1xf32>
    %cst_26 = arith.constant 1.000000e+00 : f32
    %45 = vector.broadcast %cst_26 : f32 to vector<8x1xf32>
    %46 = arith.addf %45, %44 : vector<8x1xf32>
    %47 = arith.divf %45, %46 : vector<8x1xf32>
    %c0_27 = arith.constant 0 : index
    %c0_28 = arith.constant 0 : index
    %48 = vector.load %arg10[%c0_27, %c0_28] : memref<8x1xf32, #tpu.memory_space<vmem>>, vector<8x1xf32>
    tpu.vector_store %arg10[%c0_27, %c0_28], %47 {strides = array<i32>} : memref<8x1xf32, #tpu.memory_space<vmem>>, vector<8x1xf32>,
    return
  }
  func.func @transform_0(%arg0: i32) -> (i32, i32) {
    %c0_i32 = arith.constant 0 : i32
    %c0_i32_0 = arith.constant 0 : i32
    return %arg0, %c0_i32 : i32, i32
  }
  func.func @transform_1(%arg0: i32) -> (i32, i32) {
    %c0_i32 = arith.constant 0 : i32
    %c0_i32_0 = arith.constant 0 : i32
    %c0_i32_1 = arith.constant 0 : i32
    return %c0_i32, %c0_i32_0 : i32, i32
  }
  func.func @transform_2(%arg0: i32) -> (i32, i32) {
    %c0_i32 = arith.constant 0 : i32
    %c0_i32_0 = arith.constant 0 : i32
    %c0_i32_1 = arith.constant 0 : i32
    return %c0_i32, %c0_i32_0 : i32, i32
  }
  func.func @transform_3(%arg0: i32) -> (i32, i32) {
    %c0_i32 = arith.constant 0 : i32
    %c0_i32_0 = arith.constant 0 : i32
    %c0_i32_1 = arith.constant 0 : i32
    return %c0_i32, %c0_i32_0 : i32, i32
  }
  func.func @transform_4(%arg0: i32) -> (i32, i32) {
    %c0_i32 = arith.constant 0 : i32
    %c0_i32_0 = arith.constant 0 : i32
    %c0_i32_1 = arith.constant 0 : i32
    return %c0_i32, %c0_i32_0 : i32, i32
  }
  func.func @transform_5(%arg0: i32) -> (i32, i32) {
    %c0_i32 = arith.constant 0 : i32
    %c0_i32_0 = arith.constant 0 : i32
    %c0_i32_1 = arith.constant 0 : i32
    return %c0_i32, %c0_i32_0 : i32, i32
  }
  func.func @transform_6(%arg0: i32) -> (i32, i32) {
    %c0_i32 = arith.constant 0 : i32
    %c0_i32_0 = arith.constant 0 : i32
    %c0_i32_1 = arith.constant 0 : i32
    return %c0_i32, %c0_i32_0 : i32, i32
  }
  func.func @transform_7(%arg0: i32) -> (i32, i32) {
    %c0_i32 = arith.constant 0 : i32
    %c0_i32_0 = arith.constant 0 : i32
    %c0_i32_1 = arith.constant 0 : i32
    return %c0_i32, %c0_i32_0 : i32, i32
  }
  func.func @transform_8(%arg0: i32) -> (i32, i32) {
    %c0_i32 = arith.constant 0 : i32
    %c0_i32_0 = arith.constant 0 : i32
    %c0_i32_1 = arith.constant 0 : i32
    return %c0_i32, %c0_i32_0 : i32, i32
  }
  func.func @transform_9(%arg0: i32) -> (i32, i32) {
    %c0_i32 = arith.constant 0 : i32
    %c0_i32_0 = arith.constant 0 : i32
    return %arg0, %c0_i32 : i32, i32
  }
}

</mosaic_0001>

<bundles_post_ra>
// kernel: tpu_custom_call.1
= control target key start
LH: loop header
LB: loop body
LE: loop exit
PB: predicated region body
PF: predicated region fallthrough
CT: control target
= control target key end

     0   :  { %s7741_s0 = inlined_call_operand.hbm [shape: f32[8,896], index: 0, kind: input, shape index: {}]   ;;  %s7742_s1 = inlined_call_operand.hbm [shape: bf16[896,1024], index: 1, kind: input, shape index: {}]   ;;  %s7743_s2 = inlined_call_operand.hbm [shape: f32[1,1024], index: 2, kind: input, shape index: {}]   ;;  %s7744_s3 = inlined_call_operand.hbm [shape: bf16[1024,512], index: 3, kind: input, shape index: {}]   ;;  %s7745_s4 = inlined_call_operand.hbm [shape: f32[1,512], index: 4, kind: input, shape index: {}]   ;;  %s7746_s5 = inlined_call_operand.hbm [shape: bf16[512,256], index: 5, kind: input, shape index: {}]   ;;  %s7747_s6 = inlined_call_operand.hbm [shape: f32[1,256], index: 6, kind: input, shape index: {}]   ;;  %s7748_s7 = inlined_call_operand.hbm [shape: bf16[1,256], index: 7, kind: input, shape index: {}]   ;;  %s7749_s8 = inlined_call_operand.<no memory space> [shape: f32[1,1], index: 8, kind: input, shape index: {}]   ;;  %s7750_s9 = inlined_call_operand.vmem [shape: f32[8,1], index: 9, kind: output, shape index: {}]  }
   0x1   :  { %v14_v0 = vstv %s7749_s8 }
   0x2   :  { %15 = vst [vmem:[#allocation2] sm:$0x1] %v14_v0 }
   0x3   :  { %16 = vsyncpa [#allocation4], 0 }
   0x4   :  { %17 = vsyncpa [#allocation6], 0 }
   0x5   :  { %18 = vsyncpa [#allocation9], 0 }
   0x6   :  { %19 = vsyncpa [#allocation12], 0 }
   0x7   :  { %20 = vsyncpa [#allocation15], 0  ;;  %s7443_s11 = smov [#allocation5]  }
   0x8   :  { %s36_s12 = sshll.u32 %s7443_s11, 4  ;;  %s37_s12 = int_to_ptr.vmem [resolvable:$true] %s36_s12 }
   0x9   :  { %s7281_s13 = scalar_lea.vmem %s37_s12, 57344  ;;  %p7286_p1 = scmp.lt.s32.totalorder %s37_s12, %s37_s12 }
   0xa   :  { %p7282_p0 = scmp.ne.s32.totalorder %s37_s12, %s7281_s13  ;;  %p7287_p2 = scmp.lt.s32.totalorder %s7281_s13, %s7281_s13 }
   0xc   :  { %p7288_p3 = por %p7287_p2, %p7286_p1 }
   0xe   :  { %p7289_p4 = pnand %p7288_p3, %p7282_p0 }
  0x10   :  { %7292 = shalt.err (!%p7289_p4)
}
  0x11   :  { %s7444_s14 = smov 512   ;;  %s7445_s15 = smov 32  }
  0x12   :  { %42 = dma.hbm_to_vmem [thread:$0]  %s7742_s1, 57344, %s37_s12, [#allocation6], %s7444_s14, %s7444_s14, %s7445_s15  }
  0x13   :  { %s7446_s17 = smov [#allocation8]  }
  0x14   :  { %s58_s18 = sshll.u32 %s7446_s17, 4  ;;  %s59_s18 = int_to_ptr.vmem [resolvable:$true] %s58_s18 }
  0x15   :  { %s7301_s19 = scalar_lea.vmem %s59_s18, 32768  ;;  %p7306_p6 = scmp.lt.s32.totalorder %s59_s18, %s59_s18 }
  0x16   :  { %p7302_p5 = scmp.ne.s32.totalorder %s59_s18, %s7301_s19  ;;  %p7307_p7 = scmp.lt.s32.totalorder %s7301_s19, %s7301_s19 }
  0x18   :  { %p7308_p8 = por %p7307_p7, %p7306_p6 }
  0x1a   :  { %p7309_p9 = pnand %p7308_p8, %p7302_p5 }
  0x1c   :  { %7312 = shalt.err (!%p7309_p9)
}
  0x1d   :  { %s7447_s20 = smov 256   ;;  %s7448_s21 = smov 16  }
  0x1e   :  { %64 = dma.hbm_to_vmem [thread:$0]  %s7744_s3, 32768, %s59_s18, [#allocation9], %s7447_s20, %s7447_s20, %s7448_s21  }
  0x1f   :  { %s7449_s24 = smov [#allocation11]  }
  0x20   :  { %s80_s25 = sshll.u32 %s7449_s24, 4  ;;  %s81_s25 = int_to_ptr.vmem [resolvable:$true] %s80_s25 }
  0x21   :  { %s7321_s1 = scalar_lea.vmem %s81_s25, 8192  ;;  %p7326_p11 = scmp.lt.s32.totalorder %s81_s25, %s81_s25 }
  0x22   :  { %p7322_p10 = scmp.ne.s32.totalorder %s81_s25, %s7321_s1  ;;  %p7327_p12 = scmp.lt.s32.totalorder %s7321_s1, %s7321_s1 }
  0x24   :  { %p7328_p13 = por %p7327_p12, %p7326_p11 }
  0x26   :  { %p7329_p0 = pnand %p7328_p13, %p7322_p10 }
  0x28   :  { %7332 = shalt.err (!%p7329_p0)
}
  0x29   :  { %s7450_s26 = smov 128   ;;  %s7451_s27 = smov 8  }
  0x2a   :  { %86 = dma.hbm_to_vmem [thread:$0]  %s7746_s5, 8192, %s81_s25, [#allocation12], %s7450_s26, %s7450_s26, %s7451_s27  }
  0x2b   :  { %s7452_s30 = smov [#allocation3]   ;;  %s7453_s3 = smov [#allocation7]  }
  0x2c   :  { %s27_s10 = sshll.u32 %s7452_s30, 4  ;;  %s49_s11 = sshll.u32 %s7453_s3, 4  ;;  %s28_s10 = int_to_ptr.vmem [resolvable:$true] %s27_s10  ;;  %s50_s11 = int_to_ptr.vmem [resolvable:$true] %s49_s11 }
  0x2d   :  { %s7341_s12 = scalar_lea.vmem %s28_s10, 896  ;;  %p7346_p2 = scmp.lt.s32.totalorder %s28_s10, %s28_s10 }
  0x2e   :  { %p7342_p1 = scmp.ne.s32.totalorder %s28_s10, %s7341_s12  ;;  %p7347_p3 = scmp.lt.s32.totalorder %s7341_s12, %s7341_s12 }
  0x30   :  { %p7348_p4 = por %p7347_p3, %p7346_p2 }
  0x32   :  { %p7349_p5 = pnand %p7348_p4, %p7342_p1 }
  0x34   :  { %7352 = shalt.err (!%p7349_p5)
}
  0x35   :  { %30 = dma.hbm_to_vmem [thread:$0]  %s7741_s0, 896, %s28_s10, [#allocation4]  }
  0x36   :  { %s7361_s15 = scalar_lea.vmem %s50_s11, 128  ;;  %p7366_p7 = scmp.lt.s32.totalorder %s50_s11, %s50_s11 }
  0x37   :  { %p7362_p6 = scmp.ne.s32.totalorder %s50_s11, %s7361_s15  ;;  %p7367_p8 = scmp.lt.s32.totalorder %s7361_s15, %s7361_s15 }
  0x39   :  { %p7368_p9 = por %p7367_p8, %p7366_p7 }
  0x3b   :  { %p7369_p10 = pnand %p7368_p9, %p7362_p6 }
  0x3d   :  { %7372 = shalt.err (!%p7369_p10)
}
  0x3e   :  { %52 = dma.hbm_to_vmem [thread:$0]  %s7743_s2, 128, %s50_s11, [#allocation6]  }
  0x3f   :  { %s7454_s8 = smov [#allocation10]   ;;  %s7455_s18 = smov [#allocation13]  }
  0x40   :  { %s71_s17 = sshll.u32 %s7454_s8, 4  ;;  %s93_s19 = sshll.u32 %s7455_s18, 4  ;;  %s72_s17 = int_to_ptr.vmem [resolvable:$true] %s71_s17  ;;  %s94_s19 = int_to_ptr.vmem [resolvable:$true] %s93_s19 }
  0x41   :  { %s7381_s20 = scalar_lea.vmem %s72_s17, 64  ;;  %p7386_p12 = scmp.lt.s32.totalorder %s72_s17, %s72_s17 }
  0x42   :  { %p7382_p11 = scmp.ne.s32.totalorder %s72_s17, %s7381_s20  ;;  %p7387_p13 = scmp.lt.s32.totalorder %s7381_s20, %s7381_s20 }
  0x44   :  { %p7388_p0 = por %p7387_p13, %p7386_p12 }
  0x46   :  { %p7389_p1 = pnand %p7388_p0, %p7382_p11 }
  0x48   :  { %7392 = shalt.err (!%p7389_p1)
}
  0x49   :  { %74 = dma.hbm_to_vmem [thread:$0]  %s7745_s4, 64, %s72_s17, [#allocation9]  }
  0x4a   :  { %s7401_s22 = scalar_lea.vmem %s94_s19, 32  ;;  %p7406_p3 = scmp.lt.s32.totalorder %s94_s19, %s94_s19 }
  0x4b   :  { %p7402_p2 = scmp.ne.s32.totalorder %s94_s19, %s7401_s22  ;;  %p7407_p4 = scmp.lt.s32.totalorder %s7401_s22, %s7401_s22 }
  0x4d   :  { %p7408_p5 = por %p7407_p4, %p7406_p3 }
  0x4f   :  { %p7409_p6 = pnand %p7408_p5, %p7402_p2 }
  0x51   :  { %7412 = shalt.err (!%p7409_p6)
}
  0x52   :  { %96 = dma.hbm_to_vmem [thread:$0]  %s7747_s6, 32, %s94_s19, [#allocation12]  }
  0x53   :  { %s7456_s24 = smov [#allocation14]  }
  0x54   :  { %s103_s25 = sshll.u32 %s7456_s24, 4  ;;  %s104_s25 = int_to_ptr.vmem [resolvable:$true] %s103_s25 }
  0x55   :  { %s7421_s1 = scalar_lea.vmem %s104_s25, 32  ;;  %p7426_p8 = scmp.lt.s32.totalorder %s104_s25, %s104_s25 }
  0x56   :  { %p7422_p7 = scmp.ne.s32.totalorder %s104_s25, %s7421_s1  ;;  %p7427_p9 = scmp.lt.s32.totalorder %s7421_s1, %s7421_s1 }
  0x58   :  { %p7428_p10 = por %p7427_p9, %p7426_p8 }
  0x5a   :  { %p7429_p11 = pnand %p7428_p10, %p7422_p7 }
  0x5c   :  { %7432 = shalt.err (!%p7429_p11)
}
  0x5d   :  { %106 = dma.hbm_to_vmem [thread:$0]  %s7748_s7, 32, %s104_s25, [#allocation15]  }
  0x5e   :  { %7433 = dma.done.wait [#allocation4], 896  }
  0x5f   :  { %7434 = vsyncadd [#allocation4], 4294966400 }
  0x60   :  { %7435 = dma.done.wait [#allocation6], 57472  }
  0x61   :  { %7436 = vsyncadd [#allocation6], 4294909824 }
  0x62   :  { %7437 = dma.done.wait [#allocation9], 32832  }
  0x63   :  { %7438 = vsyncadd [#allocation9], 4294934464 }
  0x64   :  { %7439 = dma.done.wait [#allocation12], 8224  }
  0x65   :  { %7440 = vsyncadd [#allocation12], 4294959072 }
  0x66   :  { %7441 = dma.done.wait [#allocation15], 32  }
  0x67   :  { %7442 = vsyncadd [#allocation15], 4294967264  ;;  %v204_v1 = vld [vmem:[#allocation5 + $0x1c0] sm:$0xff]  ;;  %v135_v54 = vld [vmem:[#allocation3 + $0x8] sm:$0xff]  ;;  %vm5992_vm14 = vcmask 7168  }
  0x68   :  { %v208_v2 = vld [vmem:[#allocation5 + $0x1e0] sm:$0xff]  ;;  %v7535_v59 = vpack.c.bf16 %v135_v54, %v135_v54 }
  0x69   :  { %v332_v3 = vld [vmem:[#allocation5 + $0x5c0] sm:$0xff]  ;;  %v6060_v4 = vcombine.high %v204_v1, %v208_v2  ;;  %v6059_v6 = vcombine.low %v204_v1, %v208_v2 }
  0x6a   :  { %v336_v5 = vld [vmem:[#allocation5 + $0x5e0] sm:$0xff]  ;;  %2910 = vmatprep.mubr.bf16.mxu0 %v7535_v59 }
  0x6b   :  { %v196_v7 = vld [vmem:[#allocation5 + $0x180] sm:$0xff]  ;;  %v6188_v9 = vcombine.high %v332_v3, %v336_v5  ;;  %v6187_v10 = vcombine.low %v332_v3, %v336_v5  ;;  %2878 = vmatprep.subr.bf16.mxu0 %v6060_v4 }
  0x6c   :  { %v200_v8 = vld [vmem:[#allocation5 + $0x1a0] sm:$0xff]  ;;  %2879 = vmatpush1.bf16.msra.mxu0 %v6059_v6 }
  0x6d   :  { %v6052_v11 = vcombine.high %v196_v7, %v200_v8  ;;  %v324_v12 = vld [vmem:[#allocation5 + $0x580] sm:$0xff]  ;;  %2919 = vmatprep.subr.bf16.mxu1 %v6188_v9  ;;  %v6051_v19 = vcombine.low %v196_v7, %v200_v8 }
  0x6e   :  { %v328_v13 = vld [vmem:[#allocation5 + $0x5a0] sm:$0xff]  ;;  %2920 = vmatpush1.bf16.msra.mxu1 %v6187_v10 }
  0x6f   :  { %v188_v14 = vld [vmem:[#allocation5 + $0x140] sm:$0xff]  ;;  %v6180_v15 = vcombine.high %v324_v12, %v328_v13  ;;  %2880 = vmatprep.subr.bf16.mxu0 %v6052_v11  ;;  %v6179_v20 = vcombine.low %v324_v12, %v328_v13 }
  0x70   :  { %v192_v16 = vld [vmem:[#allocation5 + $0x160] sm:$0xff]  ;;  %2881 = vmatpush1.bf16.msra.mxu0 %v6051_v19 }
  0x71   :  { %v316_v17 = vld [vmem:[#allocation5 + $0x540] sm:$0xff]  ;;  %v6044_v21 = vcombine.high %v188_v14, %v192_v16  ;;  %2921 = vmatprep.subr.bf16.mxu1 %v6180_v15  ;;  %v6043_v27 = vcombine.low %v188_v14, %v192_v16 }
  0x72   :  { %v320_v18 = vld [vmem:[#allocation5 + $0x560] sm:$0xff]  ;;  %2922 = vmatpush1.bf16.msra.mxu1 %v6179_v20 }
  0x73   :  { %v6172_v22 = vcombine.high %v316_v17, %v320_v18  ;;  %v180_v23 = vld [vmem:[#allocation5 + $0x100] sm:$0xff]  ;;  %2882 = vmatprep.subr.bf16.mxu0 %v6044_v21  ;;  %v6171_v28 = vcombine.low %v316_v17, %v320_v18 }
  0x74   :  { %v184_v24 = vld [vmem:[#allocation5 + $0x120] sm:$0xff]  ;;  %2883 = vmatpush1.bf16.msra.mxu0 %v6043_v27 }
  0x75   :  { %v308_v25 = vld [vmem:[#allocation5 + $0x500] sm:$0xff]  ;;  %v6036_v29 = vcombine.high %v180_v23, %v184_v24  ;;  %2923 = vmatprep.subr.bf16.mxu1 %v6172_v22  ;;  %v6035_v35 = vcombine.low %v180_v23, %v184_v24 }
  0x76   :  { %v312_v26 = vld [vmem:[#allocation5 + $0x520] sm:$0xff]  ;;  %2924 = vmatpush1.bf16.msra.mxu1 %v6171_v28 }
  0x77   :  { %v6164_v30 = vcombine.high %v308_v25, %v312_v26  ;;  %v172_v31 = vld [vmem:[#allocation5 + $0xc0] sm:$0xff]  ;;  %2884 = vmatprep.subr.bf16.mxu0 %v6036_v29  ;;  %v6163_v36 = vcombine.low %v308_v25, %v312_v26 }
  0x78   :  { %v176_v32 = vld [vmem:[#allocation5 + $0xe0] sm:$0xff]  ;;  %2885 = vmatpush1.bf16.msra.mxu0 %v6035_v35 }
  0x79   :  { %v300_v33 = vld [vmem:[#allocation5 + $0x4c0] sm:$0xff]  ;;  %v6028_v37 = vcombine.high %v172_v31, %v176_v32  ;;  %2925 = vmatprep.subr.bf16.mxu1 %v6164_v30  ;;  %v6027_v43 = vcombine.low %v172_v31, %v176_v32 }
  0x7a   :  { %v304_v34 = vld [vmem:[#allocation5 + $0x4e0] sm:$0xff]  ;;  %2926 = vmatpush1.bf16.msra.mxu1 %v6163_v36 }
  0x7b   :  { %v6156_v38 = vcombine.high %v300_v33, %v304_v34  ;;  %v164_v39 = vld [vmem:[#allocation5 + $0x80] sm:$0xff]  ;;  %2886 = vmatprep.subr.bf16.mxu0 %v6028_v37  ;;  %v6155_v44 = vcombine.low %v300_v33, %v304_v34 }
  0x7c   :  { %v168_v40 = vld [vmem:[#allocation5 + $0xa0] sm:$0xff]  ;;  %2887 = vmatpush1.bf16.msra.mxu0 %v6027_v43 }
  0x7d   :  { %v292_v41 = vld [vmem:[#allocation5 + $0x480] sm:$0xff]  ;;  %v6020_v45 = vcombine.high %v164_v39, %v168_v40  ;;  %2927 = vmatprep.subr.bf16.mxu1 %v6156_v38  ;;  %v6019_v51 = vcombine.low %v164_v39, %v168_v40 }
  0x7e   :  { %v296_v42 = vld [vmem:[#allocation5 + $0x4a0] sm:$0xff]  ;;  %2928 = vmatpush1.bf16.msra.mxu1 %v6155_v44 }
  0x7f   :  { %v6148_v46 = vcombine.high %v292_v41, %v296_v42  ;;  %v156_v47 = vld [vmem:[#allocation5 + $0x40] sm:$0xff]  ;;  %2888 = vmatprep.subr.bf16.mxu0 %v6020_v45  ;;  %v6147_v52 = vcombine.low %v292_v41, %v296_v42 }
  0x80   :  { %v160_v48 = vld [vmem:[#allocation5 + $0x60] sm:$0xff]  ;;  %2889 = vmatpush1.bf16.msra.mxu0 %v6019_v51 }
  0x81   :  { %v284_v49 = vld [vmem:[#allocation5 + $0x440] sm:$0xff]  ;;  %v6012_v53 = vcombine.high %v156_v47, %v160_v48  ;;  %2929 = vmatprep.subr.bf16.mxu1 %v6148_v46  ;;  %v6011_v63 = vcombine.low %v156_v47, %v160_v48 }
  0x82   :  { %v288_v50 = vld [vmem:[#allocation5 + $0x460] sm:$0xff]  ;;  %2930 = vmatpush1.bf16.msra.mxu1 %v6147_v52 }
  0x83   :  { %v137_v55 = vld [vmem:[#allocation3 + $0x18] sm:$0xff]  ;;  %v6140_v56 = vcombine.high %v284_v49, %v288_v50  ;;  %2890 = vmatprep.subr.bf16.mxu0 %v6012_v53  ;;  %v6139_v0 = vcombine.low %v284_v49, %v288_v50 }
  0x84   :  { %v148_v57 = vld [vmem:[#allocation5] sm:$0xff]  ;;  %v7537_v60 = vpack.c.bf16 %v137_v55, %v137_v55  ;;  %2891 = vmatpush1.bf16.msra.mxu0 %v6011_v63 }
  0x85   :  { %v152_v58 = vld [vmem:[#allocation5 + $0x20] sm:$0xff]  ;;  %2931 = vmatprep.subr.bf16.mxu1 %v6140_v56 }
  0x86   :  { %v276_v61 = vld [vmem:[#allocation5 + $0x400] sm:$0xff]  ;;  %v6004_v1 = vcombine.high %v148_v57, %v152_v58  ;;  %2951 = vmatprep.mubr.bf16.mxu1 %v7537_v60  ;;  %v6003_v7 = vcombine.low %v148_v57, %v152_v58  ;;  %2932 = vmatpush1.bf16.msra.mxu1 %v6139_v0 }
  0x87   :  { %v280_v62 = vld [vmem:[#allocation5 + $0x420] sm:$0xff] }
  0x88   :  { %v6132_v2 = vcombine.high %v276_v61, %v280_v62  ;;  %v268_v3 = vld [vmem:[#allocation5 + $0x3c0] sm:$0xff]  ;;  %2892 = vmatprep.subr.bf16.mxu0 %v6004_v1  ;;  %v6131_v8 = vcombine.low %v276_v61, %v280_v62 }
  0x89   :  { %v272_v4 = vld [vmem:[#allocation5 + $0x3e0] sm:$0xff]  ;;  %2893 = vmatpush1.bf16.msra.mxu0 %v6003_v7 }
  0x8a   :  { %v396_v5 = vld [vmem:[#allocation5 + $0x7c0] sm:$0xff]  ;;  %v6124_v9 = vcombine.high %v268_v3, %v272_v4  ;;  %2933 = vmatprep.subr.bf16.mxu1 %v6132_v2  ;;  %v6123_v15 = vcombine.low %v268_v3, %v272_v4 }
  0x8b   :  { %v400_v6 = vld [vmem:[#allocation5 + $0x7e0] sm:$0xff]  ;;  %2934 = vmatpush1.bf16.msra.mxu1 %v6131_v8 }
  0x8c   :  { %v6252_v10 = vcombine.high %v396_v5, %v400_v6  ;;  %v260_v11 = vld [vmem:[#allocation5 + $0x380] sm:$0xff]  ;;  %2894 = vmatprep.subr.bf16.mxu0 %v6124_v9  ;;  %v6251_v16 = vcombine.low %v396_v5, %v400_v6 }
  0x8d   :  { %v264_v12 = vld [vmem:[#allocation5 + $0x3a0] sm:$0xff]  ;;  %2895 = vmatpush2.bf16.msra.mxu0 %v6123_v15 }
  0x8e   :  { %v388_v13 = vld [vmem:[#allocation5 + $0x780] sm:$0xff]  ;;  %v6116_v17 = vcombine.high %v260_v11, %v264_v12  ;;  %2935 = vmatprep.subr.bf16.mxu1 %v6252_v10  ;;  %v6115_v23 = vcombine.low %v260_v11, %v264_v12  ;;  %v134_v10 = vld [vmem:[#allocation3] sm:$0xff]  ;;  %v136_v12 = vld [vmem:[#allocation3 + $0x10] sm:$0xff] }
  0x8f   :  { %v392_v14 = vld [vmem:[#allocation5 + $0x7a0] sm:$0xff]  ;;  %2936 = vmatpush2.bf16.msra.mxu1 %v6251_v16 }
  0x90   :  { %v6244_v18 = vcombine.high %v388_v13, %v392_v14  ;;  %v252_v19 = vld [vmem:[#allocation5 + $0x340] sm:$0xff]  ;;  %2896 = vmatprep.subr.bf16.mxu0 %v6116_v17  ;;  %v6243_v24 = vcombine.low %v388_v13, %v392_v14  ;;  %v7541_v17 = vpack.c.bf16 %v134_v10, %v134_v10 }
  0x91   :  { %v256_v20 = vld [vmem:[#allocation5 + $0x360] sm:$0xff]  ;;  %2897 = vmatpush2.bf16.msra.mxu0 %v6115_v23 }
  0x92   :  { %v380_v21 = vld [vmem:[#allocation5 + $0x740] sm:$0xff]  ;;  %v6108_v25 = vcombine.high %v252_v19, %v256_v20  ;;  %2937 = vmatprep.subr.bf16.mxu1 %v6244_v18  ;;  %v6107_v31 = vcombine.low %v252_v19, %v256_v20  ;;  %v7543_v20 = vpack.c.bf16 %v136_v12, %v136_v12 }
  0x93   :  { %v384_v22 = vld [vmem:[#allocation5 + $0x760] sm:$0xff]  ;;  %2938 = vmatpush2.bf16.msra.mxu1 %v6243_v24 }
  0x94   :  { %v6236_v26 = vcombine.high %v380_v21, %v384_v22  ;;  %v244_v27 = vld [vmem:[#allocation5 + $0x300] sm:$0xff]  ;;  %2898 = vmatprep.subr.bf16.mxu0 %v6108_v25  ;;  %v6235_v32 = vcombine.low %v380_v21, %v384_v22  ;;  %v139_v22 = vld [vmem:[#allocation3 + $0x28] sm:$0xff] }
  0x95   :  { %v248_v28 = vld [vmem:[#allocation5 + $0x320] sm:$0xff]  ;;  %2899 = vmatpush2.bf16.msra.mxu0 %v6107_v31 }
  0x96   :  { %v372_v29 = vld [vmem:[#allocation5 + $0x700] sm:$0xff]  ;;  %v6100_v33 = vcombine.high %v244_v27, %v248_v28  ;;  %2939 = vmatprep.subr.bf16.mxu1 %v6236_v26  ;;  %v6099_v39 = vcombine.low %v244_v27, %v248_v28 }
  0x97   :  { %v376_v30 = vld [vmem:[#allocation5 + $0x720] sm:$0xff]  ;;  %2940 = vmatpush2.bf16.msra.mxu1 %v6235_v32 }
  0x98   :  { %v6228_v34 = vcombine.high %v372_v29, %v376_v30  ;;  %v236_v35 = vld [vmem:[#allocation5 + $0x2c0] sm:$0xff]  ;;  %2900 = vmatprep.subr.bf16.mxu0 %v6100_v33  ;;  %v6227_v40 = vcombine.low %v372_v29, %v376_v30  ;;  %v7546_v30 = vpack.c.bf16 %v139_v22, %v139_v22 }
  0x99   :  { %v240_v36 = vld [vmem:[#allocation5 + $0x2e0] sm:$0xff]  ;;  %2901 = vmatpush2.bf16.msra.mxu0 %v6099_v39  ;;  %v7457_v39 = vmov 0  }
  0x9a   :  { %v364_v37 = vld [vmem:[#allocation5 + $0x6c0] sm:$0xff]  ;;  %v6092_v41 = vcombine.high %v236_v35, %v240_v36  ;;  %2941 = vmatprep.subr.bf16.mxu1 %v6228_v34  ;;  %v6091_v47 = vcombine.low %v236_v35, %v240_v36 }
  0x9b   :  { %v368_v38 = vld [vmem:[#allocation5 + $0x6e0] sm:$0xff]  ;;  %2942 = vmatpush2.bf16.msra.mxu1 %v6227_v40 }
  0x9c   :  { %v6220_v42 = vcombine.high %v364_v37, %v368_v38  ;;  %v228_v43 = vld [vmem:[#allocation5 + $0x280] sm:$0xff]  ;;  %2902 = vmatprep.subr.bf16.mxu0 %v6092_v41  ;;  %v6219_v48 = vcombine.low %v364_v37, %v368_v38 }
  0x9d   :  { %v232_v44 = vld [vmem:[#allocation5 + $0x2a0] sm:$0xff]  ;;  %2903 = vmatpush2.bf16.msra.mxu0 %v6091_v47 }
  0x9e   :  { %v356_v45 = vld [vmem:[#allocation5 + $0x680] sm:$0xff]  ;;  %v6084_v49 = vcombine.high %v228_v43, %v232_v44  ;;  %2943 = vmatprep.subr.bf16.mxu1 %v6220_v42  ;;  %v6083_v55 = vcombine.low %v228_v43, %v232_v44 }
  0x9f   :  { %v360_v46 = vld [vmem:[#allocation5 + $0x6a0] sm:$0xff]  ;;  %2944 = vmatpush2.bf16.msra.mxu1 %v6219_v48 }
  0xa0   :  { %v6212_v50 = vcombine.high %v356_v45, %v360_v46  ;;  %v220_v51 = vld [vmem:[#allocation5 + $0x240] sm:$0xff]  ;;  %2904 = vmatprep.subr.bf16.mxu0 %v6084_v49  ;;  %v6211_v56 = vcombine.low %v356_v45, %v360_v46 }
  0xa1   :  { %v224_v52 = vld [vmem:[#allocation5 + $0x260] sm:$0xff]  ;;  %2905 = vmatpush2.bf16.msra.mxu0 %v6083_v55 }
  0xa2   :  { %v348_v53 = vld [vmem:[#allocation5 + $0x640] sm:$0xff]  ;;  %v6076_v57 = vcombine.high %v220_v51, %v224_v52  ;;  %2945 = vmatprep.subr.bf16.mxu1 %v6212_v50  ;;  %v6075_v1 = vcombine.low %v220_v51, %v224_v52 }
  0xa3   :  { %v352_v54 = vld [vmem:[#allocation5 + $0x660] sm:$0xff]  ;;  %2946 = vmatpush2.bf16.msra.mxu1 %v6211_v56 }
  0xa4   :  { %v6204_v58 = vcombine.high %v348_v53, %v352_v54  ;;  %v212_v61 = vld [vmem:[#allocation5 + $0x200] sm:$0xff]  ;;  %2906 = vmatprep.subr.bf16.mxu0 %v6076_v57  ;;  %v6203_v2 = vcombine.low %v348_v53, %v352_v54 }
  0xa5   :  { %v216_v62 = vld [vmem:[#allocation5 + $0x220] sm:$0xff]  ;;  %2907 = vmatpush2.bf16.msra.mxu0 %v6075_v1 }
  0xa6   :  { %v340_v63 = vld [vmem:[#allocation5 + $0x600] sm:$0xff]  ;;  %v6068_v3 = vcombine.high %v212_v61, %v216_v62  ;;  %2947 = vmatprep.subr.bf16.mxu1 %v6204_v58  ;;  %v6067_v9 = vcombine.low %v212_v61, %v216_v62 }
  0xa7   :  { %v344_v0 = vld [vmem:[#allocation5 + $0x620] sm:$0xff]  ;;  %2948 = vmatpush2.bf16.msra.mxu1 %v6203_v2 }
  0xa8   :  { %v6196_v4 = vcombine.high %v340_v63, %v344_v0  ;;  %v460_v5 = vld [vmem:[#allocation5 + $0x9c0] sm:$0xff]  ;;  %2908 = vmatprep.subr.bf16.mxu0 %v6068_v3  ;;  %v6195_v11 = vcombine.low %v340_v63, %v344_v0 }
  0xa9   :  { %v464_v6 = vld [vmem:[#allocation5 + $0x9e0] sm:$0xff]  ;;  %2909 = vmatpush2.bf16.msra.mxu0 %v6067_v9 }
  0xaa   :  { %v588_v7 = vld [vmem:[#allocation5 + $0xdc0] sm:$0xff]  ;;  %v6316_v13 = vcombine.high %v460_v5, %v464_v6  ;;  %2949 = vmatprep.subr.bf16.mxu1 %v6196_v4  ;;  %v6315_v21 = vcombine.low %v460_v5, %v464_v6 }
  0xab   :  { %v592_v8 = vld [vmem:[#allocation5 + $0xde0] sm:$0xff]  ;;  %2950 = vmatpush2.bf16.msra.mxu1 %v6195_v11 }
  0xac   :  { %v6444_v14 = vcombine.high %v588_v7, %v592_v8  ;;  %v452_v15 = vld [vmem:[#allocation5 + $0x980] sm:$0xff]  ;;  %2960 = vmatprep.subr.bf16.mxu0 %v6316_v13  ;;  %v6443_v23 = vcombine.low %v588_v7, %v592_v8  ;;  %2911 = vmatmul.mubr.bf16.vlgmr.msra.gmra.mxu0 %v7541_v17 }
  0xad   :  { %v456_v16 = vld [vmem:[#allocation5 + $0x9a0] sm:$0xff]  ;;  %2961 = vmatpush1.bf16.msra.mxu0 %v6315_v21  ;;  %2992 = vmatprep.mubr.bf16.mxu0 %v7546_v30 }
  0xae   :  { %v580_v18 = vld [vmem:[#allocation5 + $0xd80] sm:$0xff]  ;;  %v6308_v24 = vcombine.high %v452_v15, %v456_v16  ;;  %3001 = vmatprep.subr.bf16.mxu1 %v6444_v14  ;;  %2952 = vmatmul.mubr.bf16.vlgmr.msra.gmra.mxu1 %v7543_v20  ;;  %v6307_v31 = vcombine.low %v452_v15, %v456_v16  ;;  %v205_v15 = vld [vmem:[#allocation5 + $0x1c8] sm:$0xff] }
  0xaf   :  { %v584_v19 = vld [vmem:[#allocation5 + $0xda0] sm:$0xff]  ;;  %3002 = vmatpush1.bf16.msra.mxu1 %v6443_v23  ;;  %3033 = vmatprep.mubr.bf16.mxu1 %v7457_v39 }
  0xb0   :  { %v6436_v25 = vcombine.high %v580_v18, %v584_v19  ;;  %v444_v26 = vld [vmem:[#allocation5 + $0x940] sm:$0xff]  ;;  %2962 = vmatprep.subr.bf16.mxu0 %v6308_v24  ;;  %v6435_v32 = vcombine.low %v580_v18, %v584_v19  ;;  %v209_v18 = vld [vmem:[#allocation5 + $0x1e8] sm:$0xff]  ;;  %v140_v19 = vld [vmem:[#allocation3 + $0x30] sm:$0xff] }
  0xb1   :  { %v448_v27 = vld [vmem:[#allocation5 + $0x960] sm:$0xff]  ;;  %2963 = vmatpush1.bf16.msra.mxu0 %v6307_v31  ;;  %v7551_v31 = vpack.c.bf16 %v140_v19, %v140_v19 }
  0xb2   :  { %v572_v28 = vld [vmem:[#allocation5 + $0xd40] sm:$0xff]  ;;  %v6300_v33 = vcombine.high %v444_v26, %v448_v27  ;;  %3003 = vmatprep.subr.bf16.mxu1 %v6436_v25  ;;  %v6299_v40 = vcombine.low %v444_v26, %v448_v27  ;;  %v197_v26 = vld [vmem:[#allocation5 + $0x188] sm:$0xff]  ;;  %v6062_v27 = vcombine.high %v205_v15, %v209_v18 }
  0xb3   :  { %v576_v29 = vld [vmem:[#allocation5 + $0xd60] sm:$0xff]  ;;  %3004 = vmatpush1.bf16.msra.mxu1 %v6435_v32  ;;  %v6061_v32 = vcombine.low %v205_v15, %v209_v18  ;;  %v149_v15 = vld [vmem:[#allocation5 + $0x8] sm:$0xff] }
  0xb4   :  { %v436_v34 = vld [vmem:[#allocation5 + $0x900] sm:$0xff]  ;;  %v6428_v37 = vcombine.high %v572_v28, %v576_v29  ;;  %2964 = vmatprep.subr.bf16.mxu0 %v6300_v33  ;;  %v6427_v41 = vcombine.low %v572_v28, %v576_v29  ;;  %v201_v28 = vld [vmem:[#allocation5 + $0x1a8] sm:$0xff] }
  0xb5   :  { %v440_v35 = vld [vmem:[#allocation5 + $0x920] sm:$0xff]  ;;  %2965 = vmatpush1.bf16.msra.mxu0 %v6299_v40  ;;  %v153_v18 = vld [vmem:[#allocation5 + $0x28] sm:$0xff] }
  0xb6   :  { %v564_v36 = vld [vmem:[#allocation5 + $0xd00] sm:$0xff]  ;;  %v6292_v42 = vcombine.high %v436_v34, %v440_v35  ;;  %3005 = vmatprep.subr.bf16.mxu1 %v6428_v37  ;;  %v6291_v48 = vcombine.low %v436_v34, %v440_v35  ;;  %v6054_v37 = vcombine.high %v197_v26, %v201_v28 }
  0xb7   :  { %v568_v38 = vld [vmem:[#allocation5 + $0xd20] sm:$0xff]  ;;  %3006 = vmatpush1.bf16.msra.mxu1 %v6427_v41  ;;  %v6053_v41 = vcombine.low %v197_v26, %v201_v28  ;;  %v6006_v26 = vcombine.high %v149_v15, %v153_v18  ;;  %v337_v28 = vld [vmem:[#allocation5 + $0x5e8] sm:$0xff] }
  0xb8   :  { %v428_v43 = vld [vmem:[#allocation5 + $0x8c0] sm:$0xff]  ;;  %v6420_v46 = vcombine.high %v564_v36, %v568_v38  ;;  %2966 = vmatprep.subr.bf16.mxu0 %v6292_v42  ;;  %v6419_v49 = vcombine.low %v564_v36, %v568_v38  ;;  %v189_v36 = vld [vmem:[#allocation5 + $0x148] sm:$0xff] }
  0xb9   :  { %v432_v44 = vld [vmem:[#allocation5 + $0x8e0] sm:$0xff]  ;;  %2967 = vmatpush1.bf16.msra.mxu0 %v6291_v48  ;;  %v193_v38 = vld [vmem:[#allocation5 + $0x168] sm:$0xff] }
  0xba   :  { %v556_v45 = vld [vmem:[#allocation5 + $0xcc0] sm:$0xff]  ;;  %v6284_v50 = vcombine.high %v428_v43, %v432_v44  ;;  %3007 = vmatprep.subr.bf16.mxu1 %v6420_v46  ;;  %v6283_v56 = vcombine.low %v428_v43, %v432_v44  ;;  %v6046_v46 = vcombine.high %v189_v36, %v193_v38 }
  0xbb   :  { %v560_v47 = vld [vmem:[#allocation5 + $0xce0] sm:$0xff]  ;;  %3008 = vmatpush1.bf16.msra.mxu1 %v6419_v49  ;;  %v6045_v49 = vcombine.low %v189_v36, %v193_v38  ;;  %v325_v36 = vld [vmem:[#allocation5 + $0x588] sm:$0xff] }
  0xbc   :  { %v420_v51 = vld [vmem:[#allocation5 + $0x880] sm:$0xff]  ;;  %v6412_v54 = vcombine.high %v556_v45, %v560_v47  ;;  %2968 = vmatprep.subr.bf16.mxu0 %v6284_v50  ;;  %v6411_v57 = vcombine.low %v556_v45, %v560_v47  ;;  %v181_v45 = vld [vmem:[#allocation5 + $0x108] sm:$0xff] }
  0xbd   :  { %v424_v52 = vld [vmem:[#allocation5 + $0x8a0] sm:$0xff]  ;;  %2969 = vmatpush1.bf16.msra.mxu0 %v6283_v56  ;;  %v185_v47 = vld [vmem:[#allocation5 + $0x128] sm:$0xff] }
  0xbe   :  { %v548_v53 = vld [vmem:[#allocation5 + $0xc80] sm:$0xff]  ;;  %v6276_v58 = vcombine.high %v420_v51, %v424_v52  ;;  %3009 = vmatprep.subr.bf16.mxu1 %v6412_v54  ;;  %v6275_v2 = vcombine.low %v420_v51, %v424_v52  ;;  %v6038_v54 = vcombine.high %v181_v45, %v185_v47  ;;  %v329_v38 = vld [vmem:[#allocation5 + $0x5a8] sm:$0xff] }
  0xbf   :  { %v552_v55 = vld [vmem:[#allocation5 + $0xca0] sm:$0xff]  ;;  %3010 = vmatpush1.bf16.msra.mxu1 %v6411_v57  ;;  %v6037_v57 = vcombine.low %v181_v45, %v185_v47  ;;  %v257_v45 = vld [vmem:[#allocation5 + $0x368] sm:$0xff] }
  0xc0   :  { %v412_v61 = vld [vmem:[#allocation5 + $0x840] sm:$0xff]  ;;  %v6404_v0 = vcombine.high %v548_v53, %v552_v55  ;;  %2970 = vmatprep.subr.bf16.mxu0 %v6276_v58  ;;  %v6403_v3 = vcombine.low %v548_v53, %v552_v55  ;;  %v173_v53 = vld [vmem:[#allocation5 + $0xc8] sm:$0xff] }
  0xc1   :  { %v416_v62 = vld [vmem:[#allocation5 + $0x860] sm:$0xff]  ;;  %2971 = vmatpush1.bf16.msra.mxu0 %v6275_v2  ;;  %v177_v55 = vld [vmem:[#allocation5 + $0xe8] sm:$0xff] }
  0xc2   :  { %v540_v63 = vld [vmem:[#allocation5 + $0xc40] sm:$0xff]  ;;  %v6268_v4 = vcombine.high %v412_v61, %v416_v62  ;;  %3011 = vmatprep.subr.bf16.mxu1 %v6404_v0  ;;  %v6267_v10 = vcombine.low %v412_v61, %v416_v62  ;;  %v6030_v0 = vcombine.high %v173_v53, %v177_v55  ;;  %v317_v47 = vld [vmem:[#allocation5 + $0x548] sm:$0xff] }
  0xc3   :  { %v544_v1 = vld [vmem:[#allocation5 + $0xc60] sm:$0xff]  ;;  %3012 = vmatpush1.bf16.msra.mxu1 %v6403_v3  ;;  %v6029_v3 = vcombine.low %v173_v53, %v177_v55  ;;  %v249_v53 = vld [vmem:[#allocation5 + $0x328] sm:$0xff] }
  0xc4   :  { %v404_v5 = vld [vmem:[#allocation5 + $0x800] sm:$0xff]  ;;  %v6396_v8 = vcombine.high %v540_v63, %v544_v1  ;;  %2972 = vmatprep.subr.bf16.mxu0 %v6268_v4  ;;  %v6395_v11 = vcombine.low %v540_v63, %v544_v1  ;;  %v165_v63 = vld [vmem:[#allocation5 + $0x88] sm:$0xff] }
  0xc5   :  { %v408_v6 = vld [vmem:[#allocation5 + $0x820] sm:$0xff]  ;;  %2973 = vmatpush1.bf16.msra.mxu0 %v6267_v10  ;;  %v169_v1 = vld [vmem:[#allocation5 + $0xa8] sm:$0xff] }
  0xc6   :  { %v532_v7 = vld [vmem:[#allocation5 + $0xc00] sm:$0xff]  ;;  %v6260_v12 = vcombine.high %v404_v5, %v408_v6  ;;  %3013 = vmatprep.subr.bf16.mxu1 %v6396_v8  ;;  %v6259_v21 = vcombine.low %v404_v5, %v408_v6  ;;  %v6022_v8 = vcombine.high %v165_v63, %v169_v1 }
  0xc7   :  { %v536_v9 = vld [vmem:[#allocation5 + $0xc20] sm:$0xff]  ;;  %3014 = vmatpush1.bf16.msra.mxu1 %v6395_v11  ;;  %v6021_v11 = vcombine.low %v165_v63, %v169_v1  ;;  %v241_v63 = vld [vmem:[#allocation5 + $0x2e8] sm:$0xff] }
  0xc8   :  { %v524_v13 = vld [vmem:[#allocation5 + $0xbc0] sm:$0xff]  ;;  %v6388_v16 = vcombine.high %v532_v7, %v536_v9  ;;  %2974 = vmatprep.subr.bf16.mxu0 %v6260_v12  ;;  %v6387_v22 = vcombine.low %v532_v7, %v536_v9  ;;  %v157_v7 = vld [vmem:[#allocation5 + $0x48] sm:$0xff] }
  0xc9   :  { %v528_v14 = vld [vmem:[#allocation5 + $0xbe0] sm:$0xff]  ;;  %2975 = vmatpush1.bf16.msra.mxu0 %v6259_v21  ;;  %v161_v9 = vld [vmem:[#allocation5 + $0x68] sm:$0xff] }
  0xca   :  { %v6380_v23 = vcombine.high %v524_v13, %v528_v14  ;;  %v516_v24 = vld [vmem:[#allocation5 + $0xb80] sm:$0xff]  ;;  %3015 = vmatprep.subr.bf16.mxu1 %v6388_v16  ;;  %v6379_v29 = vcombine.low %v524_v13, %v528_v14  ;;  %v6014_v16 = vcombine.high %v157_v7, %v161_v9  ;;  %v6013_v21 = vcombine.low %v157_v7, %v161_v9  ;;  %v233_v7 = vld [vmem:[#allocation5 + $0x2a8] sm:$0xff] }
  0xcb   :  { %v520_v25 = vld [vmem:[#allocation5 + $0xba0] sm:$0xff]  ;;  %3016 = vmatpush1.bf16.msra.mxu1 %v6387_v22 }
  0xcc   :  { %2976 = vmatprep.subr.bf16.mxu0 %v6380_v23  ;;  %v6372_v33 = vcombine.high %v516_v24, %v520_v25  ;;  %v508_v34 = vld [vmem:[#allocation5 + $0xb40] sm:$0xff]  ;;  %3042 = vmatprep.subr.bf16.mxu1 %v6062_v27  ;;  %v6371_v40 = vcombine.low %v516_v24, %v520_v25  ;;  %v269_v23 = vld [vmem:[#allocation5 + $0x3c8] sm:$0xff] }
  0xcd   :  { %v512_v35 = vld [vmem:[#allocation5 + $0xb60] sm:$0xff]  ;;  %2977 = vmatpush2.bf16.msra.mxu0 %v6379_v29  ;;  %v273_v24 = vld [vmem:[#allocation5 + $0x3e8] sm:$0xff] }
  0xce   :  { %3034 = vmatmul.mubr.bf16.vlgmr.msra.gmra.mxu1 %v7551_v31  ;;  %2978 = vmatprep.subr.bf16.mxu0 %v6372_v33  ;;  %v6364_v42 = vcombine.high %v508_v34, %v512_v35  ;;  %v500_v43 = vld [vmem:[#allocation5 + $0xb00] sm:$0xff]  ;;  %v6363_v48 = vcombine.low %v508_v34, %v512_v35  ;;  %v333_v25 = vld [vmem:[#allocation5 + $0x5c8] sm:$0xff] }
  0xcf   :  { %3043 = vmatpush1.bf16.msra.mxu1 %v6061_v32  ;;  %v504_v44 = vld [vmem:[#allocation5 + $0xb20] sm:$0xff]  ;;  %3074 = vmatprep.mubr.bf16.mxu1 %v7535_v59  ;;  %v138_v27 = vld [vmem:[#allocation3 + $0x20] sm:$0xff]  ;;  %v6005_v32 = vcombine.low %v149_v15, %v153_v18  ;;  %v6190_v33 = vcombine.high %v333_v25, %v337_v28 }
  0xd0   :  { %3044 = vmatprep.subr.bf16.mxu1 %v6054_v37  ;;  %v6356_v50 = vcombine.high %v500_v43, %v504_v44  ;;  %v492_v51 = vld [vmem:[#allocation5 + $0xac0] sm:$0xff]  ;;  %v6355_v56 = vcombine.low %v500_v43, %v504_v44  ;;  %v261_v34 = vld [vmem:[#allocation5 + $0x388] sm:$0xff]  ;;  %v6126_v37 = vcombine.high %v269_v23, %v273_v24  ;;  %v6182_v43 = vcombine.high %v325_v36, %v329_v38 }
  0xd1   :  { %2979 = vmatpush2.bf16.msra.mxu0 %v6371_v40  ;;  %v496_v52 = vld [vmem:[#allocation5 + $0xae0] sm:$0xff]  ;;  %v265_v35 = vld [vmem:[#allocation5 + $0x3a8] sm:$0xff]  ;;  %v7555_v40 = vpack.c.bf16 %v138_v27, %v138_v27 }
  0xd2   :  { %2980 = vmatprep.subr.bf16.mxu0 %v6364_v42  ;;  %v6348_v58 = vcombine.high %v492_v51, %v496_v52  ;;  %v484_v61 = vld [vmem:[#allocation5 + $0xa80] sm:$0xff]  ;;  %v6347_v2 = vcombine.low %v492_v51, %v496_v52  ;;  %v6125_v42 = vcombine.low %v269_v23, %v273_v24  ;;  %v253_v44 = vld [vmem:[#allocation5 + $0x348] sm:$0xff] }
  0xd3   :  { %3045 = vmatpush1.bf16.msra.mxu1 %v6053_v41  ;;  %v488_v62 = vld [vmem:[#allocation5 + $0xaa0] sm:$0xff]  ;;  %v6189_v41 = vcombine.low %v333_v25, %v337_v28  ;;  %v245_v52 = vld [vmem:[#allocation5 + $0x308] sm:$0xff]  ;;  %v6110_v55 = vcombine.high %v253_v44, %v257_v45 }
  0xd4   :  { %3046 = vmatprep.subr.bf16.mxu1 %v6046_v46  ;;  %v6340_v4 = vcombine.high %v484_v61, %v488_v62  ;;  %v476_v5 = vld [vmem:[#allocation5 + $0xa40] sm:$0xff]  ;;  %v6339_v10 = vcombine.low %v484_v61, %v488_v62  ;;  %v6118_v46 = vcombine.high %v261_v34, %v265_v35  ;;  %v237_v62 = vld [vmem:[#allocation5 + $0x2c8] sm:$0xff]  ;;  %v6102_v1 = vcombine.high %v245_v52, %v249_v53 }
  0xd5   :  { %2981 = vmatpush2.bf16.msra.mxu0 %v6363_v48  ;;  %v480_v6 = vld [vmem:[#allocation5 + $0xa60] sm:$0xff]  ;;  %v321_v48 = vld [vmem:[#allocation5 + $0x568] sm:$0xff]  ;;  %v6094_v9 = vcombine.high %v237_v62, %v241_v63 }
  0xd6   :  { %2982 = vmatprep.subr.bf16.mxu0 %v6356_v50  ;;  %v6332_v12 = vcombine.high %v476_v5, %v480_v6  ;;  %v468_v13 = vld [vmem:[#allocation5 + $0xa00] sm:$0xff]  ;;  %v6331_v19 = vcombine.low %v476_v5, %v480_v6  ;;  %v6117_v50 = vcombine.low %v261_v34, %v265_v35  ;;  %v6174_v51 = vcombine.high %v317_v47, %v321_v48  ;;  %v229_v6 = vld [vmem:[#allocation5 + $0x288] sm:$0xff] }
  0xd7   :  { %3047 = vmatpush1.bf16.msra.mxu1 %v6045_v49  ;;  %v472_v14 = vld [vmem:[#allocation5 + $0xa20] sm:$0xff]  ;;  %v6181_v49 = vcombine.low %v325_v36, %v329_v38  ;;  %v225_v15 = vld [vmem:[#allocation5 + $0x268] sm:$0xff]  ;;  %v6086_v18 = vcombine.high %v229_v6, %v233_v7 }
  0xd8   :  { %3048 = vmatprep.subr.bf16.mxu1 %v6038_v54  ;;  %v6324_v22 = vcombine.high %v468_v13, %v472_v14  ;;  %v6323_v29 = vcombine.low %v468_v13, %v472_v14  ;;  %v309_v54 = vld [vmem:[#allocation5 + $0x508] sm:$0xff] }
  0xd9   :  { %2983 = vmatpush2.bf16.msra.mxu0 %v6355_v56  ;;  %v313_v56 = vld [vmem:[#allocation5 + $0x528] sm:$0xff] }
  0xda   :  { %2984 = vmatprep.subr.bf16.mxu0 %v6348_v58  ;;  %v6109_v58 = vcombine.low %v253_v44, %v257_v45  ;;  %v6166_v61 = vcombine.high %v309_v54, %v313_v56  ;;  %v221_v14 = vld [vmem:[#allocation5 + $0x248] sm:$0xff] }
  0xdb   :  { %3049 = vmatpush1.bf16.msra.mxu1 %v6037_v57  ;;  %v6173_v57 = vcombine.low %v317_v47, %v321_v48  ;;  %v213_v24 = vld [vmem:[#allocation5 + $0x208] sm:$0xff]  ;;  %v6078_v27 = vcombine.high %v221_v14, %v225_v15 }
  0xdc   :  { %3050 = vmatprep.subr.bf16.mxu1 %v6030_v0  ;;  %v301_v0 = vld [vmem:[#allocation5 + $0x4c8] sm:$0xff] }
  0xdd   :  { %2985 = vmatpush2.bf16.msra.mxu0 %v6347_v2  ;;  %v305_v2 = vld [vmem:[#allocation5 + $0x4e8] sm:$0xff] }
  0xde   :  { %2986 = vmatprep.subr.bf16.mxu0 %v6340_v4  ;;  %v6101_v4 = vcombine.low %v245_v52, %v249_v53  ;;  %v6158_v5 = vcombine.high %v301_v0, %v305_v2  ;;  %v217_v25 = vld [vmem:[#allocation5 + $0x228] sm:$0xff] }
  0xdf   :  { %3051 = vmatpush1.bf16.msra.mxu1 %v6029_v3  ;;  %v6165_v3 = vcombine.low %v309_v54, %v313_v56  ;;  %v281_v28 = vld [vmem:[#allocation5 + $0x428] sm:$0xff] }
  0xe0   :  { %3052 = vmatprep.subr.bf16.mxu1 %v6022_v8  ;;  %v293_v8 = vld [vmem:[#allocation5 + $0x488] sm:$0xff] }
  0xe1   :  { %2987 = vmatpush2.bf16.msra.mxu0 %v6339_v10  ;;  %v297_v10 = vld [vmem:[#allocation5 + $0x4a8] sm:$0xff] }
  0xe2   :  { %2988 = vmatprep.subr.bf16.mxu0 %v6332_v12  ;;  %v6093_v12 = vcombine.low %v237_v62, %v241_v63  ;;  %v6150_v13 = vcombine.high %v293_v8, %v297_v10  ;;  %v397_v34 = vld [vmem:[#allocation5 + $0x7c8] sm:$0xff] }
  0xe3   :  { %3053 = vmatpush1.bf16.msra.mxu1 %v6021_v11  ;;  %v6157_v11 = vcombine.low %v301_v0, %v305_v2  ;;  %v401_v35 = vld [vmem:[#allocation5 + $0x7e8] sm:$0xff] }
  0xe4   :  { %3054 = vmatprep.subr.bf16.mxu1 %v6014_v16  ;;  %v285_v16 = vld [vmem:[#allocation5 + $0x448] sm:$0xff] }
  0xe5   :  { %2989 = vmatpush2.bf16.msra.mxu0 %v6331_v19  ;;  %v289_v19 = vld [vmem:[#allocation5 + $0x468] sm:$0xff] }
  0xe6   :  { %2990 = vmatprep.subr.bf16.mxu0 %v6324_v22  ;;  %v6085_v22 = vcombine.low %v229_v6, %v233_v7  ;;  %v6142_v23 = vcombine.high %v285_v16, %v289_v19  ;;  %v461_v36 = vld [vmem:[#allocation5 + $0x9c8] sm:$0xff] }
  0xe7   :  { %3055 = vmatpush1.bf16.msra.mxu1 %v6013_v21  ;;  %v6149_v21 = vcombine.low %v293_v8, %v297_v10  ;;  %v465_v38 = vld [vmem:[#allocation5 + $0x9e8] sm:$0xff] }
  0xe8   :  { %3056 = vmatprep.subr.bf16.mxu1 %v6006_v26  ;;  %v277_v26 = vld [vmem:[#allocation5 + $0x408] sm:$0xff]  ;;  %v6318_v47 = vcombine.high %v461_v36, %v465_v38 }
  0xe9   :  { %2991 = vmatpush2.bf16.msra.mxu0 %v6323_v29  ;;  %v6141_v29 = vcombine.low %v285_v16, %v289_v19  ;;  %v389_v44 = vld [vmem:[#allocation5 + $0x788] sm:$0xff] }
  0xea   :  { %3083 = vmatprep.subr.bf16.mxu0 %v6190_v33  ;;  %v6134_v33 = vcombine.high %v277_v26, %v281_v28  ;;  %v393_v45 = vld [vmem:[#allocation5 + $0x7a8] sm:$0xff] }
  0xeb   :  { %3057 = vmatpush1.bf16.msra.mxu1 %v6005_v32  ;;  %v6077_v32 = vcombine.low %v221_v14, %v225_v15  ;;  %v457_v48 = vld [vmem:[#allocation5 + $0x9a8] sm:$0xff] }
  0xec   :  { %3058 = vmatprep.subr.bf16.mxu1 %v6126_v37  ;;  %2993 = vmatmul.mubr.bf16.vlgmr.msra.gmra.mxu0 %v7555_v40  ;;  %v6070_v37 = vcombine.high %v213_v24, %v217_v25  ;;  %v381_v52 = vld [vmem:[#allocation5 + $0x748] sm:$0xff] }
  0xed   :  { %3084 = vmatpush1.bf16.msra.mxu0 %v6189_v41  ;;  %3115 = vmatprep.mubr.bf16.mxu0 %v7537_v60  ;;  %v6133_v41 = vcombine.low %v277_v26, %v281_v28  ;;  %v385_v53 = vld [vmem:[#allocation5 + $0x768] sm:$0xff] }
  0xee   :  { %3085 = vmatprep.subr.bf16.mxu0 %v6182_v43  ;;  %v6254_v43 = vcombine.high %v397_v34, %v401_v35  ;;  %v445_v54 = vld [vmem:[#allocation5 + $0x948] sm:$0xff] }
  0xef   :  { %3059 = vmatpush2.bf16.msra.mxu1 %v6125_v42  ;;  %v6069_v42 = vcombine.low %v213_v24, %v217_v25  ;;  %v449_v56 = vld [vmem:[#allocation5 + $0x968] sm:$0xff] }
  0xf0   :  { %3060 = vmatprep.subr.bf16.mxu1 %v6118_v46  ;;  %v453_v46 = vld [vmem:[#allocation5 + $0x988] sm:$0xff] }
  0xf1   :  { %3086 = vmatpush1.bf16.msra.mxu0 %v6181_v49  ;;  %v6253_v49 = vcombine.low %v397_v34, %v401_v35  ;;  %v373_v62 = vld [vmem:[#allocation5 + $0x708] sm:$0xff] }
  0xf2   :  { %3087 = vmatprep.subr.bf16.mxu0 %v6174_v51  ;;  %v6246_v51 = vcombine.high %v389_v44, %v393_v45  ;;  %v377_v63 = vld [vmem:[#allocation5 + $0x728] sm:$0xff] }
  0xf3   :  { %3061 = vmatpush2.bf16.msra.mxu1 %v6117_v50  ;;  %v6317_v50 = vcombine.low %v461_v36, %v465_v38  ;;  %v437_v0 = vld [vmem:[#allocation5 + $0x908] sm:$0xff] }
  0xf4   :  { %3062 = vmatprep.subr.bf16.mxu1 %v6110_v55  ;;  %v6310_v55 = vcombine.high %v453_v46, %v457_v48  ;;  %v441_v2 = vld [vmem:[#allocation5 + $0x928] sm:$0xff] }
  0xf5   :  { %3088 = vmatpush1.bf16.msra.mxu0 %v6173_v57  ;;  %v6245_v57 = vcombine.low %v389_v44, %v393_v45  ;;  %v365_v6 = vld [vmem:[#allocation5 + $0x6c8] sm:$0xff] }
  0xf6   :  { %3089 = vmatprep.subr.bf16.mxu0 %v6166_v61  ;;  %v6238_v61 = vcombine.high %v381_v52, %v385_v53  ;;  %v369_v7 = vld [vmem:[#allocation5 + $0x6e8] sm:$0xff] }
  0xf7   :  { %3063 = vmatpush2.bf16.msra.mxu1 %v6109_v58  ;;  %v6309_v58 = vcombine.low %v453_v46, %v457_v48  ;;  %v429_v8 = vld [vmem:[#allocation5 + $0x8c8] sm:$0xff] }
  0xf8   :  { %3064 = vmatprep.subr.bf16.mxu1 %v6102_v1  ;;  %v6302_v1 = vcombine.high %v445_v54, %v449_v56  ;;  %v433_v10 = vld [vmem:[#allocation5 + $0x8e8] sm:$0xff] }
  0xf9   :  { %3090 = vmatpush1.bf16.msra.mxu0 %v6165_v3  ;;  %v6237_v3 = vcombine.low %v381_v52, %v385_v53  ;;  %v357_v14 = vld [vmem:[#allocation5 + $0x688] sm:$0xff] }
  0xfa   :  { %3091 = vmatprep.subr.bf16.mxu0 %v6158_v5  ;;  %v6230_v5 = vcombine.high %v373_v62, %v377_v63  ;;  %v361_v15 = vld [vmem:[#allocation5 + $0x6a8] sm:$0xff] }
  0xfb   :  { %3065 = vmatpush2.bf16.msra.mxu1 %v6101_v4  ;;  %v6301_v4 = vcombine.low %v445_v54, %v449_v56  ;;  %v421_v16 = vld [vmem:[#allocation5 + $0x888] sm:$0xff] }
  0xfc   :  { %3066 = vmatprep.subr.bf16.mxu1 %v6094_v9  ;;  %v6294_v9 = vcombine.high %v437_v0, %v441_v2  ;;  %v425_v19 = vld [vmem:[#allocation5 + $0x8a8] sm:$0xff] }
  0xfd   :  { %3092 = vmatpush1.bf16.msra.mxu0 %v6157_v11  ;;  %v6229_v11 = vcombine.low %v373_v62, %v377_v63  ;;  %v349_v24 = vld [vmem:[#allocation5 + $0x648] sm:$0xff] }
  0xfe   :  { %3093 = vmatprep.subr.bf16.mxu0 %v6150_v13  ;;  %v6222_v13 = vcombine.high %v365_v6, %v369_v7  ;;  %v353_v25 = vld [vmem:[#allocation5 + $0x668] sm:$0xff] }
  0xff   :  { %3067 = vmatpush2.bf16.msra.mxu1 %v6093_v12  ;;  %v6293_v12 = vcombine.low %v437_v0, %v441_v2  ;;  %v413_v26 = vld [vmem:[#allocation5 + $0x848] sm:$0xff] }
 0x100   :  { %3068 = vmatprep.subr.bf16.mxu1 %v6086_v18  ;;  %v6286_v18 = vcombine.high %v429_v8, %v433_v10  ;;  %v417_v28 = vld [vmem:[#allocation5 + $0x868] sm:$0xff] }
 0x101   :  { %3094 = vmatpush1.bf16.msra.mxu0 %v6149_v21  ;;  %v6221_v21 = vcombine.low %v365_v6, %v369_v7  ;;  %v341_v34 = vld [vmem:[#allocation5 + $0x608] sm:$0xff] }
 0x102   :  { %3095 = vmatprep.subr.bf16.mxu0 %v6142_v23  ;;  %v6214_v23 = vcombine.high %v357_v14, %v361_v15  ;;  %v345_v35 = vld [vmem:[#allocation5 + $0x628] sm:$0xff] }
 0x103   :  { %3069 = vmatpush2.bf16.msra.mxu1 %v6085_v22  ;;  %v6285_v22 = vcombine.low %v429_v8, %v433_v10  ;;  %v405_v36 = vld [vmem:[#allocation5 + $0x808] sm:$0xff] }
 0x104   :  { %3070 = vmatprep.subr.bf16.mxu1 %v6078_v27  ;;  %v6278_v27 = vcombine.high %v421_v16, %v425_v19  ;;  %v409_v38 = vld [vmem:[#allocation5 + $0x828] sm:$0xff] }
 0x105   :  { %3096 = vmatpush1.bf16.msra.mxu0 %v6141_v29  ;;  %v6213_v29 = vcombine.low %v357_v14, %v361_v15  ;;  %v525_v44 = vld [vmem:[#allocation5 + $0xbc8] sm:$0xff] }
 0x106   :  { %3097 = vmatprep.subr.bf16.mxu0 %v6134_v33  ;;  %v6206_v33 = vcombine.high %v349_v24, %v353_v25  ;;  %v529_v45 = vld [vmem:[#allocation5 + $0xbe8] sm:$0xff] }
 0x107   :  { %3071 = vmatpush2.bf16.msra.mxu1 %v6077_v32  ;;  %v6277_v32 = vcombine.low %v421_v16, %v425_v19  ;;  %v589_v46 = vld [vmem:[#allocation5 + $0xdc8] sm:$0xff] }
 0x108   :  { %3072 = vmatprep.subr.bf16.mxu1 %v6070_v37  ;;  %v6270_v37 = vcombine.high %v413_v26, %v417_v28  ;;  %v593_v48 = vld [vmem:[#allocation5 + $0xde8] sm:$0xff] }
 0x109   :  { %3098 = vmatpush1.bf16.msra.mxu0 %v6133_v41  ;;  %v6205_v41 = vcombine.low %v349_v24, %v353_v25  ;;  %v517_v52 = vld [vmem:[#allocation5 + $0xb88] sm:$0xff] }
 0x10a   :  { %3099 = vmatprep.subr.bf16.mxu0 %v6254_v43  ;;  %v6198_v43 = vcombine.high %v341_v34, %v345_v35  ;;  %v521_v53 = vld [vmem:[#allocation5 + $0xba8] sm:$0xff] }
 0x10b   :  { %3073 = vmatpush2.bf16.msra.mxu1 %v6069_v42  ;;  %v6269_v42 = vcombine.low %v413_v26, %v417_v28  ;;  %v581_v54 = vld [vmem:[#allocation5 + $0xd88] sm:$0xff] }
 0x10c   :  { %3124 = vmatprep.subr.bf16.mxu1 %v6318_v47  ;;  %v6262_v47 = vcombine.high %v405_v36, %v409_v38  ;;  %v585_v56 = vld [vmem:[#allocation5 + $0xda8] sm:$0xff] }
 0x10d   :  { %3100 = vmatpush2.bf16.msra.mxu0 %v6253_v49  ;;  %v6197_v49 = vcombine.low %v341_v34, %v345_v35  ;;  %v509_v62 = vld [vmem:[#allocation5 + $0xb48] sm:$0xff] }
 0x10e   :  { %3075 = vmatmul.mubr.bf16.vlgmr.msra.gmra.mxu1 %v7541_v17  ;;  %3101 = vmatprep.subr.bf16.mxu0 %v6246_v51  ;;  %v6446_v51 = vcombine.high %v589_v46, %v593_v48  ;;  %v513_v63 = vld [vmem:[#allocation5 + $0xb68] sm:$0xff] }
 0x10f   :  { %3125 = vmatpush1.bf16.msra.mxu1 %v6317_v50  ;;  %3156 = vmatprep.mubr.bf16.mxu1 %v7546_v30  ;;  %v6261_v50 = vcombine.low %v405_v36, %v409_v38  ;;  %v573_v0 = vld [vmem:[#allocation5 + $0xd48] sm:$0xff] }
 0x110   :  { %3126 = vmatprep.subr.bf16.mxu1 %v6310_v55  ;;  %v6382_v55 = vcombine.high %v525_v44, %v529_v45  ;;  %v577_v2 = vld [vmem:[#allocation5 + $0xd68] sm:$0xff] }
 0x111   :  { %3102 = vmatpush2.bf16.msra.mxu0 %v6245_v57  ;;  %v6445_v57 = vcombine.low %v589_v46, %v593_v48  ;;  %v501_v6 = vld [vmem:[#allocation5 + $0xb08] sm:$0xff] }
 0x112   :  { %3103 = vmatprep.subr.bf16.mxu0 %v6238_v61  ;;  %v6438_v61 = vcombine.high %v581_v54, %v585_v56  ;;  %v505_v7 = vld [vmem:[#allocation5 + $0xb28] sm:$0xff] }
 0x113   :  { %3127 = vmatpush1.bf16.msra.mxu1 %v6309_v58  ;;  %v6381_v58 = vcombine.low %v525_v44, %v529_v45  ;;  %v565_v8 = vld [vmem:[#allocation5 + $0xd08] sm:$0xff] }
 0x114   :  { %3128 = vmatprep.subr.bf16.mxu1 %v6302_v1  ;;  %v6374_v1 = vcombine.high %v517_v52, %v521_v53  ;;  %v569_v10 = vld [vmem:[#allocation5 + $0xd28] sm:$0xff] }
 0x115   :  { %3104 = vmatpush2.bf16.msra.mxu0 %v6237_v3  ;;  %v6437_v3 = vcombine.low %v581_v54, %v585_v56  ;;  %v493_v14 = vld [vmem:[#allocation5 + $0xac8] sm:$0xff]  ;;  %v334_v54 = vld [vmem:[#allocation5 + $0x5d0] sm:$0xff] }
 0x116   :  { %3105 = vmatprep.subr.bf16.mxu0 %v6230_v5  ;;  %v6430_v5 = vcombine.high %v573_v0, %v577_v2  ;;  %v497_v15 = vld [vmem:[#allocation5 + $0xae8] sm:$0xff]  ;;  %v338_v56 = vld [vmem:[#allocation5 + $0x5f0] sm:$0xff] }
 0x117   :  { %3129 = vmatpush1.bf16.msra.mxu1 %v6301_v4  ;;  %v6373_v4 = vcombine.low %v517_v52, %v521_v53  ;;  %v557_v16 = vld [vmem:[#allocation5 + $0xcc8] sm:$0xff]  ;;  %v206_v52 = vld [vmem:[#allocation5 + $0x1d0] sm:$0xff] }
 0x118   :  { %3130 = vmatprep.subr.bf16.mxu1 %v6294_v9  ;;  %v6366_v9 = vcombine.high %v509_v62, %v513_v63  ;;  %v561_v19 = vld [vmem:[#allocation5 + $0xce8] sm:$0xff]  ;;  %v210_v53 = vld [vmem:[#allocation5 + $0x1f0] sm:$0xff] }
 0x119   :  { %3106 = vmatpush2.bf16.msra.mxu0 %v6229_v11  ;;  %v6429_v11 = vcombine.low %v573_v0, %v577_v2  ;;  %v485_v24 = vld [vmem:[#allocation5 + $0xa88] sm:$0xff]  ;;  %v326_v0 = vld [vmem:[#allocation5 + $0x590] sm:$0xff] }
 0x11a   :  { %3107 = vmatprep.subr.bf16.mxu0 %v6222_v13  ;;  %v6422_v13 = vcombine.high %v565_v8, %v569_v10  ;;  %v489_v25 = vld [vmem:[#allocation5 + $0xaa8] sm:$0xff]  ;;  %v330_v2 = vld [vmem:[#allocation5 + $0x5b0] sm:$0xff] }
 0x11b   :  { %3131 = vmatpush1.bf16.msra.mxu1 %v6293_v12  ;;  %v6365_v12 = vcombine.low %v509_v62, %v513_v63  ;;  %v549_v26 = vld [vmem:[#allocation5 + $0xc88] sm:$0xff]  ;;  %v198_v62 = vld [vmem:[#allocation5 + $0x190] sm:$0xff] }
 0x11c   :  { %3132 = vmatprep.subr.bf16.mxu1 %v6286_v18  ;;  %v6358_v18 = vcombine.high %v501_v6, %v505_v7  ;;  %v553_v28 = vld [vmem:[#allocation5 + $0xca8] sm:$0xff]  ;;  %v202_v63 = vld [vmem:[#allocation5 + $0x1b0] sm:$0xff] }
 0x11d   :  { %3108 = vmatpush2.bf16.msra.mxu0 %v6221_v21  ;;  %v6421_v21 = vcombine.low %v565_v8, %v569_v10  ;;  %v477_v34 = vld [vmem:[#allocation5 + $0xa48] sm:$0xff]  ;;  %v318_v8 = vld [vmem:[#allocation5 + $0x550] sm:$0xff] }
 0x11e   :  { %3109 = vmatprep.subr.bf16.mxu0 %v6214_v23  ;;  %v6414_v23 = vcombine.high %v557_v16, %v561_v19  ;;  %v481_v35 = vld [vmem:[#allocation5 + $0xa68] sm:$0xff]  ;;  %v322_v10 = vld [vmem:[#allocation5 + $0x570] sm:$0xff] }
 0x11f   :  { %3133 = vmatpush1.bf16.msra.mxu1 %v6285_v22  ;;  %v6357_v22 = vcombine.low %v501_v6, %v505_v7  ;;  %v541_v36 = vld [vmem:[#allocation5 + $0xc48] sm:$0xff]  ;;  %v190_v6 = vld [vmem:[#allocation5 + $0x150] sm:$0xff] }
 0x120   :  { %3134 = vmatprep.subr.bf16.mxu1 %v6278_v27  ;;  %v6350_v27 = vcombine.high %v493_v14, %v497_v15  ;;  %v545_v38 = vld [vmem:[#allocation5 + $0xc68] sm:$0xff]  ;;  %v194_v7 = vld [vmem:[#allocation5 + $0x170] sm:$0xff] }
 0x121   :  { %3110 = vmatpush2.bf16.msra.mxu0 %v6213_v29  ;;  %v6413_v29 = vcombine.low %v557_v16, %v561_v19  ;;  %v469_v44 = vld [vmem:[#allocation5 + $0xa08] sm:$0xff]  ;;  %v186_v16 = vld [vmem:[#allocation5 + $0x130] sm:$0xff] }
 0x122   :  { %3111 = vmatprep.subr.bf16.mxu0 %v6206_v33  ;;  %v6406_v33 = vcombine.high %v549_v26, %v553_v28  ;;  %v473_v45 = vld [vmem:[#allocation5 + $0xa28] sm:$0xff]  ;;  %v314_v19 = vld [vmem:[#allocation5 + $0x530] sm:$0xff] }
 0x123   :  { %3135 = vmatpush1.bf16.msra.mxu1 %v6277_v32  ;;  %v6349_v32 = vcombine.low %v493_v14, %v497_v15  ;;  %v533_v46 = vld [vmem:[#allocation5 + $0xc08] sm:$0xff]  ;;  %v6176_v14 = vcombine.high %v318_v8, %v322_v10  ;;  %v182_v15 = vld [vmem:[#allocation5 + $0x110] sm:$0xff] }
 0x124   :  { %3136 = vmatprep.subr.bf16.mxu1 %v6270_v37  ;;  %v6342_v37 = vcombine.high %v485_v24, %v489_v25  ;;  %v537_v48 = vld [vmem:[#allocation5 + $0xc28] sm:$0xff] }
 0x125   :  { %3112 = vmatpush2.bf16.msra.mxu0 %v6205_v41  ;;  %v6405_v41 = vcombine.low %v549_v26, %v553_v28  ;;  %v178_v26 = vld [vmem:[#allocation5 + $0xf0] sm:$0xff] }
 0x126   :  { %3113 = vmatprep.subr.bf16.mxu0 %v6198_v43  ;;  %v6398_v43 = vcombine.high %v541_v36, %v545_v38  ;;  %v306_v28 = vld [vmem:[#allocation5 + $0x4f0] sm:$0xff] }
 0x127   :  { %3137 = vmatpush1.bf16.msra.mxu1 %v6269_v42  ;;  %v6341_v42 = vcombine.low %v485_v24, %v489_v25  ;;  %v174_v25 = vld [vmem:[#allocation5 + $0xd0] sm:$0xff] }
 0x128   :  { %3138 = vmatprep.subr.bf16.mxu1 %v6262_v47  ;;  %v6334_v47 = vcombine.high %v477_v34, %v481_v35 }
 0x129   :  { %3114 = vmatpush2.bf16.msra.mxu0 %v6197_v49  ;;  %v6397_v49 = vcombine.low %v541_v36, %v545_v38  ;;  %v170_v36 = vld [vmem:[#allocation5 + $0xb0] sm:$0xff] }
 0x12a   :  { %3165 = vmatprep.subr.bf16.mxu0 %v6446_v51  ;;  %v6390_v51 = vcombine.high %v533_v46, %v537_v48  ;;  %v298_v38 = vld [vmem:[#allocation5 + $0x4b0] sm:$0xff] }
 0x12b   :  { %3139 = vmatpush1.bf16.msra.mxu1 %v6261_v50  ;;  %v6333_v50 = vcombine.low %v477_v34, %v481_v35  ;;  %v166_v35 = vld [vmem:[#allocation5 + $0x90] sm:$0xff] }
 0x12c   :  { %3140 = vmatprep.subr.bf16.mxu1 %v6382_v55  ;;  %3116 = vmatmul.mubr.bf16.vlgmr.msra.gmra.mxu0 %v7543_v20  ;;  %v6326_v55 = vcombine.high %v469_v44, %v473_v45 }
 0x12d   :  { %3166 = vmatpush1.bf16.msra.mxu0 %v6445_v57  ;;  %3197 = vmatprep.mubr.bf16.mxu0 %v7457_v39  ;;  %v6389_v57 = vcombine.low %v533_v46, %v537_v48  ;;  %v162_v46 = vld [vmem:[#allocation5 + $0x70] sm:$0xff] }
 0x12e   :  { %3167 = vmatprep.subr.bf16.mxu0 %v6438_v61  ;;  %v6064_v61 = vcombine.high %v206_v52, %v210_v53  ;;  %v290_v48 = vld [vmem:[#allocation5 + $0x470] sm:$0xff] }
 0x12f   :  { %3141 = vmatpush2.bf16.msra.mxu1 %v6381_v58  ;;  %v6325_v58 = vcombine.low %v469_v44, %v473_v45  ;;  %v158_v45 = vld [vmem:[#allocation5 + $0x50] sm:$0xff] }
 0x130   :  { %3142 = vmatprep.subr.bf16.mxu1 %v6374_v1  ;;  %v6192_v1 = vcombine.high %v334_v54, %v338_v56 }
 0x131   :  { %3168 = vmatpush1.bf16.msra.mxu0 %v6437_v3  ;;  %v6063_v3 = vcombine.low %v206_v52, %v210_v53  ;;  %v6016_v52 = vcombine.high %v158_v45, %v162_v46 }
 0x132   :  { %3169 = vmatprep.subr.bf16.mxu0 %v6430_v5  ;;  %v6056_v5 = vcombine.high %v198_v62, %v202_v63 }
 0x133   :  { %3143 = vmatpush2.bf16.msra.mxu1 %v6373_v4  ;;  %v6191_v4 = vcombine.low %v334_v54, %v338_v56  ;;  %v150_v54 = vld [vmem:[#allocation5 + $0x10] sm:$0xff] }
 0x134   :  { %3144 = vmatprep.subr.bf16.mxu1 %v6366_v9  ;;  %v6184_v9 = vcombine.high %v326_v0, %v330_v2  ;;  %v278_v56 = vld [vmem:[#allocation5 + $0x410] sm:$0xff] }
 0x135   :  { %3170 = vmatpush1.bf16.msra.mxu0 %v6429_v11  ;;  %v6055_v11 = vcombine.low %v198_v62, %v202_v63 }
 0x136   :  { %3171 = vmatprep.subr.bf16.mxu0 %v6422_v13  ;;  %v6048_v13 = vcombine.high %v190_v6, %v194_v7 }
 0x137   :  { %3145 = vmatpush2.bf16.msra.mxu1 %v6365_v12  ;;  %v6183_v12 = vcombine.low %v326_v0, %v330_v2  ;;  %v274_v2 = vld [vmem:[#allocation5 + $0x3f0] sm:$0xff] }
 0x138   :  { %3146 = vmatprep.subr.bf16.mxu1 %v6358_v18  ;;  %v310_v18 = vld [vmem:[#allocation5 + $0x510] sm:$0xff] }
 0x139   :  { %3172 = vmatpush1.bf16.msra.mxu0 %v6421_v21  ;;  %v6047_v21 = vcombine.low %v190_v6, %v194_v7  ;;  %v6168_v24 = vcombine.high %v310_v18, %v314_v19 }
 0x13a   :  { %3173 = vmatprep.subr.bf16.mxu0 %v6414_v23  ;;  %v6040_v23 = vcombine.high %v182_v15, %v186_v16 }
 0x13b   :  { %3147 = vmatpush2.bf16.msra.mxu1 %v6357_v22  ;;  %v6175_v22 = vcombine.low %v318_v8, %v322_v10  ;;  %v7572_v8 = vld [vmem:[#allocation7] sm:$0xff] }
 0x13c   :  { %3148 = vmatprep.subr.bf16.mxu1 %v6350_v27  ;;  %v302_v27 = vld [vmem:[#allocation5 + $0x4d0] sm:$0xff] }
 0x13d   :  { %3174 = vmatpush1.bf16.msra.mxu0 %v6413_v29  ;;  %v6039_v29 = vcombine.low %v182_v15, %v186_v16  ;;  %v6160_v34 = vcombine.high %v302_v27, %v306_v28  ;;  %v394_v15 = vld [vmem:[#allocation5 + $0x7b0] sm:$0xff] }
 0x13e   :  { %3175 = vmatprep.subr.bf16.mxu0 %v6406_v33  ;;  %v6032_v33 = vcombine.high %v174_v25, %v178_v26 }
 0x13f   :  { %3149 = vmatpush2.bf16.msra.mxu1 %v6349_v32  ;;  %v6167_v32 = vcombine.low %v310_v18, %v314_v19 }
 0x140   :  { %3150 = vmatprep.subr.bf16.mxu1 %v6342_v37  ;;  %v294_v37 = vld [vmem:[#allocation5 + $0x490] sm:$0xff] }
 0x141   :  { %3176 = vmatpush1.bf16.msra.mxu0 %v6405_v41  ;;  %v6031_v41 = vcombine.low %v174_v25, %v178_v26  ;;  %v6152_v44 = vcombine.high %v294_v37, %v298_v38  ;;  %v258_v25 = vld [vmem:[#allocation5 + $0x370] sm:$0xff] }
 0x142   :  { %3177 = vmatprep.subr.bf16.mxu0 %v6398_v43  ;;  %v6024_v43 = vcombine.high %v166_v35, %v170_v36 }
 0x143   :  { %3151 = vmatpush2.bf16.msra.mxu1 %v6341_v42  ;;  %v6159_v42 = vcombine.low %v302_v27, %v306_v28  ;;  %v382_v27 = vld [vmem:[#allocation5 + $0x750] sm:$0xff] }
 0x144   :  { %3152 = vmatprep.subr.bf16.mxu1 %v6334_v47  ;;  %v286_v47 = vld [vmem:[#allocation5 + $0x450] sm:$0xff] }
 0x145   :  { %3178 = vmatpush1.bf16.msra.mxu0 %v6397_v49  ;;  %v6023_v49 = vcombine.low %v166_v35, %v170_v36  ;;  %v6144_v53 = vcombine.high %v286_v47, %v290_v48  ;;  %v6143_v62 = vcombine.low %v286_v47, %v290_v48  ;;  %v386_v28 = vld [vmem:[#allocation5 + $0x770] sm:$0xff] }
 0x146   :  { %3179 = vmatprep.subr.bf16.mxu0 %v6390_v51  ;;  %v6151_v51 = vcombine.low %v294_v37, %v298_v38  ;;  %v378_v47 = vld [vmem:[#allocation5 + $0x730] sm:$0xff] }
 0x147   :  { %3153 = vmatpush2.bf16.msra.mxu1 %v6333_v50  ;;  %v598_v50 = vlaneseq }
 0x148   :  { %3154 = vmatprep.subr.bf16.mxu1 %v6326_v55  ;;  %v154_v55 = vld [vmem:[#allocation5 + $0x30] sm:$0xff] }
 0x149   :  { %3180 = vmatpush1.bf16.msra.mxu0 %v6389_v57  ;;  %v282_v57 = vld [vmem:[#allocation5 + $0x430] sm:$0xff]  ;;  %v6008_v63 = vcombine.high %v150_v54, %v154_v55 }
 0x14a   :  { %3206 = vmatprep.subr.bf16.mxu0 %v6064_v61  ;;  %v7567_v61 = vshrl.u32 %v598_v50, 7  ;;  %v6136_v0 = vcombine.high %v278_v56, %v282_v57  ;;  %v6135_v7 = vcombine.low %v278_v56, %v282_v57  ;;  %v238_v56 = vld [vmem:[#allocation5 + $0x2d0] sm:$0xff] }
 0x14b   :  { %3155 = vmatpush2.bf16.msra.mxu1 %v6325_v58  ;;  %v6015_v58 = vcombine.low %v158_v45, %v162_v46  ;;  %v374_v46 = vld [vmem:[#allocation5 + $0x710] sm:$0xff] }
 0x14c   :  { %3247 = vmatprep.subr.bf16.mxu1 %v6192_v1  ;;  %3198 = vmatmul.mubr.bf16.vlgmr.msra.gmra.mxu0 %v7551_v31  ;;  %v270_v1 = vld [vmem:[#allocation5 + $0x3d0] sm:$0xff]  ;;  %v7570_v6 = vsub.s32 0, %v7567_v61 }
 0x14d   :  { %3207 = vmatpush1.bf16.msra.mxu0 %v6063_v3  ;;  %3238 = vmatprep.mubr.bf16.mxu0 %v7535_v59  ;;  %v398_v3 = vld [vmem:[#allocation5 + $0x7d0] sm:$0xff]  ;;  %v6127_v18 = vcombine.low %v270_v1, %v274_v2 }
 0x14e   :  { %3157 = vmatmul.mubr.bf16.vlgmr.msra.gmra.mxu1 %v7555_v40  ;;  %3208 = vmatprep.subr.bf16.mxu0 %v6056_v5  ;;  %v6007_v5 = vcombine.low %v150_v54, %v154_v55  ;;  %v601_v16 = vrot.slane %v7572_v8, %v7570_v6  ;;  %v6232_v55 = vcombine.high %v374_v46, %v378_v47  ;;  %v242_v57 = vld [vmem:[#allocation5 + $0x2f0] sm:$0xff] }
 0x14f   :  { %3248 = vmatpush1.bf16.msra.mxu1 %v6191_v4  ;;  %3279 = vmatprep.mubr.bf16.mxu1 %v7537_v60  ;;  %v402_v4 = vld [vmem:[#allocation5 + $0x7f0] sm:$0xff] }
 0x150   :  { %3249 = vmatprep.subr.bf16.mxu1 %v6184_v9  ;;  %v6128_v9 = vcombine.high %v270_v1, %v274_v2  ;;  %v6256_v10 = vcombine.high %v398_v3, %v402_v4  ;;  %v6255_v19 = vcombine.low %v398_v3, %v402_v4  ;;  %v6096_v1 = vcombine.high %v238_v56, %v242_v57  ;;  %v230_v3 = vld [vmem:[#allocation5 + $0x290] sm:$0xff] }
 0x151   :  { %3209 = vmatpush1.bf16.msra.mxu0 %v6055_v11  ;;  %v7575_v11 = vsub.s32 1, %v7567_v61  ;;  %v234_v4 = vld [vmem:[#allocation5 + $0x2b0] sm:$0xff] }
 0x152   :  { %3210 = vmatprep.subr.bf16.mxu0 %v6048_v13  ;;  %v266_v13 = vld [vmem:[#allocation5 + $0x3b0] sm:$0xff] }
 0x153   :  { %3250 = vmatpush1.bf16.msra.mxu1 %v6183_v12  ;;  %v262_v12 = vld [vmem:[#allocation5 + $0x390] sm:$0xff] }
 0x154   :  { %3251 = vmatprep.subr.bf16.mxu1 %v6176_v14  ;;  %v390_v14 = vld [vmem:[#allocation5 + $0x790] sm:$0xff] }
 0x155   :  { %3211 = vmatpush1.bf16.msra.mxu0 %v6047_v21  ;;  %v6120_v21 = vcombine.high %v262_v12, %v266_v13  ;;  %v6247_v35 = vcombine.low %v390_v14, %v394_v15 }
 0x156   :  { %3212 = vmatprep.subr.bf16.mxu0 %v6040_v23  ;;  %v6248_v23 = vcombine.high %v390_v14, %v394_v15  ;;  %v222_v14 = vld [vmem:[#allocation5 + $0x250] sm:$0xff] }
 0x157   :  { %3252 = vmatpush1.bf16.msra.mxu1 %v6175_v22  ;;  %v605_v22 = vrot.slane %v7572_v8, %v7575_v11  ;;  %v226_v15 = vld [vmem:[#allocation5 + $0x270] sm:$0xff] }
 0x158   :  { %3253 = vmatprep.subr.bf16.mxu1 %v6168_v24  ;;  %v254_v24 = vld [vmem:[#allocation5 + $0x350] sm:$0xff] }
 0x159   :  { %3213 = vmatpush1.bf16.msra.mxu0 %v6039_v29  ;;  %v6112_v36 = vcombine.high %v254_v24, %v258_v25  ;;  %v6111_v50 = vcombine.low %v254_v24, %v258_v25  ;;  %v214_v24 = vld [vmem:[#allocation5 + $0x210] sm:$0xff] }
 0x15a   :  { %3214 = vmatprep.subr.bf16.mxu0 %v6032_v33  ;;  %v6119_v33 = vcombine.low %v262_v12, %v266_v13  ;;  %v6088_v12 = vcombine.high %v230_v3, %v234_v4  ;;  %v218_v25 = vld [vmem:[#allocation5 + $0x230] sm:$0xff] }
 0x15b   :  { %3254 = vmatpush1.bf16.msra.mxu1 %v6167_v32 }
 0x15c   :  { %3255 = vmatprep.subr.bf16.mxu1 %v6160_v34 }
 0x15d   :  { %3215 = vmatpush1.bf16.msra.mxu0 %v6031_v41 }
 0x15e   :  { %3216 = vmatprep.subr.bf16.mxu0 %v6024_v43  ;;  %v246_v43 = vld [vmem:[#allocation5 + $0x310] sm:$0xff] }
 0x15f   :  { %3256 = vmatpush1.bf16.msra.mxu1 %v6159_v42  ;;  %v6240_v42 = vcombine.high %v382_v27, %v386_v28 }
 0x160   :  { %3257 = vmatprep.subr.bf16.mxu1 %v6152_v44  ;;  %v250_v44 = vld [vmem:[#allocation5 + $0x330] sm:$0xff] }
 0x161   :  { %3217 = vmatpush1.bf16.msra.mxu0 %v6023_v49 }
 0x162   :  { %3218 = vmatprep.subr.bf16.mxu0 %v6016_v52  ;;  %v6239_v52 = vcombine.low %v382_v27, %v386_v28  ;;  %v346_v27 = vld [vmem:[#allocation5 + $0x630] sm:$0xff]  ;;  %v6079_v28 = vcombine.low %v222_v14, %v226_v15 }
 0x163   :  { %3258 = vmatpush1.bf16.msra.mxu1 %v6151_v51 }
 0x164   :  { %3259 = vmatprep.subr.bf16.mxu1 %v6144_v53  ;;  %v6104_v53 = vcombine.high %v246_v43, %v250_v44 }
 0x165   :  { %3219 = vmatpush1.bf16.msra.mxu0 %v6015_v58  ;;  %v366_v58 = vld [vmem:[#allocation5 + $0x6d0] sm:$0xff] }
 0x166   :  { %3220 = vmatprep.subr.bf16.mxu0 %v6008_v63  ;;  %v6103_v63 = vcombine.low %v246_v43, %v250_v44 }
 0x167   :  { %3260 = vmatpush1.bf16.msra.mxu1 %v6143_v62  ;;  %v370_v62 = vld [vmem:[#allocation5 + $0x6f0] sm:$0xff] }
 0x168   :  { %3261 = vmatprep.subr.bf16.mxu1 %v6136_v0  ;;  %v6231_v0 = vcombine.low %v374_v46, %v378_v47  ;;  %v6224_v2 = vcombine.high %v366_v58, %v370_v62  ;;  %v458_v46 = vld [vmem:[#allocation5 + $0x9b0] sm:$0xff] }
 0x169   :  { %3221 = vmatpush1.bf16.msra.mxu0 %v6007_v5  ;;  %v358_v5 = vld [vmem:[#allocation5 + $0x690] sm:$0xff] }
 0x16a   :  { %3222 = vmatprep.subr.bf16.mxu0 %v6128_v9  ;;  %v6095_v9 = vcombine.low %v238_v56, %v242_v57  ;;  %v582_v47 = vld [vmem:[#allocation5 + $0xd90] sm:$0xff] }
 0x16b   :  { %3262 = vmatpush1.bf16.msra.mxu1 %v6135_v7  ;;  %v362_v7 = vld [vmem:[#allocation5 + $0x6b0] sm:$0xff] }
 0x16c   :  { %3263 = vmatprep.subr.bf16.mxu1 %v6256_v10  ;;  %v2912_v26 = vpop.f32.mrf.mxu0  ;;  %v6223_v10 = vcombine.low %v366_v58, %v370_v62  ;;  %v6216_v13 = vcombine.high %v358_v5, %v362_v7  ;;  %v574_v56 = vld [vmem:[#allocation5 + $0xd50] sm:$0xff] }
 0x16d   :  { %v2913_v29 = vadd.f32 %v2912_v26, %v601_v16  ;;  %3223 = vmatpush2.bf16.msra.mxu0 %v6127_v18  ;;  %v350_v16 = vld [vmem:[#allocation5 + $0x650] sm:$0xff] }
 0x16e   :  { %v2953_v32 = vpop.f32.mrf.mxu1  ;;  %v2914_v34 = vpop.f32.mrf.mxu0  ;;  %3224 = vmatprep.subr.bf16.mxu0 %v6120_v21  ;;  %v354_v18 = vld [vmem:[#allocation5 + $0x670] sm:$0xff]  ;;  %v6215_v21 = vcombine.low %v358_v5, %v362_v7 }
 0x16f   :  { %3264 = vmatpush2.bf16.msra.mxu1 %v6255_v19  ;;  %v7581_v37 = vadd.f32 %v2953_v32, %v2913_v29  ;;  %v2915_v38 = vadd.f32 %v2914_v34, %v605_v22  ;;  %v6087_v19 = vcombine.low %v230_v3, %v234_v4  ;;  %v6080_v22 = vcombine.high %v222_v14, %v226_v15  ;;  %v342_v26 = vld [vmem:[#allocation5 + $0x610] sm:$0xff] }
 0x170   :  { %v2955_v41 = vpop.f32.mrf.mxu1  ;;  %3265 = vmatprep.subr.bf16.mxu1 %v6248_v23  ;;  %v2916_v45 = vpop.f32.mrf.mxu0  ;;  %v6208_v23 = vcombine.high %v350_v16, %v354_v18  ;;  %v6207_v29 = vcombine.low %v350_v16, %v354_v18  ;;  %v6072_v32 = vcombine.high %v214_v24, %v218_v25  ;;  %v462_v34 = vld [vmem:[#allocation5 + $0x9d0] sm:$0xff] }
 0x171   :  { %v7583_v48 = vadd.f32 %v2955_v41, %v2915_v38  ;;  %3225 = vmatpush2.bf16.msra.mxu0 %v6119_v33  ;;  %v6200_v33 = vcombine.high %v342_v26, %v346_v27  ;;  %v594_v38 = vld [vmem:[#allocation5 + $0xdf0] sm:$0xff]  ;;  %v6071_v41 = vcombine.low %v214_v24, %v218_v25 }
 0x172   :  { %v2957_v49 = vpop.f32.mrf.mxu1  ;;  %v2917_v51 = vpop.f32.mrf.mxu0  ;;  %3226 = vmatprep.subr.bf16.mxu0 %v6112_v36  ;;  %v590_v36 = vld [vmem:[#allocation5 + $0xdd0] sm:$0xff] }
 0x173   :  { %3266 = vmatpush2.bf16.msra.mxu1 %v6247_v35  ;;  %v466_v35 = vld [vmem:[#allocation5 + $0x9f0] sm:$0xff]  ;;  %v6448_v44 = vcombine.high %v590_v36, %v594_v38  ;;  %v6447_v51 = vcombine.low %v590_v36, %v594_v38 }
 0x174   :  { %v2958_v54 = vpop.f32.mrf.mxu1  ;;  %3267 = vmatprep.subr.bf16.mxu1 %v6240_v42  ;;  %v6199_v42 = vcombine.low %v342_v26, %v346_v27  ;;  %v6320_v43 = vcombine.high %v462_v34, %v466_v35  ;;  %v454_v45 = vld [vmem:[#allocation5 + $0x990] sm:$0xff] }
 0x175   :  { %3227 = vmatpush2.bf16.msra.mxu0 %v6111_v50  ;;  %v586_v49 = vld [vmem:[#allocation5 + $0xdb0] sm:$0xff]  ;;  %v6319_v50 = vcombine.low %v462_v34, %v466_v35  ;;  %v6311_v62 = vcombine.low %v454_v45, %v458_v46 }
 0x176   :  { %3228 = vmatprep.subr.bf16.mxu0 %v6104_v53  ;;  %v6440_v53 = vcombine.high %v582_v47, %v586_v49  ;;  %v446_v54 = vld [vmem:[#allocation5 + $0x950] sm:$0xff] }
 0x177   :  { %3268 = vmatpush2.bf16.msra.mxu1 %v6239_v52  ;;  %v6312_v52 = vcombine.high %v454_v45, %v458_v46  ;;  %v578_v57 = vld [vmem:[#allocation5 + $0xd70] sm:$0xff] }
 0x178   :  { %3269 = vmatprep.subr.bf16.mxu1 %v6232_v55  ;;  %v450_v55 = vld [vmem:[#allocation5 + $0x970] sm:$0xff] }
 0x179   :  { %3229 = vmatpush2.bf16.msra.mxu0 %v6103_v63  ;;  %v6439_v63 = vcombine.low %v582_v47, %v586_v49  ;;  %v438_v3 = vld [vmem:[#allocation5 + $0x910] sm:$0xff] }
 0x17a   :  { %3230 = vmatprep.subr.bf16.mxu0 %v6096_v1  ;;  %v442_v4 = vld [vmem:[#allocation5 + $0x930] sm:$0xff] }
 0x17b   :  { %3270 = vmatpush2.bf16.msra.mxu1 %v6231_v0  ;;  %v6304_v0 = vcombine.high %v446_v54, %v450_v55  ;;  %v566_v5 = vld [vmem:[#allocation5 + $0xd10] sm:$0xff] }
 0x17c   :  { %3271 = vmatprep.subr.bf16.mxu1 %v6224_v2  ;;  %v6432_v2 = vcombine.high %v574_v56, %v578_v57  ;;  %v570_v7 = vld [vmem:[#allocation5 + $0xd30] sm:$0xff] }
 0x17d   :  { %3231 = vmatpush2.bf16.msra.mxu0 %v6095_v9  ;;  %v6424_v15 = vcombine.high %v566_v5, %v570_v7  ;;  %v430_v16 = vld [vmem:[#allocation5 + $0x8d0] sm:$0xff] }
 0x17e   :  { %3232 = vmatprep.subr.bf16.mxu0 %v6088_v12  ;;  %v6431_v12 = vcombine.low %v574_v56, %v578_v57  ;;  %v434_v18 = vld [vmem:[#allocation5 + $0x8f0] sm:$0xff] }
 0x17f   :  { %3272 = vmatpush2.bf16.msra.mxu1 %v6223_v10  ;;  %v6303_v10 = vcombine.low %v446_v54, %v450_v55  ;;  %v6288_v24 = vcombine.high %v430_v16, %v434_v18  ;;  %v422_v26 = vld [vmem:[#allocation5 + $0x890] sm:$0xff] }
 0x180   :  { %3273 = vmatprep.subr.bf16.mxu1 %v6216_v13  ;;  %v6296_v13 = vcombine.high %v438_v3, %v442_v4  ;;  %v426_v27 = vld [vmem:[#allocation5 + $0x8b0] sm:$0xff] }
 0x181   :  { %3233 = vmatpush2.bf16.msra.mxu0 %v6087_v19  ;;  %v558_v19 = vld [vmem:[#allocation5 + $0xcd0] sm:$0xff]  ;;  %v6280_v34 = vcombine.high %v422_v26, %v426_v27 }
 0x182   :  { %3234 = vmatprep.subr.bf16.mxu0 %v6080_v22  ;;  %v6295_v22 = vcombine.low %v438_v3, %v442_v4  ;;  %v414_v36 = vld [vmem:[#allocation5 + $0x850] sm:$0xff] }
 0x183   :  { %3274 = vmatpush2.bf16.msra.mxu1 %v6215_v21  ;;  %v562_v21 = vld [vmem:[#allocation5 + $0xcf0] sm:$0xff] }
 0x184   :  { %3275 = vmatprep.subr.bf16.mxu1 %v6208_v23  ;;  %v6423_v23 = vcombine.low %v566_v5, %v570_v7  ;;  %v6416_v25 = vcombine.high %v558_v19, %v562_v21  ;;  %v418_v38 = vld [vmem:[#allocation5 + $0x870] sm:$0xff] }
 0x185   :  { %3235 = vmatpush2.bf16.msra.mxu0 %v6079_v28  ;;  %v550_v28 = vld [vmem:[#allocation5 + $0xc90] sm:$0xff]  ;;  %v6272_v45 = vcombine.high %v414_v36, %v418_v38 }
 0x186   :  { %3236 = vmatprep.subr.bf16.mxu0 %v6072_v32  ;;  %v6287_v32 = vcombine.low %v430_v16, %v434_v18  ;;  %v406_v47 = vld [vmem:[#allocation5 + $0x810] sm:$0xff] }
 0x187   :  { %3276 = vmatpush2.bf16.msra.mxu1 %v6207_v29  ;;  %v554_v29 = vld [vmem:[#allocation5 + $0xcb0] sm:$0xff] }
 0x188   :  { %3277 = vmatprep.subr.bf16.mxu1 %v6200_v33  ;;  %v6415_v33 = vcombine.low %v558_v19, %v562_v21  ;;  %v6408_v35 = vcombine.high %v550_v28, %v554_v29  ;;  %v410_v49 = vld [vmem:[#allocation5 + $0x830] sm:$0xff]  ;;  %v191_v21 = vld [vmem:[#allocation5 + $0x158] sm:$0xff] }
 0x189   :  { %3237 = vmatpush2.bf16.msra.mxu0 %v6071_v41  ;;  %v542_v41 = vld [vmem:[#allocation5 + $0xc50] sm:$0xff]  ;;  %v6264_v54 = vcombine.high %v406_v47, %v410_v49 }
 0x18a   :  { %3288 = vmatprep.subr.bf16.mxu0 %v6320_v43  ;;  %v6279_v43 = vcombine.low %v422_v26, %v426_v27  ;;  %v526_v56 = vld [vmem:[#allocation5 + $0xbd0] sm:$0xff] }
 0x18b   :  { %3278 = vmatpush2.bf16.msra.mxu1 %v6199_v42  ;;  %v546_v42 = vld [vmem:[#allocation5 + $0xc70] sm:$0xff] }
 0x18c   :  { %3329 = vmatprep.subr.bf16.mxu1 %v6448_v44  ;;  %3239 = vmatmul.mubr.bf16.vlgmr.msra.gmra.mxu0 %v7541_v17  ;;  %v6407_v44 = vcombine.low %v550_v28, %v554_v29  ;;  %v6400_v46 = vcombine.high %v542_v41, %v546_v42  ;;  %v530_v57 = vld [vmem:[#allocation5 + $0xbf0] sm:$0xff] }
 0x18d   :  { %3289 = vmatpush1.bf16.msra.mxu0 %v6319_v50  ;;  %3320 = vmatprep.mubr.bf16.mxu0 %v7546_v30  ;;  %v534_v50 = vld [vmem:[#allocation5 + $0xc10] sm:$0xff]  ;;  %v6384_v3 = vcombine.high %v526_v56, %v530_v57 }
 0x18e   :  { %v7586_v58 = vpop.f32.mrf.mxu1  ;;  %3280 = vmatmul.mubr.bf16.vlgmr.msra.gmra.mxu1 %v7543_v20  ;;  %3290 = vmatprep.subr.bf16.mxu0 %v6312_v52  ;;  %v6271_v52 = vcombine.low %v414_v36, %v418_v38  ;;  %v518_v5 = vld [vmem:[#allocation5 + $0xb90] sm:$0xff]  ;;  %v187_v36 = vld [vmem:[#allocation5 + $0x138] sm:$0xff] }
 0x18f   :  { %3330 = vmatpush1.bf16.msra.mxu1 %v6447_v51  ;;  %3361 = vmatprep.mubr.bf16.mxu1 %v7457_v39  ;;  %v538_v51 = vld [vmem:[#allocation5 + $0xc30] sm:$0xff] }
 0x190   :  { %v7589_v1 = vpop.f32.mrf.mxu1  ;;  %3331 = vmatprep.subr.bf16.mxu1 %v6440_v53  ;;  %v6399_v53 = vcombine.low %v542_v41, %v546_v42  ;;  %v6392_v55 = vcombine.high %v534_v50, %v538_v51  ;;  %v522_v7 = vld [vmem:[#allocation5 + $0xbb0] sm:$0xff] }
 0x191   :  { %3291 = vmatpush1.bf16.msra.mxu0 %v6311_v62  ;;  %v207_v62 = vld [vmem:[#allocation5 + $0x1d8] sm:$0xff]  ;;  %v510_v16 = vld [vmem:[#allocation5 + $0xb50] sm:$0xff] }
 0x192   :  { %v3039_v9 = vpop.f32.mrf.mxu1  ;;  %3292 = vmatprep.subr.bf16.mxu0 %v6304_v0  ;;  %v6263_v0 = vcombine.low %v406_v47, %v410_v49  ;;  %v514_v18 = vld [vmem:[#allocation5 + $0xb70] sm:$0xff]  ;;  %v179_v47 = vld [vmem:[#allocation5 + $0xf8] sm:$0xff] }
 0x193   :  { %3332 = vmatpush1.bf16.msra.mxu1 %v6439_v63  ;;  %v211_v63 = vld [vmem:[#allocation5 + $0x1f8] sm:$0xff]  ;;  %v6368_v27 = vcombine.high %v510_v16, %v514_v18  ;;  %v6367_v41 = vcombine.low %v510_v16, %v514_v18 }
 0x194   :  { %v3040_v14 = vpop.f32.mrf.mxu1  ;;  %3333 = vmatprep.subr.bf16.mxu1 %v6432_v2  ;;  %v6391_v2 = vcombine.low %v534_v50, %v538_v51  ;;  %v6066_v4 = vcombine.high %v207_v62, %v211_v63  ;;  %v199_v9 = vld [vmem:[#allocation5 + $0x198] sm:$0xff]  ;;  %v486_v51 = vld [vmem:[#allocation5 + $0xa90] sm:$0xff] }
 0x195   :  { %3293 = vmatpush1.bf16.msra.mxu0 %v6303_v10  ;;  %v203_v10 = vld [vmem:[#allocation5 + $0x1b8] sm:$0xff]  ;;  %v6376_v14 = vcombine.high %v518_v5, %v522_v7 }
 0x196   :  { %3294 = vmatprep.subr.bf16.mxu0 %v6296_v13  ;;  %v6065_v13 = vcombine.low %v207_v62, %v211_v63  ;;  %v6057_v26 = vcombine.low %v199_v9, %v203_v10  ;;  %v478_v63 = vld [vmem:[#allocation5 + $0xa50] sm:$0xff] }
 0x197   :  { %3334 = vmatpush1.bf16.msra.mxu1 %v6431_v12  ;;  %v6383_v12 = vcombine.low %v526_v56, %v530_v57 }
 0x198   :  { %3335 = vmatprep.subr.bf16.mxu1 %v6424_v15  ;;  %v6058_v15 = vcombine.high %v199_v9, %v203_v10  ;;  %v470_v10 = vld [vmem:[#allocation5 + $0xa10] sm:$0xff] }
 0x199   :  { %3295 = vmatpush1.bf16.msra.mxu0 %v6295_v22  ;;  %v195_v22 = vld [vmem:[#allocation5 + $0x178] sm:$0xff] }
 0x19a   :  { %3296 = vmatprep.subr.bf16.mxu0 %v6288_v24  ;;  %v6375_v24 = vcombine.low %v518_v5, %v522_v7 }
 0x19b   :  { %3336 = vmatpush1.bf16.msra.mxu1 %v6423_v23 }
 0x19c   :  { %3337 = vmatprep.subr.bf16.mxu1 %v6416_v25 }
 0x19d   :  { %3297 = vmatpush1.bf16.msra.mxu0 %v6287_v32  ;;  %v6050_v32 = vcombine.high %v191_v21, %v195_v22 }
 0x19e   :  { %3298 = vmatprep.subr.bf16.mxu0 %v6280_v34  ;;  %v506_v34 = vld [vmem:[#allocation5 + $0xb30] sm:$0xff] }
 0x19f   :  { %3338 = vmatpush1.bf16.msra.mxu1 %v6415_v33  ;;  %v502_v33 = vld [vmem:[#allocation5 + $0xb10] sm:$0xff] }
 0x1a0   :  { %3339 = vmatprep.subr.bf16.mxu1 %v6408_v35  ;;  %v183_v35 = vld [vmem:[#allocation5 + $0x118] sm:$0xff] }
 0x1a1   :  { %3299 = vmatpush1.bf16.msra.mxu0 %v6279_v43  ;;  %v6360_v43 = vcombine.high %v502_v33, %v506_v34  ;;  %v6041_v49 = vcombine.low %v183_v35, %v187_v36 }
 0x1a2   :  { %3300 = vmatprep.subr.bf16.mxu0 %v6272_v45  ;;  %v498_v45 = vld [vmem:[#allocation5 + $0xaf0] sm:$0xff] }
 0x1a3   :  { %3340 = vmatpush1.bf16.msra.mxu1 %v6407_v44  ;;  %v494_v44 = vld [vmem:[#allocation5 + $0xad0] sm:$0xff] }
 0x1a4   :  { %3341 = vmatprep.subr.bf16.mxu1 %v6400_v46  ;;  %v175_v46 = vld [vmem:[#allocation5 + $0xd8] sm:$0xff] }
 0x1a5   :  { %3301 = vmatpush1.bf16.msra.mxu0 %v6271_v52  ;;  %v6034_v50 = vcombine.high %v175_v46, %v179_v47  ;;  %v490_v52 = vld [vmem:[#allocation5 + $0xab0] sm:$0xff]  ;;  %v6033_v56 = vcombine.low %v175_v46, %v179_v47 }
 0x1a6   :  { %3302 = vmatprep.subr.bf16.mxu0 %v6264_v54  ;;  %v171_v54 = vld [vmem:[#allocation5 + $0xb8] sm:$0xff]  ;;  %v6344_v57 = vcombine.high %v486_v51, %v490_v52 }
 0x1a7   :  { %3342 = vmatpush1.bf16.msra.mxu1 %v6399_v53  ;;  %v167_v53 = vld [vmem:[#allocation5 + $0x98] sm:$0xff] }
 0x1a8   :  { %3343 = vmatprep.subr.bf16.mxu1 %v6392_v55  ;;  %v6351_v55 = vcombine.low %v494_v44, %v498_v45  ;;  %v6026_v62 = vcombine.high %v167_v53, %v171_v54  ;;  %v6025_v5 = vcombine.low %v167_v53, %v171_v54  ;;  %v251_v53 = vld [vmem:[#allocation5 + $0x338] sm:$0xff] }
 0x1a9   :  { %3303 = vmatpush1.bf16.msra.mxu0 %v6263_v0  ;;  %v482_v0 = vld [vmem:[#allocation5 + $0xa70] sm:$0xff] }
 0x1aa   :  { %3304 = vmatprep.subr.bf16.mxu0 %v6384_v3  ;;  %v163_v3 = vld [vmem:[#allocation5 + $0x78] sm:$0xff]  ;;  %v6336_v7 = vcombine.high %v478_v63, %v482_v0 }
 0x1ab   :  { %3344 = vmatpush1.bf16.msra.mxu1 %v6391_v2  ;;  %v159_v2 = vld [vmem:[#allocation5 + $0x58] sm:$0xff] }
 0x1ac   :  { %3370 = vmatprep.subr.bf16.mxu1 %v6066_v4  ;;  %v2994_v19 = vpop.f32.mrf.mxu0  ;;  %v6343_v4 = vcombine.low %v486_v51, %v490_v52  ;;  %v6018_v9 = vcombine.high %v159_v2, %v163_v3  ;;  %v6017_v16 = vcombine.low %v159_v2, %v163_v3  ;;  %v315_v51 = vld [vmem:[#allocation5 + $0x538] sm:$0xff] }
 0x1ad   :  { %v2995_v23 = vadd.f32 %v2994_v19, %v7581_v37  ;;  %3305 = vmatpush2.bf16.msra.mxu0 %v6383_v12  ;;  %v474_v12 = vld [vmem:[#allocation5 + $0xa30] sm:$0xff]  ;;  %v247_v52 = vld [vmem:[#allocation5 + $0x318] sm:$0xff] }
 0x1ae   :  { %3362 = vmatmul.mubr.bf16.vlgmr.msra.gmra.mxu1 %v7551_v31  ;;  %v2996_v25 = vpop.f32.mrf.mxu0  ;;  %3306 = vmatprep.subr.bf16.mxu0 %v6376_v14  ;;  %v155_v14 = vld [vmem:[#allocation5 + $0x38] sm:$0xff]  ;;  %v6328_v18 = vcombine.high %v470_v10, %v474_v12 }
 0x1af   :  { %3371 = vmatpush1.bf16.msra.mxu1 %v6065_v13  ;;  %v7596_v28 = vadd.f32 %v7586_v58, %v2995_v23  ;;  %v2997_v29 = vadd.f32 %v2996_v25, %v7583_v48  ;;  %3402 = vmatprep.mubr.bf16.mxu1 %v7535_v59  ;;  %v6049_v58 = vcombine.low %v191_v21, %v195_v22  ;;  %v151_v13 = vld [vmem:[#allocation5 + $0x18] sm:$0xff] }
 0x1b0   :  { %3372 = vmatprep.subr.bf16.mxu1 %v6058_v15  ;;  %v2998_v37 = vpop.f32.mrf.mxu0  ;;  %v6042_v48 = vcombine.high %v183_v35, %v187_v36  ;;  %v6359_v59 = vcombine.low %v502_v33, %v506_v34  ;;  %v6335_v15 = vcombine.low %v478_v63, %v482_v0  ;;  %v6010_v19 = vcombine.high %v151_v13, %v155_v14  ;;  %v335_v21 = vld [vmem:[#allocation5 + $0x5d8] sm:$0xff] }
 0x1b1   :  { %v7601_v38 = vadd.f32 %v7589_v1, %v2997_v29  ;;  %3307 = vmatpush2.bf16.msra.mxu0 %v6375_v24  ;;  %v6352_v1 = vcombine.high %v494_v44, %v498_v45  ;;  %v339_v22 = vld [vmem:[#allocation5 + $0x5f8] sm:$0xff]  ;;  %v6327_v25 = vcombine.low %v470_v10, %v474_v12  ;;  %vm3534_vm2 = vcmp.gt.f32.partialorder %v7596_v28, 0.0 }
 0x1b2   :  { %v2999_v42 = vpop.f32.mrf.mxu0  ;;  %3308 = vmatprep.subr.bf16.mxu0 %v6368_v27  ;;  %v271_v23 = vld [vmem:[#allocation5 + $0x3d8] sm:$0xff]  ;;  %v6194_v27 = vcombine.high %v335_v21, %v339_v22  ;;  %v6193_v35 = vcombine.low %v335_v21, %v339_v22 }
 0x1b3   :  { %3373 = vmatpush1.bf16.msra.mxu1 %v6057_v26  ;;  %v275_v24 = vld [vmem:[#allocation5 + $0x3f8] sm:$0xff]  ;;  %v6009_v26 = vcombine.low %v151_v13, %v155_v14  ;;  %vm3535_vm0 = vcmp.gt.f32.partialorder %v7601_v38, 0.0 }
 0x1b4   :  { %3374 = vmatprep.subr.bf16.mxu1 %v6050_v32  ;;  %v6130_v29 = vcombine.high %v271_v23, %v275_v24  ;;  %v327_v32 = vld [vmem:[#allocation5 + $0x598] sm:$0xff]  ;;  %v6129_v36 = vcombine.low %v271_v23, %v275_v24 }
 0x1b5   :  { %3309 = vmatpush2.bf16.msra.mxu0 %v6367_v41  ;;  %v331_v33 = vld [vmem:[#allocation5 + $0x5b8] sm:$0xff] }
 0x1b6   :  { %3310 = vmatprep.subr.bf16.mxu0 %v6360_v43  ;;  %v263_v34 = vld [vmem:[#allocation5 + $0x398] sm:$0xff]  ;;  %v6186_v41 = vcombine.high %v327_v32, %v331_v33  ;;  %v6185_v46 = vcombine.low %v327_v32, %v331_v33 }
 0x1b7   :  { %3375 = vmatpush1.bf16.msra.mxu1 %v6049_v58  ;;  %v267_v37 = vld [vmem:[#allocation5 + $0x3b8] sm:$0xff] }
 0x1b8   :  { %3376 = vmatprep.subr.bf16.mxu1 %v6042_v48  ;;  %v6122_v42 = vcombine.high %v263_v34, %v267_v37  ;;  %v319_v58 = vld [vmem:[#allocation5 + $0x558] sm:$0xff]  ;;  %v6121_v47 = vcombine.low %v263_v34, %v267_v37 }
 0x1b9   :  { %3311 = vmatpush2.bf16.msra.mxu0 %v6359_v59  ;;  %v323_v43 = vld [vmem:[#allocation5 + $0x578] sm:$0xff] }
 0x1ba   :  { %3312 = vmatprep.subr.bf16.mxu0 %v6352_v1  ;;  %v255_v48 = vld [vmem:[#allocation5 + $0x358] sm:$0xff]  ;;  %v6178_v59 = vcombine.high %v319_v58, %v323_v43 }
 0x1bb   :  { %3377 = vmatpush1.bf16.msra.mxu1 %v6041_v49  ;;  %v259_v44 = vld [vmem:[#allocation5 + $0x378] sm:$0xff] }
 0x1bc   :  { %3378 = vmatprep.subr.bf16.mxu1 %v6034_v50  ;;  %v6114_v1 = vcombine.high %v255_v48, %v259_v44  ;;  %v311_v50 = vld [vmem:[#allocation5 + $0x518] sm:$0xff] }
 0x1bd   :  { %3313 = vmatpush2.bf16.msra.mxu0 %v6351_v55  ;;  %v6177_v55 = vcombine.low %v319_v58, %v323_v43  ;;  %v303_v63 = vld [vmem:[#allocation5 + $0x4d8] sm:$0xff] }
 0x1be   :  { %3314 = vmatprep.subr.bf16.mxu0 %v6344_v57  ;;  %v6170_v57 = vcombine.high %v311_v50, %v315_v51  ;;  %v307_v0 = vld [vmem:[#allocation5 + $0x4f8] sm:$0xff] }
 0x1bf   :  { %3379 = vmatpush1.bf16.msra.mxu1 %v6033_v56  ;;  %v6113_v56 = vcombine.low %v255_v48, %v259_v44  ;;  %v239_v2 = vld [vmem:[#allocation5 + $0x2d8] sm:$0xff] }
 0x1c0   :  { %3380 = vmatprep.subr.bf16.mxu1 %v6026_v62  ;;  %v6106_v62 = vcombine.high %v247_v52, %v251_v53  ;;  %v243_v3 = vld [vmem:[#allocation5 + $0x2f8] sm:$0xff] }
 0x1c1   :  { %3315 = vmatpush2.bf16.msra.mxu0 %v6343_v4  ;;  %v6169_v4 = vcombine.low %v311_v50, %v315_v51  ;;  %v295_v10 = vld [vmem:[#allocation5 + $0x498] sm:$0xff] }
 0x1c2   :  { %3316 = vmatprep.subr.bf16.mxu0 %v6336_v7  ;;  %v6162_v7 = vcombine.high %v303_v63, %v307_v0  ;;  %v299_v12 = vld [vmem:[#allocation5 + $0x4b8] sm:$0xff] }
 0x1c3   :  { %3381 = vmatpush1.bf16.msra.mxu1 %v6025_v5  ;;  %v6105_v5 = vcombine.low %v247_v52, %v251_v53  ;;  %v231_v13 = vld [vmem:[#allocation5 + $0x298] sm:$0xff] }
 0x1c4   :  { %3382 = vmatprep.subr.bf16.mxu1 %v6018_v9  ;;  %v6098_v9 = vcombine.high %v239_v2, %v243_v3  ;;  %v235_v14 = vld [vmem:[#allocation5 + $0x2b8] sm:$0xff] }
 0x1c5   :  { %3317 = vmatpush2.bf16.msra.mxu0 %v6335_v15  ;;  %v6161_v15 = vcombine.low %v303_v63, %v307_v0  ;;  %v287_v21 = vld [vmem:[#allocation5 + $0x458] sm:$0xff] }
 0x1c6   :  { %3318 = vmatprep.subr.bf16.mxu0 %v6328_v18  ;;  %v6154_v18 = vcombine.high %v295_v10, %v299_v12  ;;  %v291_v22 = vld [vmem:[#allocation5 + $0x478] sm:$0xff] }
 0x1c7   :  { %3383 = vmatpush1.bf16.msra.mxu1 %v6017_v16  ;;  %v6097_v16 = vcombine.low %v239_v2, %v243_v3  ;;  %v223_v23 = vld [vmem:[#allocation5 + $0x258] sm:$0xff] }
 0x1c8   :  { %3384 = vmatprep.subr.bf16.mxu1 %v6010_v19  ;;  %v6090_v19 = vcombine.high %v231_v13, %v235_v14  ;;  %v227_v24 = vld [vmem:[#allocation5 + $0x278] sm:$0xff] }
 0x1c9   :  { %3319 = vmatpush2.bf16.msra.mxu0 %v6327_v25  ;;  %v6153_v25 = vcombine.low %v295_v10, %v299_v12  ;;  %v279_v32 = vld [vmem:[#allocation5 + $0x418] sm:$0xff] }
 0x1ca   :  { %3411 = vmatprep.subr.bf16.mxu0 %v6194_v27  ;;  %v6146_v27 = vcombine.high %v287_v21, %v291_v22  ;;  %v283_v33 = vld [vmem:[#allocation5 + $0x438] sm:$0xff] }
 0x1cb   :  { %3385 = vmatpush1.bf16.msra.mxu1 %v6009_v26  ;;  %v6089_v26 = vcombine.low %v231_v13, %v235_v14  ;;  %v215_v34 = vld [vmem:[#allocation5 + $0x218] sm:$0xff] }
 0x1cc   :  { %3386 = vmatprep.subr.bf16.mxu1 %v6130_v29  ;;  %3321 = vmatmul.mubr.bf16.vlgmr.msra.gmra.mxu0 %v7555_v40  ;;  %v6082_v29 = vcombine.high %v223_v23, %v227_v24  ;;  %v219_v37 = vld [vmem:[#allocation5 + $0x238] sm:$0xff] }
 0x1cd   :  { %3412 = vmatpush1.bf16.msra.mxu0 %v6193_v35  ;;  %3443 = vmatprep.mubr.bf16.mxu0 %v7537_v60  ;;  %v6145_v35 = vcombine.low %v287_v21, %v291_v22  ;;  %v6074_v58 = vcombine.high %v215_v34, %v219_v37  ;;  %v399_v43 = vld [vmem:[#allocation5 + $0x7d8] sm:$0xff] }
 0x1ce   :  { %v7604_v45 = vpop.f32.mrf.mxu1  ;;  %3413 = vmatprep.subr.bf16.mxu0 %v6186_v41  ;;  %v6138_v41 = vcombine.high %v279_v32, %v283_v33  ;;  %v403_v48 = vld [vmem:[#allocation5 + $0x7f8] sm:$0xff] }
 0x1cf   :  { %3387 = vmatpush2.bf16.msra.mxu1 %v6129_v36  ;;  %v6081_v36 = vcombine.low %v223_v23, %v227_v24  ;;  %v463_v44 = vld [vmem:[#allocation5 + $0x9d8] sm:$0xff] }
 0x1d0   :  { %v7607_v49 = vpop.f32.mrf.mxu1  ;;  %3388 = vmatprep.subr.bf16.mxu1 %v6122_v42  ;;  %v7610_v42 = vsub.s32 2, %v7567_v61  ;;  %v391_v52 = vld [vmem:[#allocation5 + $0x798] sm:$0xff] }
 0x1d1   :  { %3414 = vmatpush1.bf16.msra.mxu0 %v6185_v46  ;;  %v467_v46 = vld [vmem:[#allocation5 + $0x9f8] sm:$0xff] }
 0x1d2   :  { %v3080_v54 = vpop.f32.mrf.mxu1  ;;  %3415 = vmatprep.subr.bf16.mxu0 %v6178_v59  ;;  %v6073_v59 = vcombine.low %v215_v34, %v219_v37  ;;  %v609_v50 = vrot.slane %v7572_v8, %v7610_v42  ;;  %v6322_v51 = vcombine.high %v463_v44, %v467_v46  ;;  %v395_v53 = vld [vmem:[#allocation5 + $0x7b8] sm:$0xff] }
 0x1d3   :  { %3389 = vmatpush2.bf16.msra.mxu1 %v6121_v47  ;;  %v6137_v47 = vcombine.low %v279_v32, %v283_v33  ;;  %v455_v54 = vld [vmem:[#allocation5 + $0x998] sm:$0xff] }
 0x1d4   :  { %v3081_v60 = vpop.f32.mrf.mxu1  ;;  %3390 = vmatprep.subr.bf16.mxu1 %v6114_v1  ;;  %v6258_v1 = vcombine.high %v399_v43, %v403_v48  ;;  %v383_v0 = vld [vmem:[#allocation5 + $0x758] sm:$0xff] }
 0x1d5   :  { %3416 = vmatpush1.bf16.msra.mxu0 %v6177_v55  ;;  %v459_v55 = vld [vmem:[#allocation5 + $0x9b8] sm:$0xff]  ;;  %v6250_v60 = vcombine.high %v391_v52, %v395_v53 }
 0x1d6   :  { %3417 = vmatprep.subr.bf16.mxu0 %v6170_v57  ;;  %v6321_v57 = vcombine.low %v463_v44, %v467_v46  ;;  %v6314_v63 = vcombine.high %v455_v54, %v459_v55  ;;  %v387_v2 = vld [vmem:[#allocation5 + $0x778] sm:$0xff]  ;;  %v6313_v10 = vcombine.low %v455_v54, %v459_v55 }
 0x1d7   :  { %3391 = vmatpush2.bf16.msra.mxu1 %v6113_v56  ;;  %v6257_v56 = vcombine.low %v399_v43, %v403_v48  ;;  %v447_v8 = vld [vmem:[#allocation5 + $0x958] sm:$0xff]  ;;  %v6242_v12 = vcombine.high %v383_v0, %v387_v2 }
 0x1d8   :  { %3392 = vmatprep.subr.bf16.mxu1 %v6106_v62  ;;  %v3077_v62 = vadd.f32 %v7604_v45, %v609_v50  ;;  %v375_v13 = vld [vmem:[#allocation5 + $0x718] sm:$0xff] }
 0x1d9   :  { %3418 = vmatpush1.bf16.msra.mxu0 %v6169_v4  ;;  %v451_v4 = vld [vmem:[#allocation5 + $0x978] sm:$0xff] }
 0x1da   :  { %3419 = vmatprep.subr.bf16.mxu0 %v6162_v7  ;;  %v6249_v7 = vcombine.low %v391_v52, %v395_v53  ;;  %v6306_v45 = vcombine.high %v447_v8, %v451_v4  ;;  %v379_v14 = vld [vmem:[#allocation5 + $0x738] sm:$0xff]  ;;  %v6305_v21 = vcombine.low %v447_v8, %v451_v4 }
 0x1db   :  { %3393 = vmatpush2.bf16.msra.mxu1 %v6105_v5  ;;  %v6234_v22 = vcombine.high %v375_v13, %v379_v14  ;;  %v367_v24 = vld [vmem:[#allocation5 + $0x6d8] sm:$0xff] }
 0x1dc   :  { %3394 = vmatprep.subr.bf16.mxu1 %v6098_v9  ;;  %v359_v34 = vld [vmem:[#allocation5 + $0x698] sm:$0xff] }
 0x1dd   :  { %3420 = vmatpush1.bf16.msra.mxu0 %v6161_v15  ;;  %v363_v37 = vld [vmem:[#allocation5 + $0x6b8] sm:$0xff] }
 0x1de   :  { %3421 = vmatprep.subr.bf16.mxu0 %v6154_v18  ;;  %v443_v18 = vld [vmem:[#allocation5 + $0x938] sm:$0xff]  ;;  %v6218_v43 = vcombine.high %v359_v34, %v363_v37 }
 0x1df   :  { %3395 = vmatpush2.bf16.msra.mxu1 %v6097_v16  ;;  %v439_v16 = vld [vmem:[#allocation5 + $0x918] sm:$0xff] }
 0x1e0   :  { %3396 = vmatprep.subr.bf16.mxu1 %v6090_v19  ;;  %v6241_v19 = vcombine.low %v383_v0, %v387_v2  ;;  %v6298_v23 = vcombine.high %v439_v16, %v443_v18  ;;  %v351_v44 = vld [vmem:[#allocation5 + $0x658] sm:$0xff] }
 0x1e1   :  { %3422 = vmatpush1.bf16.msra.mxu0 %v6153_v25  ;;  %v371_v25 = vld [vmem:[#allocation5 + $0x6f8] sm:$0xff] }
 0x1e2   :  { %3423 = vmatprep.subr.bf16.mxu0 %v6146_v27  ;;  %v435_v27 = vld [vmem:[#allocation5 + $0x8f8] sm:$0xff]  ;;  %v6226_v32 = vcombine.high %v367_v24, %v371_v25 }
 0x1e3   :  { %3397 = vmatpush2.bf16.msra.mxu1 %v6089_v26  ;;  %v431_v26 = vld [vmem:[#allocation5 + $0x8d8] sm:$0xff] }
 0x1e4   :  { %3398 = vmatprep.subr.bf16.mxu1 %v6082_v29  ;;  %v6233_v29 = vcombine.low %v375_v13, %v379_v14  ;;  %v6290_v33 = vcombine.high %v431_v26, %v435_v27  ;;  %v355_v46 = vld [vmem:[#allocation5 + $0x678] sm:$0xff] }
 0x1e5   :  { %3424 = vmatpush1.bf16.msra.mxu0 %v6145_v35  ;;  %v423_v35 = vld [vmem:[#allocation5 + $0x898] sm:$0xff] }
 0x1e6   :  { %3425 = vmatprep.subr.bf16.mxu0 %v6138_v41  ;;  %v6225_v41 = vcombine.low %v367_v24, %v371_v25  ;;  %v343_v53 = vld [vmem:[#allocation5 + $0x618] sm:$0xff] }
 0x1e7   :  { %3399 = vmatpush2.bf16.msra.mxu1 %v6081_v36  ;;  %v427_v36 = vld [vmem:[#allocation5 + $0x8b8] sm:$0xff] }
 0x1e8   :  { %3400 = vmatprep.subr.bf16.mxu1 %v6074_v58  ;;  %v6289_v58 = vcombine.low %v431_v26, %v435_v27  ;;  %v6282_v48 = vcombine.high %v423_v35, %v427_v36  ;;  %v6281_v50 = vcombine.low %v423_v35, %v427_v36  ;;  %v347_v54 = vld [vmem:[#allocation5 + $0x638] sm:$0xff] }
 0x1e9   :  { %3426 = vmatpush1.bf16.msra.mxu0 %v6137_v47  ;;  %v415_v47 = vld [vmem:[#allocation5 + $0x858] sm:$0xff]  ;;  %v6201_v4 = vcombine.low %v343_v53, %v347_v54 }
 0x1ea   :  { %3427 = vmatprep.subr.bf16.mxu0 %v6258_v1  ;;  %v6217_v1 = vcombine.low %v359_v34, %v363_v37  ;;  %v407_v55 = vld [vmem:[#allocation5 + $0x818] sm:$0xff] }
 0x1eb   :  { %3401 = vmatpush2.bf16.msra.mxu1 %v6073_v59  ;;  %v419_v59 = vld [vmem:[#allocation5 + $0x878] sm:$0xff] }
 0x1ec   :  { %3452 = vmatprep.subr.bf16.mxu1 %v6322_v51  ;;  %v3117_v3 = vpop.f32.mrf.mxu0  ;;  %v6210_v51 = vcombine.high %v351_v44, %v355_v46  ;;  %v6274_v52 = vcombine.high %v415_v47, %v419_v59  ;;  %v591_v0 = vld [vmem:[#allocation5 + $0xdd8] sm:$0xff] }
 0x1ed   :  { %v7615_v5 = vadd.f32 %v3117_v3, %v3077_v62  ;;  %3428 = vmatpush2.bf16.msra.mxu0 %v6257_v56  ;;  %v411_v56 = vld [vmem:[#allocation5 + $0x838] sm:$0xff]  ;;  %v6202_v62 = vcombine.high %v343_v53, %v347_v54 }
 0x1ee   :  { %3403 = vmatmul.mubr.bf16.vlgmr.msra.gmra.mxu1 %v7541_v17  ;;  %v7618_v9 = vpop.f32.mrf.mxu0  ;;  %3429 = vmatprep.subr.bf16.mxu0 %v6250_v60  ;;  %v6273_v60 = vcombine.low %v415_v47, %v419_v59  ;;  %v595_v2 = vld [vmem:[#allocation5 + $0xdf8] sm:$0xff] }
 0x1ef   :  { %3453 = vmatpush1.bf16.msra.mxu1 %v6321_v57  ;;  %3484 = vmatprep.mubr.bf16.mxu1 %v7546_v30  ;;  %v6297_v30 = vcombine.low %v439_v16, %v443_v18  ;;  %v6209_v57 = vcombine.low %v351_v44, %v355_v46  ;;  %v527_v3 = vld [vmem:[#allocation5 + $0xbd8] sm:$0xff]  ;;  %v6449_v16 = vcombine.low %v591_v0, %v595_v2 }
 0x1f0   :  { %3454 = vmatprep.subr.bf16.mxu1 %v6314_v63  ;;  %v3121_v15 = vpop.f32.mrf.mxu0  ;;  %v6266_v63 = vcombine.high %v407_v55, %v411_v56  ;;  %v531_v8 = vld [vmem:[#allocation5 + $0xbf8] sm:$0xff] }
 0x1f1   :  { %3430 = vmatpush2.bf16.msra.mxu0 %v6249_v7  ;;  %v6265_v7 = vcombine.low %v407_v55, %v411_v56  ;;  %v587_v13 = vld [vmem:[#allocation5 + $0xdb8] sm:$0xff]  ;;  %v6385_v18 = vcombine.low %v527_v3, %v531_v8  ;;  %v7629_v55 = vld [vmem:[#allocation7] sm:$0xff] }
 0x1f2   :  { %v3122_v17 = vpop.f32.mrf.mxu0  ;;  %3431 = vmatprep.subr.bf16.mxu0 %v6242_v12  ;;  %v6386_v12 = vcombine.high %v527_v3, %v531_v8  ;;  %v519_v14 = vld [vmem:[#allocation5 + $0xb98] sm:$0xff] }
 0x1f3   :  { %3455 = vmatpush1.bf16.msra.mxu1 %v6313_v10  ;;  %v6450_v10 = vcombine.high %v591_v0, %v595_v2  ;;  %v523_v15 = vld [vmem:[#allocation5 + $0xbb8] sm:$0xff] }
 0x1f4   :  { %3456 = vmatprep.subr.bf16.mxu1 %v6306_v45  ;;  %v583_v45 = vld [vmem:[#allocation5 + $0xd98] sm:$0xff]  ;;  %v6378_v17 = vcombine.high %v519_v14, %v523_v15 }
 0x1f5   :  { %3432 = vmatpush2.bf16.msra.mxu0 %v6241_v19  ;;  %v6442_v19 = vcombine.high %v583_v45, %v587_v13  ;;  %v511_v24 = vld [vmem:[#allocation5 + $0xb58] sm:$0xff]  ;;  %v6441_v27 = vcombine.low %v583_v45, %v587_v13 }
 0x1f6   :  { %3433 = vmatprep.subr.bf16.mxu0 %v6234_v22  ;;  %v579_v22 = vld [vmem:[#allocation5 + $0xd78] sm:$0xff] }
 0x1f7   :  { %3457 = vmatpush1.bf16.msra.mxu1 %v6305_v21  ;;  %v575_v21 = vld [vmem:[#allocation5 + $0xd58] sm:$0xff] }
 0x1f8   :  { %3458 = vmatprep.subr.bf16.mxu1 %v6298_v23  ;;  %v515_v25 = vld [vmem:[#allocation5 + $0xb78] sm:$0xff] }
 0x1f9   :  { %3434 = vmatpush2.bf16.msra.mxu0 %v6233_v29  ;;  %v6370_v37 = vcombine.high %v511_v24, %v515_v25  ;;  %v567_v35 = vld [vmem:[#allocation5 + $0xd18] sm:$0xff]  ;;  %v6369_v46 = vcombine.low %v511_v24, %v515_v25 }
 0x1fa   :  { %3435 = vmatprep.subr.bf16.mxu0 %v6226_v32  ;;  %v6377_v32 = vcombine.low %v519_v14, %v523_v15  ;;  %v499_v53 = vld [vmem:[#allocation5 + $0xaf8] sm:$0xff] }
 0x1fb   :  { %3459 = vmatpush1.bf16.msra.mxu1 %v6297_v30  ;;  %v555_v0 = vld [vmem:[#allocation5 + $0xcb8] sm:$0xff] }
 0x1fc   :  { %3460 = vmatprep.subr.bf16.mxu1 %v6290_v33  ;;  %v6434_v33 = vcombine.high %v575_v21, %v579_v22  ;;  %v487_v2 = vld [vmem:[#allocation5 + $0xa98] sm:$0xff] }
 0x1fd   :  { %3436 = vmatpush2.bf16.msra.mxu0 %v6225_v41  ;;  %v491_v3 = vld [vmem:[#allocation5 + $0xab8] sm:$0xff] }
 0x1fe   :  { %3437 = vmatprep.subr.bf16.mxu0 %v6218_v43  ;;  %v507_v43 = vld [vmem:[#allocation5 + $0xb38] sm:$0xff] }
 0x1ff   :  { %3461 = vmatpush1.bf16.msra.mxu1 %v6289_v58  ;;  %v503_v58 = vld [vmem:[#allocation5 + $0xb18] sm:$0xff] }
 0x200   :  { %3462 = vmatprep.subr.bf16.mxu1 %v6282_v48  ;;  %v543_v45 = vld [vmem:[#allocation5 + $0xc58] sm:$0xff] }
 0x201   :  { %3438 = vmatpush2.bf16.msra.mxu0 %v6217_v1  ;;  %v6362_v1 = vcombine.high %v503_v58, %v507_v43  ;;  %v547_v13 = vld [vmem:[#allocation5 + $0xc78] sm:$0xff] }
 0x202   :  { %3439 = vmatprep.subr.bf16.mxu0 %v6210_v51  ;;  %v563_v51 = vld [vmem:[#allocation5 + $0xcf8] sm:$0xff] }
 0x203   :  { %3463 = vmatpush1.bf16.msra.mxu1 %v6281_v50  ;;  %v559_v50 = vld [vmem:[#allocation5 + $0xcd8] sm:$0xff] }
 0x204   :  { %3464 = vmatprep.subr.bf16.mxu1 %v6274_v52  ;;  %v495_v52 = vld [vmem:[#allocation5 + $0xad8] sm:$0xff]  ;;  %v6417_v8 = vcombine.low %v559_v50, %v563_v51 }
 0x205   :  { %3440 = vmatpush2.bf16.msra.mxu0 %v6209_v57  ;;  %v6361_v57 = vcombine.low %v503_v58, %v507_v43  ;;  %v479_v15 = vld [vmem:[#allocation5 + $0xa58] sm:$0xff] }
 0x206   :  { %3441 = vmatprep.subr.bf16.mxu0 %v6202_v62  ;;  %v6354_v62 = vcombine.high %v495_v52, %v499_v53  ;;  %v471_v24 = vld [vmem:[#allocation5 + $0xa18] sm:$0xff] }
 0x207   :  { %3465 = vmatpush1.bf16.msra.mxu1 %v6273_v60  ;;  %v6418_v60 = vcombine.high %v559_v50, %v563_v51  ;;  %v475_v25 = vld [vmem:[#allocation5 + $0xa38] sm:$0xff] }
 0x208   :  { %3466 = vmatprep.subr.bf16.mxu1 %v6266_v63  ;;  %v551_v63 = vld [vmem:[#allocation5 + $0xc98] sm:$0xff] }
 0x209   :  { %3442 = vmatpush2.bf16.msra.mxu0 %v6201_v4  ;;  %v6791_v43 = vld [vmem:[#allocation8 + $0x2e0] ss:$16 sps:$4 sm:$0xff]   ;;  %v6805_v50 = vld [vmem:[#allocation8 + $0x2a4] ss:$16 sps:$4 sm:$0xff]  }
 0x20a   :  { %3493 = vmatprep.subr.bf16.mxu0 %v6450_v10  ;;  %v6410_v10 = vcombine.high %v551_v63, %v555_v0  ;;  %v6803_v51 = vld [vmem:[#allocation8 + $0x2a0] ss:$16 sps:$4 sm:$0xff]  }
 0x20b   :  { %3467 = vmatpush1.bf16.msra.mxu1 %v6265_v7  ;;  %v6353_v7 = vcombine.low %v495_v52, %v499_v53  ;;  %v6811_v52 = vld [vmem:[#allocation8 + $0x284] ss:$16 sps:$4 sm:$0xff]   ;;  %v6806_v53 = vld [vmem:[#allocation8 + $0x80] ss:$16 sps:$4 sm:$0xff]  }
 0x20c   :  { %3468 = vmatprep.subr.bf16.mxu1 %v6386_v12  ;;  %v3199_v23 = vpop.f32.mrf.mxu0  ;;  %3444 = vmatmul.mubr.bf16.vlgmr.msra.gmra.mxu0 %v7543_v20  ;;  %v571_v20 = vld [vmem:[#allocation5 + $0xd38] sm:$0xff]  ;;  %v6346_v12 = vcombine.high %v487_v2, %v491_v3 }
 0x20d   :  { %3494 = vmatpush1.bf16.msra.mxu0 %v6449_v16  ;;  %3525 = vmatprep.mubr.bf16.mxu0 %v7457_v39  ;;  %v6433_v39 = vcombine.low %v575_v21, %v579_v22  ;;  %v6426_v47 = vcombine.high %v567_v35, %v571_v20  ;;  %v6425_v54 = vcombine.low %v567_v35, %v571_v20  ;;  %v483_v16 = vld [vmem:[#allocation5 + $0xa78] sm:$0xff] }
 0x20e   :  { %v3158_v26 = vpop.f32.mrf.mxu1  ;;  %v7624_v30 = vpop.f32.mrf.mxu0  ;;  %3495 = vmatprep.subr.bf16.mxu0 %v6442_v19  ;;  %v6402_v21 = vcombine.high %v543_v45, %v547_v13  ;;  %v535_v22 = vld [vmem:[#allocation5 + $0xc18] sm:$0xff]  ;;  %v6329_v35 = vcombine.low %v471_v24, %v475_v25 }
 0x20f   :  { %v3159_v29 = vadd.f32 %v3158_v26, %v7615_v5  ;;  %3469 = vmatpush2.bf16.msra.mxu1 %v6385_v18  ;;  %v612_v5 = vsub.s32 3, %v7567_v61  ;;  %v6409_v18 = vcombine.low %v551_v63, %v555_v0  ;;  %v6401_v26 = vcombine.low %v543_v45, %v547_v13  ;;  %v6790_v20 = vld [vmem:[#allocation8 + $0xe4] ss:$16 sps:$4 sm:$0xff]   ;;  %v6830_v13 = vld [vmem:[#allocation8] ss:$16 sps:$4 sm:$0xff]  }
 0x210   :  { %v3160_v34 = vpop.f32.mrf.mxu1  ;;  %3470 = vmatprep.subr.bf16.mxu1 %v6378_v17  ;;  %v3203_v41 = vpop.f32.mrf.mxu0  ;;  %v6345_v17 = vcombine.low %v487_v2, %v491_v3  ;;  %v6820_v63 = vld [vmem:[#allocation8 + $0x44] ss:$16 sps:$4 sm:$0xff]   ;;  %v6818_v2 = vld [vmem:[#allocation8 + $0x40] ss:$16 sps:$4 sm:$0xff]  }
 0x211   :  { %v7626_v36 = vadd.f32 %v3199_v23, %v3159_v29  ;;  %3496 = vmatpush1.bf16.msra.mxu0 %v6441_v27  ;;  %v613_v56 = vrot.slane %v7629_v55, %v612_v5  ;;  %v539_v23 = vld [vmem:[#allocation5 + $0xc38] sm:$0xff] }
 0x212   :  { %v3162_v48 = vpop.f32.mrf.mxu1  ;;  %v3204_v44 = vpop.f32.mrf.mxu0  ;;  %3497 = vmatprep.subr.bf16.mxu0 %v6434_v33  ;;  %v6394_v29 = vcombine.high %v535_v22, %v539_v23  ;;  %v3543_v33 = vmul.f32 0.2, %v7601_v38  ;;  %v6788_v41 = vld [vmem:[#allocation8 + $0xe0] ss:$16 sps:$4 sm:$0xff]   ;;  %v6823_v0 = vld [vmem:[#allocation8 + $0x244] ss:$16 sps:$4 sm:$0xff]  }
 0x213   :  { %3471 = vmatpush2.bf16.msra.mxu1 %v6377_v32  ;;  %v3079_v4 = vadd.f32 %v7607_v49, %v613_v56  ;;  %v6338_v49 = vcombine.high %v479_v15, %v483_v16  ;;  %v6330_v32 = vcombine.high %v471_v24, %v475_v25  ;;  %v6814_v56 = vld [vmem:[#allocation8 + $0x64] ss:$16 sps:$4 sm:$0xff]   ;;  %v6821_v3 = vld [vmem:[#allocation8 + $0x240] ss:$16 sps:$4 sm:$0xff]   ;;  %vm3536_vm3 = vcmp.gt.f32.partialorder %v7626_v36, 0.0 }
 0x214   :  { %v3163_v59 = vpop.f32.mrf.mxu1  ;;  %3472 = vmatprep.subr.bf16.mxu1 %v6370_v37  ;;  %v3551_v58 = vsel %vm3535_vm0, %v7601_v38, %v3543_v33  ;;  %v6797_v38 = vld [vmem:[#allocation8 + $0x2c0] ss:$16 sps:$4 sm:$0xff]   ;;  %v6835_v45 = vld [vmem:[#allocation8 + $0x204] ss:$16 sps:$4 sm:$0xff]  }
 0x215   :  { %3498 = vmatpush1.bf16.msra.mxu0 %v6433_v39  ;;  %v3120_v14 = vadd.f32 %v7618_v9, %v3079_v4  ;;  %v6337_v9 = vcombine.low %v479_v15, %v483_v16  ;;  %v6796_v39 = vld [vmem:[#allocation8 + $0xc4] ss:$16 sps:$4 sm:$0xff]   ;;  %v7641_v44 = vpack.c.bf16 %v3551_v58, %v3551_v58  ;;  %v6794_v59 = vld [vmem:[#allocation8 + $0xc0] ss:$16 sps:$4 sm:$0xff]  }
 0x216   :  { %3499 = vmatprep.subr.bf16.mxu0 %v6426_v47  ;;  %v6829_v4 = vld [vmem:[#allocation8 + $0x224] ss:$16 sps:$4 sm:$0xff]   ;;  %v6833_v15 = vld [vmem:[#allocation8 + $0x200] ss:$16 sps:$4 sm:$0xff]  }
 0x217   :  { %3473 = vmatpush2.bf16.msra.mxu1 %v6369_v46  ;;  %v3161_v19 = vadd.f32 %v3160_v34, %v3120_v14  ;;  %v6393_v34 = vcombine.low %v535_v22, %v539_v23  ;;  %v6799_v46 = vld [vmem:[#allocation8 + $0x2c4] ss:$16 sps:$4 sm:$0xff]   ;;  %v616_v14 = vsub.s32 4, %v7567_v61 }
 0x218   :  { %3474 = vmatprep.subr.bf16.mxu1 %v6362_v1  ;;  %v6802_v1 = vld [vmem:[#allocation8 + $0xa4] ss:$16 sps:$4 sm:$0xff]  }
 0x219   :  { %3500 = vmatpush1.bf16.msra.mxu0 %v6425_v54  ;;  %v3202_v27 = vadd.f32 %v7624_v30, %v3161_v19  ;;  %v6793_v30 = vld [vmem:[#allocation8 + $0x2e4] ss:$16 sps:$4 sm:$0xff]   ;;  %v6809_v54 = vld [vmem:[#allocation8 + $0x280] ss:$16 sps:$4 sm:$0xff]   ;;  %v617_v19 = vrot.slane %v7629_v55, %v616_v14 }
 0x21a   :  { %3501 = vmatprep.subr.bf16.mxu0 %v6418_v60  ;;  %v6812_v60 = vld [vmem:[#allocation8 + $0x60] ss:$16 sps:$4 sm:$0xff]   ;;  %v6838_v16 = vld [vmem:[#allocation8 + $0x1e4] ss:$16 sps:$4 sm:$0xff]  }
 0x21b   :  { %3475 = vmatpush2.bf16.msra.mxu1 %v6361_v57  ;;  %v3545_v37 = vmul.f32 0.2, %v3202_v27  ;;  %vm3537_vm1 = vcmp.gt.f32.partialorder %v3202_v27, 0.0  ;;  %v6817_v57 = vld [vmem:[#allocation8 + $0x264] ss:$16 sps:$4 sm:$0xff]  }
 0x21c   :  { %3476 = vmatprep.subr.bf16.mxu1 %v6354_v62  ;;  %v6815_v62 = vld [vmem:[#allocation8 + $0x260] ss:$16 sps:$4 sm:$0xff]   ;;  %v6847_v22 = vld [vmem:[#allocation8 + $0x3c4] ss:$16 sps:$4 sm:$0xff]  }
 0x21d   :  { %3502 = vmatpush1.bf16.msra.mxu0 %v6417_v8  ;;  %v3553_v48 = vsel %vm3537_vm1, %v3202_v27, %v3545_v37  ;;  %v6826_v8 = vld [vmem:[#allocation8 + $0x24] ss:$16 sps:$4 sm:$0xff]   ;;  %v6941_v14 = vld [vmem:[#allocation8 + $0x6e0] ss:$16 sps:$4 sm:$0xff]  }
 0x21e   :  { %3503 = vmatprep.subr.bf16.mxu0 %v6410_v10  ;;  %v7644_v47 = vpack.c.bf16 %v3553_v48, %v3553_v48  ;;  %v6827_v10 = vld [vmem:[#allocation8 + $0x220] ss:$16 sps:$4 sm:$0xff]   ;;  %v6856_v58 = vld [vmem:[#allocation8 + $0x184] ss:$16 sps:$4 sm:$0xff]  }
 0x21f   :  { %3477 = vmatpush2.bf16.msra.mxu1 %v6353_v7  ;;  %v6824_v7 = vld [vmem:[#allocation8 + $0x20] ss:$16 sps:$4 sm:$0xff]   ;;  %v6859_v48 = vld [vmem:[#allocation8 + $0x384] ss:$16 sps:$4 sm:$0xff]  }
 0x220   :  { %3478 = vmatprep.subr.bf16.mxu1 %v6346_v12  ;;  %v6832_v12 = vld [vmem:[#allocation8 + $0x4] ss:$16 sps:$4 sm:$0xff]  }
 0x221   :  { %3504 = vmatpush1.bf16.msra.mxu0 %v6409_v18  ;;  %v6841_v18 = vld [vmem:[#allocation8 + $0x3e4] ss:$16 sps:$4 sm:$0xff]  }
 0x222   :  { %3505 = vmatprep.subr.bf16.mxu0 %v6402_v21  ;;  %v6839_v21 = vld [vmem:[#allocation8 + $0x3e0] ss:$16 sps:$4 sm:$0xff]  }
 0x223   :  { %3479 = vmatpush2.bf16.msra.mxu1 %v6345_v17  ;;  %v6836_v17 = vld [vmem:[#allocation8 + $0x1e0] ss:$16 sps:$4 sm:$0xff]  }
 0x224   :  { %3480 = vmatprep.subr.bf16.mxu1 %v6338_v49  ;;  %v6844_v49 = vld [vmem:[#allocation8 + $0x1c4] ss:$16 sps:$4 sm:$0xff]  }
 0x225   :  { %3506 = vmatpush1.bf16.msra.mxu0 %v6401_v26  ;;  %v6842_v26 = vld [vmem:[#allocation8 + $0x1c0] ss:$16 sps:$4 sm:$0xff]  }
 0x226   :  { %3507 = vmatprep.subr.bf16.mxu0 %v6394_v29  ;;  %v6850_v29 = vld [vmem:[#allocation8 + $0x1a4] ss:$16 sps:$4 sm:$0xff]  }
 0x227   :  { %3481 = vmatpush2.bf16.msra.mxu1 %v6337_v9  ;;  %v6845_v9 = vld [vmem:[#allocation8 + $0x3c0] ss:$16 sps:$4 sm:$0xff]  }
 0x228   :  { %3482 = vmatprep.subr.bf16.mxu1 %v6330_v32 }
 0x229   :  { %3508 = vmatpush1.bf16.msra.mxu0 %v6393_v34  ;;  %v6853_v34 = vld [vmem:[#allocation8 + $0x3a4] ss:$16 sps:$4 sm:$0xff]  }
 0x22a   :  { %5124 = vmatprep.subr.bf16.mxu0 %v6790_v20  ;;  %v6848_v20 = vld [vmem:[#allocation8 + $0x1a0] ss:$16 sps:$4 sm:$0xff]  }
 0x22b   :  { %3483 = vmatpush2.bf16.msra.mxu1 %v6329_v35 }
 0x22c   :  { %5165 = vmatprep.subr.bf16.mxu1 %v6793_v30  ;;  %3526 = vmatmul.mubr.bf16.vlgmr.msra.gmra.mxu0 %v7551_v31  ;;  %v6800_v31 = vld [vmem:[#allocation8 + $0xa0] ss:$16 sps:$4 sm:$0xff]  }
 0x22d   :  { %5125 = vmatpush1.bf16.msra.mxu0 %v6788_v41  ;;  %5156 = vmatprep.mubr.bf16.mxu0 %v7641_v44  ;;  %v6851_v41 = vld [vmem:[#allocation8 + $0x3a0] ss:$16 sps:$4 sm:$0xff]  }
 0x22e   :  { %3485 = vmatmul.mubr.bf16.vlgmr.msra.gmra.mxu1 %v7555_v40  ;;  %5126 = vmatprep.subr.bf16.mxu0 %v6796_v39  ;;  %v6808_v40 = vld [vmem:[#allocation8 + $0x84] ss:$16 sps:$4 sm:$0xff]   ;;  %v6854_v39 = vld [vmem:[#allocation8 + $0x180] ss:$16 sps:$4 sm:$0xff]  }
 0x22f   :  { %5166 = vmatpush1.bf16.msra.mxu1 %v6791_v43  ;;  %5197 = vmatprep.mubr.bf16.mxu1 %v7644_v47 }
 0x230   :  { %5167 = vmatprep.subr.bf16.mxu1 %v6799_v46  ;;  %v6857_v46 = vld [vmem:[#allocation8 + $0x380] ss:$16 sps:$4 sm:$0xff]  }
 0x231   :  { %5127 = vmatpush1.bf16.msra.mxu0 %v6794_v59  ;;  %v6862_v59 = vld [vmem:[#allocation8 + $0x164] ss:$16 sps:$4 sm:$0xff]  }
 0x232   :  { %5128 = vmatprep.subr.bf16.mxu0 %v6802_v1  ;;  %v6860_v1 = vld [vmem:[#allocation8 + $0x160] ss:$16 sps:$4 sm:$0xff]  }
 0x233   :  { %5168 = vmatpush1.bf16.msra.mxu1 %v6797_v38  ;;  %v6865_v38 = vld [vmem:[#allocation8 + $0x364] ss:$16 sps:$4 sm:$0xff]  }
 0x234   :  { %5169 = vmatprep.subr.bf16.mxu1 %v6805_v50  ;;  %v6863_v50 = vld [vmem:[#allocation8 + $0x360] ss:$16 sps:$4 sm:$0xff]  }
 0x235   :  { %5129 = vmatpush1.bf16.msra.mxu0 %v6800_v31  ;;  %v6868_v31 = vld [vmem:[#allocation8 + $0x144] ss:$16 sps:$4 sm:$0xff]  }
 0x236   :  { %5130 = vmatprep.subr.bf16.mxu0 %v6808_v40  ;;  %v6866_v40 = vld [vmem:[#allocation8 + $0x140] ss:$16 sps:$4 sm:$0xff]  }
 0x237   :  { %5170 = vmatpush1.bf16.msra.mxu1 %v6803_v51  ;;  %v6871_v51 = vld [vmem:[#allocation8 + $0x344] ss:$16 sps:$4 sm:$0xff]  }
 0x238   :  { %5171 = vmatprep.subr.bf16.mxu1 %v6811_v52  ;;  %v6869_v52 = vld [vmem:[#allocation8 + $0x340] ss:$16 sps:$4 sm:$0xff]  }
 0x239   :  { %5131 = vmatpush1.bf16.msra.mxu0 %v6806_v53  ;;  %v6874_v53 = vld [vmem:[#allocation8 + $0x124] ss:$16 sps:$4 sm:$0xff]  }
 0x23a   :  { %5132 = vmatprep.subr.bf16.mxu0 %v6814_v56  ;;  %v6872_v56 = vld [vmem:[#allocation8 + $0x120] ss:$16 sps:$4 sm:$0xff]  }
 0x23b   :  { %5172 = vmatpush1.bf16.msra.mxu1 %v6809_v54  ;;  %v6877_v54 = vld [vmem:[#allocation8 + $0x324] ss:$16 sps:$4 sm:$0xff]  }
 0x23c   :  { %5173 = vmatprep.subr.bf16.mxu1 %v6817_v57  ;;  %v6875_v57 = vld [vmem:[#allocation8 + $0x320] ss:$16 sps:$4 sm:$0xff]  }
 0x23d   :  { %5133 = vmatpush1.bf16.msra.mxu0 %v6812_v60  ;;  %v6880_v60 = vld [vmem:[#allocation8 + $0x104] ss:$16 sps:$4 sm:$0xff]  }
 0x23e   :  { %5134 = vmatprep.subr.bf16.mxu0 %v6820_v63  ;;  %v6883_v63 = vld [vmem:[#allocation8 + $0x304] ss:$16 sps:$4 sm:$0xff]  }
 0x23f   :  { %5174 = vmatpush1.bf16.msra.mxu1 %v6815_v62  ;;  %v3542_v62 = vmul.f32 0.2, %v7596_v28 }
 0x240   :  { %5175 = vmatprep.subr.bf16.mxu1 %v6823_v0  ;;  %v3544_v0 = vmul.f32 0.2, %v7626_v36 }
 0x241   :  { %5135 = vmatpush1.bf16.msra.mxu0 %v6818_v2  ;;  %v6878_v2 = vld [vmem:[#allocation8 + $0x100] ss:$16 sps:$4 sm:$0xff]  }
 0x242   :  { %5136 = vmatprep.subr.bf16.mxu0 %v6826_v8  ;;  %v6886_v8 = vld [vmem:[#allocation8 + $0x4e4] ss:$16 sps:$4 sm:$0xff]  }
 0x243   :  { %5176 = vmatpush1.bf16.msra.mxu1 %v6821_v3  ;;  %v6881_v3 = vld [vmem:[#allocation8 + $0x300] ss:$16 sps:$4 sm:$0xff]  }
 0x244   :  { %5177 = vmatprep.subr.bf16.mxu1 %v6829_v4  ;;  %v3550_v4 = vsel %vm3534_vm2, %v7596_v28, %v3542_v62  ;;  %v6887_v28 = vld [vmem:[#allocation8 + $0x4c0] ss:$16 sps:$4 sm:$0xff]   ;;  %v6997_v62 = vld [vmem:[#allocation8 + $0x7c4] ss:$16 sps:$4 sm:$0xff]  }
 0x245   :  { %5137 = vmatpush1.bf16.msra.mxu0 %v6824_v7  ;;  %v6943_v7 = vld [vmem:[#allocation8 + $0x6e4] ss:$16 sps:$4 sm:$0xff]  }
 0x246   :  { %5138 = vmatprep.subr.bf16.mxu0 %v6832_v12  ;;  %v6884_v12 = vld [vmem:[#allocation8 + $0x4e0] ss:$16 sps:$4 sm:$0xff]  }
 0x247   :  { %5178 = vmatpush1.bf16.msra.mxu1 %v6827_v10  ;;  %v3552_v10 = vsel %vm3536_vm3, %v7626_v36, %v3544_v0  ;;  %v6892_v36 = vld [vmem:[#allocation8 + $0x4a4] ss:$16 sps:$4 sm:$0xff]  }
 0x248   :  { %5179 = vmatprep.subr.bf16.mxu1 %v6835_v45  ;;  %v7662_v45 = vpack.c.bf16 %v3550_v4, %v3550_v4  ;;  %v6995_v4 = vld [vmem:[#allocation8 + $0x7c0] ss:$16 sps:$4 sm:$0xff]  }
 0x249   :  { %5139 = vmatpush1.bf16.msra.mxu0 %v6830_v13  ;;  %v6889_v13 = vld [vmem:[#allocation8 + $0x4c4] ss:$16 sps:$4 sm:$0xff]  }
 0x24a   :  { %5140 = vmatprep.subr.bf16.mxu0 %v6838_v16  ;;  %v6949_v16 = vld [vmem:[#allocation8 + $0x6c4] ss:$16 sps:$4 sm:$0xff]  }
 0x24b   :  { %5180 = vmatpush1.bf16.msra.mxu1 %v6833_v15  ;;  %v7664_v15 = vpack.c.bf16 %v3552_v10, %v3552_v10 }
 0x24c   :  { %5181 = vmatprep.subr.bf16.mxu1 %v6841_v18  ;;  %v3240_v23 = vpop.f32.mrf.mxu0 }
 0x24d   :  { %v3241_v24 = vadd.f32 %v3240_v23, %v617_v19  ;;  %5141 = vmatpush2.bf16.msra.mxu0 %v6836_v17  ;;  %v6947_v19 = vld [vmem:[#allocation8 + $0x6c0] ss:$16 sps:$4 sm:$0xff]   ;;  %v6895_v23 = vld [vmem:[#allocation8 + $0x484] ss:$16 sps:$4 sm:$0xff]  }
 0x24e   :  { %v3281_v25 = vpop.f32.mrf.mxu1  ;;  %v7650_v27 = vpop.f32.mrf.mxu0  ;;  %5142 = vmatprep.subr.bf16.mxu0 %v6844_v49 }
 0x24f   :  { %5182 = vmatpush2.bf16.msra.mxu1 %v6839_v21  ;;  %v7652_v32 = vadd.f32 %v3281_v25, %v3241_v24  ;;  %v6955_v21 = vld [vmem:[#allocation8 + $0x6a4] ss:$16 sps:$4 sm:$0xff]   ;;  %v6953_v24 = vld [vmem:[#allocation8 + $0x6a0] ss:$16 sps:$4 sm:$0xff]  }
 0x250   :  { %v7654_v33 = vpop.f32.mrf.mxu1  ;;  %5183 = vmatprep.subr.bf16.mxu1 %v6847_v22  ;;  %v3244_v37 = vpop.f32.mrf.mxu0  ;;  %v6890_v22 = vld [vmem:[#allocation8 + $0x4a0] ss:$16 sps:$4 sm:$0xff]  }
 0x251   :  { %5143 = vmatpush2.bf16.msra.mxu0 %v6842_v26  ;;  %v6961_v26 = vld [vmem:[#allocation8 + $0x684] ss:$16 sps:$4 sm:$0xff]  }
 0x252   :  { %v3285_v35 = vpop.f32.mrf.mxu1  ;;  %v3245_v30 = vpop.f32.mrf.mxu0  ;;  %5144 = vmatprep.subr.bf16.mxu0 %v6850_v29  ;;  %v6898_v29 = vld [vmem:[#allocation8 + $0x464] ss:$16 sps:$4 sm:$0xff]  }
 0x253   :  { %5184 = vmatpush2.bf16.msra.mxu1 %v6845_v9  ;;  %v6893_v9 = vld [vmem:[#allocation8 + $0x480] ss:$16 sps:$4 sm:$0xff]   ;;  %v6967_v37 = vld [vmem:[#allocation8 + $0x664] ss:$16 sps:$4 sm:$0xff]  }
 0x254   :  { %v3286_v43 = vpop.f32.mrf.mxu1  ;;  %5185 = vmatprep.subr.bf16.mxu1 %v6853_v34  ;;  %v6959_v34 = vld [vmem:[#allocation8 + $0x680] ss:$16 sps:$4 sm:$0xff]  }
 0x255   :  { %5145 = vmatpush2.bf16.msra.mxu0 %v6848_v20  ;;  %v6896_v35 = vld [vmem:[#allocation8 + $0x460] ss:$16 sps:$4 sm:$0xff]   ;;  %v6901_v20 = vld [vmem:[#allocation8 + $0x444] ss:$16 sps:$4 sm:$0xff]  }
 0x256   :  { %5146 = vmatprep.subr.bf16.mxu0 %v6856_v58  ;;  %v6965_v30 = vld [vmem:[#allocation8 + $0x660] ss:$16 sps:$4 sm:$0xff]   ;;  %v6904_v43 = vld [vmem:[#allocation8 + $0x424] ss:$16 sps:$4 sm:$0xff]  }
 0x257   :  { %5186 = vmatpush2.bf16.msra.mxu1 %v6851_v41  ;;  %v6973_v41 = vld [vmem:[#allocation8 + $0x644] ss:$16 sps:$4 sm:$0xff]   ;;  %v6899_v58 = vld [vmem:[#allocation8 + $0x440] ss:$16 sps:$4 sm:$0xff]  }
 0x258   :  { %5187 = vmatprep.subr.bf16.mxu1 %v6859_v48  ;;  %v6971_v48 = vld [vmem:[#allocation8 + $0x640] ss:$16 sps:$4 sm:$0xff]  }
 0x259   :  { %5147 = vmatpush2.bf16.msra.mxu0 %v6854_v39  ;;  %v6979_v39 = vld [vmem:[#allocation8 + $0x624] ss:$16 sps:$4 sm:$0xff]  }
 0x25a   :  { %5148 = vmatprep.subr.bf16.mxu0 %v6862_v59  ;;  %v6902_v59 = vld [vmem:[#allocation8 + $0x420] ss:$16 sps:$4 sm:$0xff]  }
 0x25b   :  { %5188 = vmatpush2.bf16.msra.mxu1 %v6857_v46  ;;  %v620_v46 = vsub.s32 5, %v7567_v61 }
 0x25c   :  { %5189 = vmatprep.subr.bf16.mxu1 %v6865_v38  ;;  %v6907_v38 = vld [vmem:[#allocation8 + $0x404] ss:$16 sps:$4 sm:$0xff]  }
 0x25d   :  { %5149 = vmatpush2.bf16.msra.mxu0 %v6860_v1  ;;  %v6977_v1 = vld [vmem:[#allocation8 + $0x620] ss:$16 sps:$4 sm:$0xff]  }
 0x25e   :  { %5150 = vmatprep.subr.bf16.mxu0 %v6868_v31  ;;  %v621_v31 = vrot.slane %v7629_v55, %v620_v46  ;;  %v6934_v46 = vld [vmem:[#allocation8 + $0xec] ss:$16 sps:$4 sm:$0xff]  }
 0x25f   :  { %5190 = vmatpush2.bf16.msra.mxu1 %v6863_v50  ;;  %v6985_v50 = vld [vmem:[#allocation8 + $0x604] ss:$16 sps:$4 sm:$0xff]  }
 0x260   :  { %5191 = vmatprep.subr.bf16.mxu1 %v6871_v51  ;;  %v6905_v51 = vld [vmem:[#allocation8 + $0x400] ss:$16 sps:$4 sm:$0xff]  }
 0x261   :  { %5151 = vmatpush2.bf16.msra.mxu0 %v6866_v40  ;;  %v6910_v40 = vld [vmem:[#allocation8 + $0x5e4] ss:$16 sps:$4 sm:$0xff]  }
 0x262   :  { %5152 = vmatprep.subr.bf16.mxu0 %v6874_v53  ;;  %v6991_v53 = vld [vmem:[#allocation8 + $0x7e4] ss:$16 sps:$4 sm:$0xff]  }
 0x263   :  { %5192 = vmatpush2.bf16.msra.mxu1 %v6869_v52  ;;  %v6983_v52 = vld [vmem:[#allocation8 + $0x600] ss:$16 sps:$4 sm:$0xff]  }
 0x264   :  { %5193 = vmatprep.subr.bf16.mxu1 %v6877_v54  ;;  %v3243_v54 = vadd.f32 %v7650_v27, %v621_v31  ;;  %v7003_v27 = vld [vmem:[#allocation8 + $0x7a4] ss:$16 sps:$4 sm:$0xff]   ;;  %v6937_v31 = vld [vmem:[#allocation8 + $0xcc] ss:$16 sps:$4 sm:$0xff]  }
 0x265   :  { %5153 = vmatpush2.bf16.msra.mxu0 %v6872_v56  ;;  %v6908_v56 = vld [vmem:[#allocation8 + $0x5e0] ss:$16 sps:$4 sm:$0xff]  }
 0x266   :  { %5154 = vmatprep.subr.bf16.mxu0 %v6880_v60  ;;  %v6989_v60 = vld [vmem:[#allocation8 + $0x7e0] ss:$16 sps:$4 sm:$0xff]   ;;  %v3284_v0 = vadd.f32 %v7654_v33, %v3243_v54 }
 0x267   :  { %5194 = vmatpush2.bf16.msra.mxu1 %v6875_v57  ;;  %v6913_v57 = vld [vmem:[#allocation8 + $0x5c4] ss:$16 sps:$4 sm:$0xff]   ;;  %v7001_v33 = vld [vmem:[#allocation8 + $0x7a0] ss:$16 sps:$4 sm:$0xff]  }
 0x268   :  { %5195 = vmatprep.subr.bf16.mxu1 %v6883_v63 }
 0x269   :  { %5155 = vmatpush2.bf16.msra.mxu0 %v6878_v2  ;;  %v6911_v2 = vld [vmem:[#allocation8 + $0x5c0] ss:$16 sps:$4 sm:$0xff]  }
 0x26a   :  { %5206 = vmatprep.subr.bf16.mxu0 %v6886_v8  ;;  %v6916_v8 = vld [vmem:[#allocation8 + $0x5a4] ss:$16 sps:$4 sm:$0xff]  }
 0x26b   :  { %5196 = vmatpush2.bf16.msra.mxu1 %v6881_v3 }
 0x26c   :  { %5247 = vmatprep.subr.bf16.mxu1 %v6943_v7  ;;  %5157 = vmatmul.mubr.bf16.vlgmr.msra.gmra.mxu0 %v7662_v45 }
 0x26d   :  { %5207 = vmatpush1.bf16.msra.mxu0 %v6884_v12 }
 0x26e   :  { %v7667_v18 = vpop.f32.mrf.mxu1  ;;  %5198 = vmatmul.mubr.bf16.vlgmr.msra.gmra.mxu1 %v7664_v15  ;;  %5208 = vmatprep.subr.bf16.mxu0 %v6889_v13  ;;  %v6914_v13 = vld [vmem:[#allocation8 + $0x5a0] ss:$16 sps:$4 sm:$0xff]  }
 0x26f   :  { %5248 = vmatpush1.bf16.msra.mxu1 %v6941_v14 }
 0x270   :  { %v7670_v17 = vpop.f32.mrf.mxu1  ;;  %5249 = vmatprep.subr.bf16.mxu1 %v6949_v16  ;;  %v6919_v16 = vld [vmem:[#allocation8 + $0x584] ss:$16 sps:$4 sm:$0xff]  }
 0x271   :  { %5209 = vmatpush1.bf16.msra.mxu0 %v6887_v28 }
 0x272   :  { %v3367_v49 = vpop.f32.mrf.mxu1  ;;  %5210 = vmatprep.subr.bf16.mxu0 %v6892_v36  ;;  %v7009_v36 = vld [vmem:[#allocation8 + $0x784] ss:$16 sps:$4 sm:$0xff]  }
 0x273   :  { %5250 = vmatpush1.bf16.msra.mxu1 %v6947_v19  ;;  %v6917_v19 = vld [vmem:[#allocation8 + $0x580] ss:$16 sps:$4 sm:$0xff]  }
 0x274   :  { %v3368_v25 = vpop.f32.mrf.mxu1  ;;  %5251 = vmatprep.subr.bf16.mxu1 %v6955_v21 }
 0x275   :  { %5211 = vmatpush1.bf16.msra.mxu0 %v6890_v22  ;;  %v6922_v22 = vld [vmem:[#allocation8 + $0x564] ss:$16 sps:$4 sm:$0xff]  }
 0x276   :  { %5212 = vmatprep.subr.bf16.mxu0 %v6895_v23  ;;  %v7015_v23 = vld [vmem:[#allocation8 + $0x764] ss:$16 sps:$4 sm:$0xff]  }
 0x277   :  { %5252 = vmatpush1.bf16.msra.mxu1 %v6953_v24  ;;  %v6920_v24 = vld [vmem:[#allocation8 + $0x560] ss:$16 sps:$4 sm:$0xff]   ;;  %v6925_v25 = vld [vmem:[#allocation8 + $0x544] ss:$16 sps:$4 sm:$0xff]  }
 0x278   :  { %5253 = vmatprep.subr.bf16.mxu1 %v6961_v26  ;;  %v7013_v26 = vld [vmem:[#allocation8 + $0x760] ss:$16 sps:$4 sm:$0xff]  }
 0x279   :  { %5213 = vmatpush1.bf16.msra.mxu0 %v6893_v9 }
 0x27a   :  { %5214 = vmatprep.subr.bf16.mxu0 %v6898_v29  ;;  %v7021_v29 = vld [vmem:[#allocation8 + $0x744] ss:$16 sps:$4 sm:$0xff]  }
 0x27b   :  { %5254 = vmatpush1.bf16.msra.mxu1 %v6959_v34  ;;  %v6923_v34 = vld [vmem:[#allocation8 + $0x540] ss:$16 sps:$4 sm:$0xff]  }
 0x27c   :  { %5255 = vmatprep.subr.bf16.mxu1 %v6967_v37  ;;  %v6928_v37 = vld [vmem:[#allocation8 + $0x524] ss:$16 sps:$4 sm:$0xff]  }
 0x27d   :  { %5215 = vmatpush1.bf16.msra.mxu0 %v6896_v35  ;;  %v7019_v35 = vld [vmem:[#allocation8 + $0x740] ss:$16 sps:$4 sm:$0xff]  }
 0x27e   :  { %5216 = vmatprep.subr.bf16.mxu0 %v6901_v20 }
 0x27f   :  { %5256 = vmatpush1.bf16.msra.mxu1 %v6965_v30  ;;  %v7027_v30 = vld [vmem:[#allocation8 + $0x724] ss:$16 sps:$4 sm:$0xff]  }
 0x280   :  { %5257 = vmatprep.subr.bf16.mxu1 %v6973_v41  ;;  %v6926_v41 = vld [vmem:[#allocation8 + $0x520] ss:$16 sps:$4 sm:$0xff]  }
 0x281   :  { %5217 = vmatpush1.bf16.msra.mxu0 %v6899_v58  ;;  %v6931_v58 = vld [vmem:[#allocation8 + $0x504] ss:$16 sps:$4 sm:$0xff]  }
 0x282   :  { %5218 = vmatprep.subr.bf16.mxu0 %v6904_v43  ;;  %v7025_v43 = vld [vmem:[#allocation8 + $0x720] ss:$16 sps:$4 sm:$0xff]  }
 0x283   :  { %5258 = vmatpush1.bf16.msra.mxu1 %v6971_v48 }
 0x284   :  { %5259 = vmatprep.subr.bf16.mxu1 %v6979_v39  ;;  %v6929_v39 = vld [vmem:[#allocation8 + $0x500] ss:$16 sps:$4 sm:$0xff]  }
 0x285   :  { %5219 = vmatpush1.bf16.msra.mxu0 %v6902_v59  ;;  %v7031_v59 = vld [vmem:[#allocation8 + $0x700] ss:$16 sps:$4 sm:$0xff]  }
 0x286   :  { %5220 = vmatprep.subr.bf16.mxu0 %v6907_v38 }
 0x287   :  { %5260 = vmatpush1.bf16.msra.mxu1 %v6977_v1  ;;  %v6932_v1 = vld [vmem:[#allocation8 + $0xe8] ss:$16 sps:$4 sm:$0xff]  }
 0x288   :  { %5261 = vmatprep.subr.bf16.mxu1 %v6985_v50 }
 0x289   :  { %5221 = vmatpush1.bf16.msra.mxu0 %v6905_v51 }
 0x28a   :  { %5222 = vmatprep.subr.bf16.mxu0 %v6910_v40  ;;  %v6935_v40 = vld [vmem:[#allocation8 + $0xc8] ss:$16 sps:$4 sm:$0xff]  }
 0x28b   :  { %5262 = vmatpush1.bf16.msra.mxu1 %v6983_v52  ;;  %v6940_v52 = vld [vmem:[#allocation8 + $0xac] ss:$16 sps:$4 sm:$0xff]  }
 0x28c   :  { %5263 = vmatprep.subr.bf16.mxu1 %v6991_v53  ;;  %v3322_v63 = vpop.f32.mrf.mxu0 }
 0x28d   :  { %5223 = vmatpush2.bf16.msra.mxu0 %v6908_v56  ;;  %v3323_v9 = vadd.f32 %v3322_v63, %v7652_v32  ;;  %v7033_v32 = vld [vmem:[#allocation8 + $0x704] ss:$16 sps:$4 sm:$0xff]   ;;  %v6938_v56 = vld [vmem:[#allocation8 + $0xa8] ss:$16 sps:$4 sm:$0xff]   ;;  %v6952_v63 = vld [vmem:[#allocation8 + $0x6c] ss:$16 sps:$4 sm:$0xff]  }
 0x28e   :  { %v3324_v3 = vpop.f32.mrf.mxu0  ;;  %5224 = vmatprep.subr.bf16.mxu0 %v6913_v57  ;;  %v6946_v57 = vld [vmem:[#allocation8 + $0x8c] ss:$16 sps:$4 sm:$0xff]  }
 0x28f   :  { %5264 = vmatpush2.bf16.msra.mxu1 %v6989_v60  ;;  %v3325_v7 = vadd.f32 %v3324_v3, %v3284_v0  ;;  %v3364_v20 = vadd.f32 %v7667_v18, %v3323_v9  ;;  %v7039_v18 = vld [vmem:[#allocation8 + $0x2ec] ss:$16 sps:$4 sm:$0xff]   ;;  %v6950_v0 = vld [vmem:[#allocation8 + $0x68] ss:$16 sps:$4 sm:$0xff]  }
 0x290   :  { %5265 = vmatprep.subr.bf16.mxu1 %v6997_v62  ;;  %v3326_v10 = vpop.f32.mrf.mxu0  ;;  %v6944_v62 = vld [vmem:[#allocation8 + $0x88] ss:$16 sps:$4 sm:$0xff]   ;;  %v6964_v3 = vld [vmem:[#allocation8 + $0x2c] ss:$16 sps:$4 sm:$0xff]  }
 0x291   :  { %v3366_v12 = vadd.f32 %v7670_v17, %v3325_v7  ;;  %5225 = vmatpush2.bf16.msra.mxu0 %v6911_v2  ;;  %v7007_v17 = vld [vmem:[#allocation8 + $0x780] ss:$16 sps:$4 sm:$0xff]   ;;  %v3546_v48 = vmul.f32 0.2, %v3364_v20  ;;  %vm3538_vm5 = vcmp.gt.f32.partialorder %v3364_v20, 0.0 }
 0x292   :  { %v3327_v14 = vpop.f32.mrf.mxu0  ;;  %5226 = vmatprep.subr.bf16.mxu0 %v6916_v8  ;;  %v6958_v2 = vld [vmem:[#allocation8 + $0x4c] ss:$16 sps:$4 sm:$0xff]   ;;  %v6962_v8 = vld [vmem:[#allocation8 + $0x28] ss:$16 sps:$4 sm:$0xff]  }
 0x293   :  { %5266 = vmatpush2.bf16.msra.mxu1 %v6995_v4  ;;  %v3547_v28 = vmul.f32 0.2, %v3366_v12  ;;  %vm3539_vm4 = vcmp.gt.f32.partialorder %v3366_v12, 0.0  ;;  %v3554_v38 = vsel %vm3538_vm5, %v3364_v20, %v3546_v48  ;;  %v6970_v4 = vld [vmem:[#allocation8 + $0xc] ss:$16 sps:$4 sm:$0xff]  }
 0x294   :  { %5267 = vmatprep.subr.bf16.mxu1 %v7003_v27  ;;  %v7682_v50 = vpack.c.bf16 %v3554_v38, %v3554_v38  ;;  %v6968_v7 = vld [vmem:[#allocation8 + $0x8] ss:$16 sps:$4 sm:$0xff]   ;;  %v6976_v27 = vld [vmem:[#allocation8 + $0x1ec] ss:$16 sps:$4 sm:$0xff]  }
 0x295   :  { %5227 = vmatpush2.bf16.msra.mxu0 %v6914_v13  ;;  %v3555_v21 = vsel %vm3539_vm4, %v3366_v12, %v3547_v28  ;;  %v6974_v10 = vld [vmem:[#allocation8 + $0x1e8] ss:$16 sps:$4 sm:$0xff]   ;;  %v6982_v12 = vld [vmem:[#allocation8 + $0x1cc] ss:$16 sps:$4 sm:$0xff]  }
 0x296   :  { %5228 = vmatprep.subr.bf16.mxu0 %v6919_v16  ;;  %v7677_v49 = vpack.c.bf16 %v3555_v21, %v3555_v21  ;;  %v6980_v14 = vld [vmem:[#allocation8 + $0x1c8] ss:$16 sps:$4 sm:$0xff]   ;;  %v6994_v21 = vld [vmem:[#allocation8 + $0x18c] ss:$16 sps:$4 sm:$0xff]  }
 0x297   :  { %5268 = vmatpush2.bf16.msra.mxu1 %v7001_v33  ;;  %v6988_v33 = vld [vmem:[#allocation8 + $0x1ac] ss:$16 sps:$4 sm:$0xff]   ;;  %v7010_v9 = vld [vmem:[#allocation8 + $0x128] ss:$16 sps:$4 sm:$0xff]  }
 0x298   :  { %5269 = vmatprep.subr.bf16.mxu1 %v7009_v36  ;;  %5238 = vmatprep.mubr.bf16.mxu0 %v7677_v49  ;;  %v6986_v36 = vld [vmem:[#allocation8 + $0x1a8] ss:$16 sps:$4 sm:$0xff]   ;;  %v7030_v48 = vld [vmem:[#allocation8 + $0x4cc] ss:$16 sps:$4 sm:$0xff]  }
 0x299   :  { %5229 = vmatpush2.bf16.msra.mxu0 %v6917_v19  ;;  %v7028_v38 = vld [vmem:[#allocation8 + $0x4c8] ss:$16 sps:$4 sm:$0xff]  }
 0x29a   :  { %5230 = vmatprep.subr.bf16.mxu0 %v6922_v22  ;;  %v6992_v22 = vld [vmem:[#allocation8 + $0x188] ss:$16 sps:$4 sm:$0xff]  }
 0x29b   :  { %5270 = vmatpush2.bf16.msra.mxu1 %v7007_v17  ;;  %v7000_v17 = vld [vmem:[#allocation8 + $0x16c] ss:$16 sps:$4 sm:$0xff]  }
 0x29c   :  { %5271 = vmatprep.subr.bf16.mxu1 %v7015_v23  ;;  %v6998_v23 = vld [vmem:[#allocation8 + $0x168] ss:$16 sps:$4 sm:$0xff]  }
 0x29d   :  { %5231 = vmatpush2.bf16.msra.mxu0 %v6920_v24  ;;  %v7006_v24 = vld [vmem:[#allocation8 + $0x14c] ss:$16 sps:$4 sm:$0xff]  }
 0x29e   :  { %5232 = vmatprep.subr.bf16.mxu0 %v6925_v25  ;;  %v7004_v25 = vld [vmem:[#allocation8 + $0x148] ss:$16 sps:$4 sm:$0xff]  }
 0x29f   :  { %5272 = vmatpush2.bf16.msra.mxu1 %v7013_v26  ;;  %v7012_v26 = vld [vmem:[#allocation8 + $0x12c] ss:$16 sps:$4 sm:$0xff]  }
 0x2a0   :  { %5273 = vmatprep.subr.bf16.mxu1 %v7021_v29  ;;  %v624_v29 = vsub.s32 6, %v7567_v61 }
 0x2a1   :  { %5233 = vmatpush2.bf16.msra.mxu0 %v6923_v34  ;;  %v7018_v34 = vld [vmem:[#allocation8 + $0x10c] ss:$16 sps:$4 sm:$0xff]  }
 0x2a2   :  { %5234 = vmatprep.subr.bf16.mxu0 %v6928_v37  ;;  %v628_v37 = vsub.s32 7, %v7567_v61  ;;  %v625_v20 = vrot.slane %v7629_v55, %v624_v29  ;;  %v7067_v29 = vld [vmem:[#allocation8 + $0x248] ss:$16 sps:$4 sm:$0xff]  }
 0x2a3   :  { %5274 = vmatpush2.bf16.msra.mxu1 %v7019_v35  ;;  %v7016_v35 = vld [vmem:[#allocation8 + $0x108] ss:$16 sps:$4 sm:$0xff]  }
 0x2a4   :  { %5275 = vmatprep.subr.bf16.mxu1 %v7027_v30  ;;  %v7024_v30 = vld [vmem:[#allocation8 + $0x4ec] ss:$16 sps:$4 sm:$0xff]  }
 0x2a5   :  { %5235 = vmatpush2.bf16.msra.mxu0 %v6926_v41  ;;  %v629_v41 = vrot.slane %v7629_v55, %v628_v37  ;;  %v7076_v37 = vld [vmem:[#allocation8 + $0x5c8] ss:$16 sps:$4 sm:$0xff]  }
 0x2a6   :  { %5236 = vmatprep.subr.bf16.mxu0 %v6931_v58  ;;  %v7022_v58 = vld [vmem:[#allocation8 + $0x4e8] ss:$16 sps:$4 sm:$0xff]  }
 0x2a7   :  { %5276 = vmatpush2.bf16.msra.mxu1 %v7025_v43 }
 0x2a8   :  { %5277 = vmatprep.subr.bf16.mxu1 %v7033_v32 }
 0x2a9   :  { %5237 = vmatpush2.bf16.msra.mxu0 %v6929_v39 }
 0x2aa   :  { %5288 = vmatprep.subr.bf16.mxu0 %v6934_v46 }
 0x2ab   :  { %5278 = vmatpush2.bf16.msra.mxu1 %v7031_v59 }
 0x2ac   :  { %5329 = vmatprep.subr.bf16.mxu1 %v7039_v18  ;;  %5239 = vmatmul.mubr.bf16.vlgmr.msra.gmra.mxu0 %v7682_v50 }
 0x2ad   :  { %5289 = vmatpush1.bf16.msra.mxu0 %v6932_v1  ;;  %5320 = vmatprep.mubr.bf16.mxu0 %v7641_v44  ;;  %v6956_v44 = vld [vmem:[#allocation8 + $0x48] ss:$16 sps:$4 sm:$0xff]  }
 0x2ae   :  { %v7685_v51 = vpop.f32.mrf.mxu1  ;;  %5290 = vmatprep.subr.bf16.mxu0 %v6937_v31  ;;  %v7036_v31 = vld [vmem:[#allocation8 + $0x4ac] ss:$16 sps:$4 sm:$0xff]  }
 0x2af   :  { %v3405_v43 = vadd.f32 %v7685_v51, %v625_v20  ;;  %v7073_v20 = vld [vmem:[#allocation8 + $0x228] ss:$16 sps:$4 sm:$0xff]  }
 0x2b0   :  { %v7688_v53 = vpop.f32.mrf.mxu1 }
 0x2b1   :  { %5291 = vmatpush1.bf16.msra.mxu0 %v6935_v40  ;;  %v3407_v32 = vadd.f32 %v7688_v53, %v629_v41  ;;  %v7034_v53 = vld [vmem:[#allocation8 + $0x4a8] ss:$16 sps:$4 sm:$0xff]  }
 0x2b2   :  { %v3408_v54 = vpop.f32.mrf.mxu1  ;;  %5292 = vmatprep.subr.bf16.mxu0 %v6940_v52  ;;  %v7082_v41 = vld [vmem:[#allocation8 + $0x5a8] ss:$16 sps:$4 sm:$0xff]  }
 0x2b4   :  { %v3409_v60 = vpop.f32.mrf.mxu1 }
 0x2b5   :  { %5293 = vmatpush1.bf16.msra.mxu0 %v6938_v56 }
 0x2b6   :  { %5294 = vmatprep.subr.bf16.mxu0 %v6946_v57 }
 0x2b9   :  { %5295 = vmatpush1.bf16.msra.mxu0 %v6944_v62  ;;  %v7042_v62 = vld [vmem:[#allocation8 + $0x48c] ss:$16 sps:$4 sm:$0xff]  }
 0x2ba   :  { %5296 = vmatprep.subr.bf16.mxu0 %v6952_v63 }
 0x2bd   :  { %5297 = vmatpush1.bf16.msra.mxu0 %v6950_v0 }
 0x2be   :  { %5298 = vmatprep.subr.bf16.mxu0 %v6958_v2  ;;  %v7040_v2 = vld [vmem:[#allocation8 + $0x488] ss:$16 sps:$4 sm:$0xff]  }
 0x2c1   :  { %5299 = vmatpush1.bf16.msra.mxu0 %v6956_v44 }
 0x2c2   :  { %5300 = vmatprep.subr.bf16.mxu0 %v6964_v3  ;;  %v7048_v3 = vld [vmem:[#allocation8 + $0x46c] ss:$16 sps:$4 sm:$0xff]  }
 0x2c5   :  { %5301 = vmatpush1.bf16.msra.mxu0 %v6962_v8 }
 0x2c6   :  { %5302 = vmatprep.subr.bf16.mxu0 %v6970_v4  ;;  %v7037_v4 = vld [vmem:[#allocation8 + $0x2e8] ss:$16 sps:$4 sm:$0xff]  }
 0x2c9   :  { %5303 = vmatpush1.bf16.msra.mxu0 %v6968_v7 }
 0x2ca   :  { %5304 = vmatprep.subr.bf16.mxu0 %v6976_v27  ;;  %v7045_v27 = vld [vmem:[#allocation8 + $0x2cc] ss:$16 sps:$4 sm:$0xff]  }
 0x2cc   :  { %v3445_v13 = vpop.f32.mrf.mxu0 }
 0x2cd   :  { %5305 = vmatpush2.bf16.msra.mxu0 %v6974_v10  ;;  %v3446_v39 = vadd.f32 %v3445_v13, %v3405_v43  ;;  %v7046_v10 = vld [vmem:[#allocation8 + $0x468] ss:$16 sps:$4 sm:$0xff]  }
 0x2ce   :  { %v3447_v16 = vpop.f32.mrf.mxu0  ;;  %5306 = vmatprep.subr.bf16.mxu0 %v6982_v12  ;;  %v7054_v12 = vld [vmem:[#allocation8 + $0x44c] ss:$16 sps:$4 sm:$0xff]   ;;  %v7043_v13 = vld [vmem:[#allocation8 + $0x2c8] ss:$16 sps:$4 sm:$0xff]  }
 0x2cf   :  { %v3448_v18 = vadd.f32 %v3447_v16, %v3407_v32  ;;  %v7052_v16 = vld [vmem:[#allocation8 + $0x448] ss:$16 sps:$4 sm:$0xff]  }
 0x2d0   :  { %v3449_v28 = vpop.f32.mrf.mxu0  ;;  %v7079_v43 = vld [vmem:[#allocation8 + $0x208] ss:$16 sps:$4 sm:$0xff]  }
 0x2d1   :  { %5307 = vmatpush2.bf16.msra.mxu0 %v6980_v14  ;;  %v7051_v14 = vld [vmem:[#allocation8 + $0x2ac] ss:$16 sps:$4 sm:$0xff]   ;;  %v7049_v28 = vld [vmem:[#allocation8 + $0x2a8] ss:$16 sps:$4 sm:$0xff]  }
 0x2d2   :  { %v3450_v19 = vpop.f32.mrf.mxu0  ;;  %5308 = vmatprep.subr.bf16.mxu0 %v6988_v33  ;;  %v7060_v33 = vld [vmem:[#allocation8 + $0x42c] ss:$16 sps:$4 sm:$0xff]   ;;  %v7088_v32 = vld [vmem:[#allocation8 + $0x588] ss:$16 sps:$4 sm:$0xff]  }
 0x2d3   :  { %v7058_v19 = vld [vmem:[#allocation8 + $0x428] ss:$16 sps:$4 sm:$0xff]  }
 0x2d5   :  { %5309 = vmatpush2.bf16.msra.mxu0 %v6986_v36  ;;  %v7057_v36 = vld [vmem:[#allocation8 + $0x28c] ss:$16 sps:$4 sm:$0xff]  }
 0x2d6   :  { %5310 = vmatprep.subr.bf16.mxu0 %v6994_v21  ;;  %v7066_v21 = vld [vmem:[#allocation8 + $0x40c] ss:$16 sps:$4 sm:$0xff]  }
 0x2d9   :  { %5311 = vmatpush2.bf16.msra.mxu0 %v6992_v22  ;;  %v7055_v22 = vld [vmem:[#allocation8 + $0x288] ss:$16 sps:$4 sm:$0xff]  }
 0x2da   :  { %5312 = vmatprep.subr.bf16.mxu0 %v7000_v17  ;;  %v7063_v17 = vld [vmem:[#allocation8 + $0x26c] ss:$16 sps:$4 sm:$0xff]  }
 0x2dd   :  { %5313 = vmatpush2.bf16.msra.mxu0 %v6998_v23  ;;  %v7072_v23 = vld [vmem:[#allocation8 + $0x5ec] ss:$16 sps:$4 sm:$0xff]  }
 0x2de   :  { %5314 = vmatprep.subr.bf16.mxu0 %v7006_v24  ;;  %v7061_v24 = vld [vmem:[#allocation8 + $0x268] ss:$16 sps:$4 sm:$0xff]  }
 0x2e1   :  { %5315 = vmatpush2.bf16.msra.mxu0 %v7004_v25  ;;  %v7069_v25 = vld [vmem:[#allocation8 + $0x24c] ss:$16 sps:$4 sm:$0xff]  }
 0x2e2   :  { %5316 = vmatprep.subr.bf16.mxu0 %v7012_v26  ;;  %v7070_v26 = vld [vmem:[#allocation8 + $0x5e8] ss:$16 sps:$4 sm:$0xff]  }
 0x2e5   :  { %5317 = vmatpush2.bf16.msra.mxu0 %v7010_v9  ;;  %v7078_v9 = vld [vmem:[#allocation8 + $0x5cc] ss:$16 sps:$4 sm:$0xff]  }
 0x2e6   :  { %5318 = vmatprep.subr.bf16.mxu0 %v7018_v34  ;;  %v7075_v34 = vld [vmem:[#allocation8 + $0x22c] ss:$16 sps:$4 sm:$0xff]  }
 0x2e9   :  { %5319 = vmatpush2.bf16.msra.mxu0 %v7016_v35  ;;  %v7084_v35 = vld [vmem:[#allocation8 + $0x5ac] ss:$16 sps:$4 sm:$0xff]  }
 0x2ea   :  { %5370 = vmatprep.subr.bf16.mxu0 %v7024_v30  ;;  %v7081_v30 = vld [vmem:[#allocation8 + $0x20c] ss:$16 sps:$4 sm:$0xff]  }
 0x2ec   :  { %v3527_v46 = vpop.f32.mrf.mxu0  ;;  %5321 = vmatmul.mubr.bf16.vlgmr.msra.gmra.mxu0 %v7662_v45 }
 0x2ed   :  { %5371 = vmatpush1.bf16.msra.mxu0 %v7022_v58  ;;  %5402 = vmatprep.mubr.bf16.mxu0 %v7677_v49  ;;  %v7090_v58 = vld [vmem:[#allocation8 + $0x58c] ss:$16 sps:$4 sm:$0xff]  }
 0x2ee   :  { %v3486_v59 = vpop.f32.mrf.mxu1  ;;  %v3529_v55 = vpop.f32.mrf.mxu0  ;;  %5372 = vmatprep.subr.bf16.mxu0 %v7030_v48  ;;  %v7087_v48 = vld [vmem:[#allocation8 + $0x3ec] ss:$16 sps:$4 sm:$0xff]  }
 0x2ef   :  { %v3487_v1 = vadd.f32 %v3486_v59, %v3446_v39  ;;  %v7096_v39 = vld [vmem:[#allocation8 + $0x56c] ss:$16 sps:$4 sm:$0xff]  }
 0x2f0   :  { %v3488_v40 = vpop.f32.mrf.mxu1  ;;  %v3531_v54 = vpop.f32.mrf.mxu0  ;;  %v7093_v59 = vld [vmem:[#allocation8 + $0x3cc] ss:$16 sps:$4 sm:$0xff]  }
 0x2f1   :  { %v3528_v51 = vadd.f32 %v3527_v46, %v3487_v1  ;;  %v3489_v52 = vadd.f32 %v3488_v40, %v3448_v18  ;;  %5373 = vmatpush1.bf16.msra.mxu0 %v7028_v38  ;;  %v7085_v46 = vld [vmem:[#allocation8 + $0x3e8] ss:$16 sps:$4 sm:$0xff]   ;;  %v7102_v18 = vld [vmem:[#allocation8 + $0x54c] ss:$16 sps:$4 sm:$0xff]  }
 0x2f2   :  { %v3490_v56 = vpop.f32.mrf.mxu1  ;;  %v3532_v60 = vpop.f32.mrf.mxu0  ;;  %5374 = vmatprep.subr.bf16.mxu0 %v7036_v31  ;;  %v7094_v38 = vld [vmem:[#allocation8 + $0x568] ss:$16 sps:$4 sm:$0xff]   ;;  %v7108_v40 = vld [vmem:[#allocation8 + $0x52c] ss:$16 sps:$4 sm:$0xff]  }
 0x2f3   :  { %vm3540_vm6 = vcmp.gt.f32.partialorder %v3528_v51, 0.0  ;;  %v3548_v57 = vmul.f32 0.2, %v3528_v51  ;;  %v3530_v45 = vadd.f32 %v3529_v55, %v3489_v52  ;;  %v7091_v1 = vld [vmem:[#allocation8 + $0x3c8] ss:$16 sps:$4 sm:$0xff]  }
 0x2f4   :  { %v3491_v49 = vpop.f32.mrf.mxu1  ;;  %v7099_v55 = vld [vmem:[#allocation8 + $0x3ac] ss:$16 sps:$4 sm:$0xff]   ;;  %v7100_v31 = vld [vmem:[#allocation8 + $0x548] ss:$16 sps:$4 sm:$0xff]   ;;  %v7705_v60 = vld [vmem:[#allocation10] sm:$0xf] }
 0x2f5   :  { %vm3541_vm7 = vcmp.gt.f32.partialorder %v3530_v45, 0.0  ;;  %v3549_v63 = vmul.f32 0.2, %v3530_v45  ;;  %v3556_v0 = vsel %vm3540_vm6, %v3528_v51, %v3548_v57  ;;  %5375 = vmatpush1.bf16.msra.mxu0 %v7034_v53  ;;  %v7097_v51 = vld [vmem:[#allocation8 + $0x3a8] ss:$16 sps:$4 sm:$0xff]  }
 0x2f6   :  { %5376 = vmatprep.subr.bf16.mxu0 %v7042_v62  ;;  %v7700_v7 = vpack.c.bf16 %v3556_v0, %v3556_v0  ;;  %v7105_v52 = vld [vmem:[#allocation8 + $0x38c] ss:$16 sps:$4 sm:$0xff]   ;;  %v7106_v54 = vld [vmem:[#allocation8 + $0x528] ss:$16 sps:$4 sm:$0xff]   ;;  %v3827_v0 = vrot.slane %v7705_v60, %v7570_v6 }
 0x2f7   :  { %v3557_v44 = vsel %vm3541_vm7, %v3530_v45, %v3549_v63  ;;  %v7114_v56 = vld [vmem:[#allocation8 + $0x50c] ss:$16 sps:$4 sm:$0xff]   ;;  %v7103_v53 = vld [vmem:[#allocation8 + $0x388] ss:$16 sps:$4 sm:$0xff]  }
 0x2f8   :  { %v7698_v8 = vpack.c.bf16 %v3557_v44, %v3557_v44  ;;  %v7111_v57 = vld [vmem:[#allocation8 + $0x36c] ss:$16 sps:$4 sm:$0xff]   ;;  %v7112_v45 = vld [vmem:[#allocation8 + $0x508] ss:$16 sps:$4 sm:$0xff]  }
 0x2f9   :  { %5377 = vmatpush1.bf16.msra.mxu0 %v7040_v2  ;;  %v7174_v62 = vld [vmem:[#allocation11 + $0x74] ss:$8 sps:$4 sm:$0xff]   ;;  %v7117_v63 = vld [vmem:[#allocation8 + $0x34c] ss:$16 sps:$4 sm:$0xff]   ;;  %v7177_v44 = vld [vmem:[#allocation11 + $0x64] ss:$8 sps:$4 sm:$0xff]  }
 0x2fa   :  { %5279 = vmatprep.mubr.bf16.mxu1 %v7698_v8  ;;  %5378 = vmatprep.subr.bf16.mxu0 %v7048_v3  ;;  %v7109_v49 = vld [vmem:[#allocation8 + $0x368] ss:$16 sps:$4 sm:$0xff]   ;;  %v7172_v2 = vld [vmem:[#allocation11 + $0x70] ss:$8 sps:$4 sm:$0xff]  }
 0x2fb   :  { %5280 = vmatmul.mubr.bf16.vlgmr.msra.gmra.mxu1 %v7700_v7  ;;  %v7115_v3 = vld [vmem:[#allocation8 + $0x348] ss:$16 sps:$4 sm:$0xff]  }
 0x2fc   :  { %5330 = vmatpush1.bf16.msra.mxu1 %v7037_v4  ;;  %5361 = vmatprep.mubr.bf16.mxu1 %v7644_v47  ;;  %v7064_v47 = vld [vmem:[#allocation8 + $0x408] ss:$16 sps:$4 sm:$0xff]   ;;  %v3831_v4 = vrot.slane %v7705_v60, %v7575_v11 }
 0x2fd   :  { %5331 = vmatprep.subr.bf16.mxu1 %v7045_v27  ;;  %5379 = vmatpush1.bf16.msra.mxu0 %v7046_v10  ;;  %v7120_v10 = vld [vmem:[#allocation8 + $0x32c] ss:$16 sps:$4 sm:$0xff]  }
 0x2fe   :  { %5380 = vmatprep.subr.bf16.mxu0 %v7054_v12 }
 0x300   :  { %5332 = vmatpush1.bf16.msra.mxu1 %v7043_v13 }
 0x301   :  { %5333 = vmatprep.subr.bf16.mxu1 %v7051_v14  ;;  %5381 = vmatpush1.bf16.msra.mxu0 %v7052_v16  ;;  %v7175_v14 = vld [vmem:[#allocation11 + $0x60] ss:$8 sps:$4 sm:$0xff]  }
 0x302   :  { %5382 = vmatprep.subr.bf16.mxu0 %v7060_v33  ;;  %v7180_v33 = vld [vmem:[#allocation11 + $0x54] ss:$8 sps:$4 sm:$0xff]  }
 0x304   :  { %5334 = vmatpush1.bf16.msra.mxu1 %v7049_v28 }
 0x305   :  { %5335 = vmatprep.subr.bf16.mxu1 %v7057_v36  ;;  %5383 = vmatpush1.bf16.msra.mxu0 %v7058_v19 }
 0x306   :  { %5384 = vmatprep.subr.bf16.mxu0 %v7066_v21  ;;  %v7118_v21 = vld [vmem:[#allocation8 + $0x328] ss:$16 sps:$4 sm:$0xff]  }
 0x308   :  { %5336 = vmatpush1.bf16.msra.mxu1 %v7055_v22 }
 0x309   :  { %5337 = vmatprep.subr.bf16.mxu1 %v7063_v17  ;;  %5385 = vmatpush1.bf16.msra.mxu0 %v7064_v47  ;;  %v7123_v17 = vld [vmem:[#allocation8 + $0x30c] ss:$16 sps:$4 sm:$0xff]  }
 0x30a   :  { %5386 = vmatprep.subr.bf16.mxu0 %v7072_v23  ;;  %v7178_v23 = vld [vmem:[#allocation11 + $0x50] ss:$8 sps:$4 sm:$0xff]  }
 0x30c   :  { %5338 = vmatpush1.bf16.msra.mxu1 %v7061_v24 }
 0x30d   :  { %5339 = vmatprep.subr.bf16.mxu1 %v7069_v25  ;;  %5387 = vmatpush2.bf16.msra.mxu0 %v7070_v26  ;;  %v7183_v25 = vld [vmem:[#allocation11 + $0x44] ss:$8 sps:$4 sm:$0xff]  }
 0x30e   :  { %5388 = vmatprep.subr.bf16.mxu0 %v7078_v9  ;;  %v7121_v9 = vld [vmem:[#allocation8 + $0x308] ss:$16 sps:$4 sm:$0xff]  }
 0x310   :  { %5340 = vmatpush1.bf16.msra.mxu1 %v7067_v29  ;;  %v7126_v29 = vld [vmem:[#allocation8 + $0x6ec] ss:$16 sps:$4 sm:$0xff]  }
 0x311   :  { %5341 = vmatprep.subr.bf16.mxu1 %v7075_v34  ;;  %5389 = vmatpush2.bf16.msra.mxu0 %v7076_v37  ;;  %v7181_v34 = vld [vmem:[#allocation11 + $0x40] ss:$8 sps:$4 sm:$0xff]   ;;  %v7186_v37 = vld [vmem:[#allocation11 + $0x34] ss:$8 sps:$4 sm:$0xff]  }
 0x312   :  { %5390 = vmatprep.subr.bf16.mxu0 %v7084_v35  ;;  %v7124_v35 = vld [vmem:[#allocation8 + $0x6e8] ss:$16 sps:$4 sm:$0xff]  }
 0x314   :  { %5342 = vmatpush1.bf16.msra.mxu1 %v7073_v20  ;;  %v7129_v20 = vld [vmem:[#allocation8 + $0x6cc] ss:$16 sps:$4 sm:$0xff]  }
 0x315   :  { %5343 = vmatprep.subr.bf16.mxu1 %v7081_v30  ;;  %5391 = vmatpush2.bf16.msra.mxu0 %v7082_v41  ;;  %v7184_v30 = vld [vmem:[#allocation11 + $0x30] ss:$8 sps:$4 sm:$0xff]   ;;  %v7189_v41 = vld [vmem:[#allocation11 + $0x24] ss:$8 sps:$4 sm:$0xff]  }
 0x316   :  { %5392 = vmatprep.subr.bf16.mxu0 %v7090_v58  ;;  %v7127_v58 = vld [vmem:[#allocation8 + $0x6c8] ss:$16 sps:$4 sm:$0xff]  }
 0x318   :  { %5344 = vmatpush1.bf16.msra.mxu1 %v7079_v43  ;;  %v7132_v43 = vld [vmem:[#allocation8 + $0x6ac] ss:$16 sps:$4 sm:$0xff]  }
 0x319   :  { %5345 = vmatprep.subr.bf16.mxu1 %v7087_v48  ;;  %5393 = vmatpush2.bf16.msra.mxu0 %v7088_v32  ;;  %v7187_v48 = vld [vmem:[#allocation11 + $0x20] ss:$8 sps:$4 sm:$0xff]   ;;  %v7192_v32 = vld [vmem:[#allocation11 + $0x14] ss:$8 sps:$4 sm:$0xff]  }
 0x31a   :  { %5394 = vmatprep.subr.bf16.mxu0 %v7096_v39  ;;  %v7130_v39 = vld [vmem:[#allocation8 + $0x6a8] ss:$16 sps:$4 sm:$0xff]  }
 0x31c   :  { %5346 = vmatpush2.bf16.msra.mxu1 %v7085_v46  ;;  %v7135_v46 = vld [vmem:[#allocation8 + $0x68c] ss:$16 sps:$4 sm:$0xff]  }
 0x31d   :  { %5347 = vmatprep.subr.bf16.mxu1 %v7093_v59  ;;  %5395 = vmatpush2.bf16.msra.mxu0 %v7094_v38  ;;  %v7190_v59 = vld [vmem:[#allocation11 + $0x10] ss:$8 sps:$4 sm:$0xff]   ;;  %v7133_v38 = vld [vmem:[#allocation8 + $0x688] ss:$16 sps:$4 sm:$0xff]  }
 0x31e   :  { %5396 = vmatprep.subr.bf16.mxu0 %v7102_v18  ;;  %v7138_v18 = vld [vmem:[#allocation8 + $0x66c] ss:$16 sps:$4 sm:$0xff]  }
 0x320   :  { %5348 = vmatpush2.bf16.msra.mxu1 %v7091_v1  ;;  %v7198_v1 = vld [vmem:[#allocation11 + $0xf4] ss:$8 sps:$4 sm:$0xff]  }
 0x321   :  { %5349 = vmatprep.subr.bf16.mxu1 %v7099_v55  ;;  %5397 = vmatpush2.bf16.msra.mxu0 %v7100_v31  ;;  %v7136_v55 = vld [vmem:[#allocation8 + $0x668] ss:$16 sps:$4 sm:$0xff]   ;;  %v7141_v31 = vld [vmem:[#allocation8 + $0x64c] ss:$16 sps:$4 sm:$0xff]  }
 0x322   :  { %5398 = vmatprep.subr.bf16.mxu0 %v7108_v40  ;;  %v7196_v40 = vld [vmem:[#allocation11 + $0xf0] ss:$8 sps:$4 sm:$0xff]  }
 0x324   :  { %5350 = vmatpush2.bf16.msra.mxu1 %v7097_v51  ;;  %v7201_v51 = vld [vmem:[#allocation11 + $0xe4] ss:$8 sps:$4 sm:$0xff]  }
 0x325   :  { %5351 = vmatprep.subr.bf16.mxu1 %v7105_v52  ;;  %5399 = vmatpush2.bf16.msra.mxu0 %v7106_v54  ;;  %v7139_v52 = vld [vmem:[#allocation8 + $0x648] ss:$16 sps:$4 sm:$0xff]   ;;  %v7144_v54 = vld [vmem:[#allocation8 + $0x62c] ss:$16 sps:$4 sm:$0xff]  }
 0x326   :  { %5400 = vmatprep.subr.bf16.mxu0 %v7114_v56  ;;  %v7199_v56 = vld [vmem:[#allocation11 + $0xe0] ss:$8 sps:$4 sm:$0xff]  }
 0x328   :  { %5352 = vmatpush2.bf16.msra.mxu1 %v7103_v53  ;;  %v7204_v53 = vld [vmem:[#allocation11 + $0xd4] ss:$8 sps:$4 sm:$0xff]  }
 0x329   :  { %5353 = vmatprep.subr.bf16.mxu1 %v7111_v57  ;;  %5401 = vmatpush2.bf16.msra.mxu0 %v7112_v45  ;;  %v7142_v57 = vld [vmem:[#allocation8 + $0x628] ss:$16 sps:$4 sm:$0xff]   ;;  %v7147_v45 = vld [vmem:[#allocation8 + $0x60c] ss:$16 sps:$4 sm:$0xff]  }
 0x32a   :  { %5864 = vmatprep.subr.bf16.mxu0 %v7174_v62  ;;  %v7202_v62 = vld [vmem:[#allocation11 + $0xd0] ss:$8 sps:$4 sm:$0xff]  }
 0x32c   :  { %5354 = vmatpush2.bf16.msra.mxu1 %v7109_v49  ;;  %v5158_v27 = vpop.f32.mrf.mxu0  ;;  %5403 = vmatmul.mubr.bf16.vlgmr.msra.gmra.mxu0 %v7682_v50  ;;  %v7207_v49 = vld [vmem:[#allocation11 + $0xc4] ss:$8 sps:$4 sm:$0xff]  }
 0x32d   :  { %5355 = vmatprep.subr.bf16.mxu1 %v7117_v63  ;;  %v5159_v12 = vadd.f32 %v5158_v27, %v3827_v0  ;;  %5865 = vmatpush1.bf16.msra.mxu0 %v7172_v2  ;;  %v7145_v63 = vld [vmem:[#allocation8 + $0x608] ss:$16 sps:$4 sm:$0xff]   ;;  %v7150_v0 = vld [vmem:[#allocation8 + $0x7ec] ss:$16 sps:$4 sm:$0xff]  }
 0x32e   :  { %v5199_v13 = vpop.f32.mrf.mxu1  ;;  %v5160_v16 = vpop.f32.mrf.mxu0  ;;  %5866 = vmatprep.subr.bf16.mxu0 %v7177_v44  ;;  %v7205_v2 = vld [vmem:[#allocation11 + $0xc0] ss:$8 sps:$4 sm:$0xff]   ;;  %v7210_v44 = vld [vmem:[#allocation11 + $0xb4] ss:$8 sps:$4 sm:$0xff]   ;;  %v7208_v27 = vld [vmem:[#allocation11 + $0xb0] ss:$8 sps:$4 sm:$0xff]  }
 0x32f   :  { %v7712_v28 = vadd.f32 %v5199_v13, %v5159_v12  ;;  %v5161_v36 = vadd.f32 %v5160_v16, %v3831_v4  ;;  %v7153_v4 = vld [vmem:[#allocation8 + $0x7cc] ss:$16 sps:$4 sm:$0xff]   ;;  %v7151_v12 = vld [vmem:[#allocation8 + $0x7c8] ss:$16 sps:$4 sm:$0xff]  }
 0x330   :  { %5356 = vmatpush2.bf16.msra.mxu1 %v7115_v3  ;;  %v5201_v19 = vpop.f32.mrf.mxu1  ;;  %v5162_v22 = vpop.f32.mrf.mxu0  ;;  %v7148_v3 = vld [vmem:[#allocation8 + $0x7e8] ss:$16 sps:$4 sm:$0xff]   ;;  %v7156_v13 = vld [vmem:[#allocation8 + $0x7ac] ss:$16 sps:$4 sm:$0xff]  }
 0x331   :  { %5357 = vmatprep.subr.bf16.mxu1 %v7120_v10  ;;  %v7714_v47 = vadd.f32 %v5201_v19, %v5161_v36  ;;  %5867 = vmatpush1.bf16.msra.mxu0 %v7175_v14  ;;  %v7213_v10 = vld [vmem:[#allocation11 + $0xa4] ss:$8 sps:$4 sm:$0xff]   ;;  %v7211_v14 = vld [vmem:[#allocation11 + $0xa0] ss:$8 sps:$4 sm:$0xff]   ;;  %v7216_v16 = vld [vmem:[#allocation11 + $0x94] ss:$8 sps:$4 sm:$0xff]  }
 0x332   :  { %v5203_v50 = vpop.f32.mrf.mxu1  ;;  %v5163_v24 = vpop.f32.mrf.mxu0  ;;  %5868 = vmatprep.subr.bf16.mxu0 %v7180_v33  ;;  %v7154_v33 = vld [vmem:[#allocation8 + $0x7a8] ss:$16 sps:$4 sm:$0xff]   ;;  %v7159_v36 = vld [vmem:[#allocation8 + $0x78c] ss:$16 sps:$4 sm:$0xff]  }
 0x333   :  { %v7214_v19 = vld [vmem:[#allocation11 + $0x90] ss:$8 sps:$4 sm:$0xff]   ;;  %v7157_v22 = vld [vmem:[#allocation8 + $0x788] ss:$16 sps:$4 sm:$0xff]   ;;  %v7217_v50 = vld [vmem:[#allocation11 + $0x80] ss:$8 sps:$4 sm:$0xff]  }
 0x334   :  { %5358 = vmatpush2.bf16.msra.mxu1 %v7118_v21  ;;  %v5204_v26 = vpop.f32.mrf.mxu1  ;;  %v7219_v21 = vld [vmem:[#allocation11 + $0x84] ss:$8 sps:$4 sm:$0xff]   ;;  %v7165_v24 = vld [vmem:[#allocation8 + $0x74c] ss:$16 sps:$4 sm:$0xff]  }
 0x335   :  { %5359 = vmatprep.subr.bf16.mxu1 %v7123_v17  ;;  %5869 = vmatpush1.bf16.msra.mxu0 %v7178_v23  ;;  %v7162_v17 = vld [vmem:[#allocation8 + $0x76c] ss:$16 sps:$4 sm:$0xff]   ;;  %v7160_v23 = vld [vmem:[#allocation8 + $0x768] ss:$16 sps:$4 sm:$0xff]  }
 0x336   :  { %5870 = vmatprep.subr.bf16.mxu0 %v7183_v25  ;;  %v7163_v25 = vld [vmem:[#allocation8 + $0x748] ss:$16 sps:$4 sm:$0xff]  }
 0x338   :  { %5360 = vmatpush2.bf16.msra.mxu1 %v7121_v9  ;;  %v7168_v9 = vld [vmem:[#allocation8 + $0x72c] ss:$16 sps:$4 sm:$0xff]  }
 0x339   :  { %5411 = vmatprep.subr.bf16.mxu1 %v7126_v29  ;;  %5871 = vmatpush1.bf16.msra.mxu0 %v7181_v34 }
 0x33a   :  { %5872 = vmatprep.subr.bf16.mxu0 %v7186_v37 }
 0x33b   :  { %5362 = vmatmul.mubr.bf16.vlgmr.msra.gmra.mxu1 %v7664_v15  ;;  %v7195_v15 = vld [vmem:[#allocation11 + $0x4] ss:$8 sps:$4 sm:$0xff]  }
 0x33c   :  { %5412 = vmatpush1.bf16.msra.mxu1 %v7124_v35  ;;  %5443 = vmatprep.mubr.bf16.mxu1 %v7698_v8  ;;  %v7193_v8 = vld [vmem:[#allocation11] ss:$8 sps:$4 sm:$0xff]   ;;  %v7166_v35 = vld [vmem:[#allocation8 + $0x728] ss:$16 sps:$4 sm:$0xff]  }
 0x33d   :  { %5413 = vmatprep.subr.bf16.mxu1 %v7129_v20  ;;  %5873 = vmatpush1.bf16.msra.mxu0 %v7184_v30  ;;  %v7171_v30 = vld [vmem:[#allocation8 + $0x70c] ss:$16 sps:$4 sm:$0xff]  }
 0x33e   :  { %5874 = vmatprep.subr.bf16.mxu0 %v7189_v41 }
 0x340   :  { %5414 = vmatpush1.bf16.msra.mxu1 %v7127_v58  ;;  %v7169_v58 = vld [vmem:[#allocation8 + $0x708] ss:$16 sps:$4 sm:$0xff]  }
 0x341   :  { %5415 = vmatprep.subr.bf16.mxu1 %v7132_v43  ;;  %5875 = vmatpush1.bf16.msra.mxu0 %v7187_v48  ;;  %v7220_v43 = vld [vmem:[#allocation11 + $0x170] ss:$8 sps:$4 sm:$0xff]   ;;  %v7222_v48 = vld [vmem:[#allocation11 + $0x174] ss:$8 sps:$4 sm:$0xff]  }
 0x342   :  { %5876 = vmatprep.subr.bf16.mxu0 %v7192_v32  ;;  %v7223_v32 = vld [vmem:[#allocation11 + $0x160] ss:$8 sps:$4 sm:$0xff]  }
 0x344   :  { %5416 = vmatpush1.bf16.msra.mxu1 %v7130_v39  ;;  %v7226_v39 = vld [vmem:[#allocation11 + $0x150] ss:$8 sps:$4 sm:$0xff]  }
 0x345   :  { %5417 = vmatprep.subr.bf16.mxu1 %v7135_v46  ;;  %5877 = vmatpush1.bf16.msra.mxu0 %v7190_v59  ;;  %v7231_v46 = vld [vmem:[#allocation11 + $0x144] ss:$8 sps:$4 sm:$0xff]   ;;  %v7229_v59 = vld [vmem:[#allocation11 + $0x140] ss:$8 sps:$4 sm:$0xff]  }
 0x346   :  { %5878 = vmatprep.subr.bf16.mxu0 %v7195_v15  ;;  %v7234_v15 = vld [vmem:[#allocation11 + $0x134] ss:$8 sps:$4 sm:$0xff]  }
 0x348   :  { %5418 = vmatpush1.bf16.msra.mxu1 %v7133_v38  ;;  %v7232_v38 = vld [vmem:[#allocation11 + $0x130] ss:$8 sps:$4 sm:$0xff]  }
 0x349   :  { %5419 = vmatprep.subr.bf16.mxu1 %v7138_v18  ;;  %5879 = vmatpush1.bf16.msra.mxu0 %v7193_v8  ;;  %v7235_v18 = vld [vmem:[#allocation11 + $0x120] ss:$8 sps:$4 sm:$0xff]   ;;  %v7240_v8 = vld [vmem:[#allocation11 + $0x114] ss:$8 sps:$4 sm:$0xff]  }
 0x34a   :  { %5880 = vmatprep.subr.bf16.mxu0 %v7198_v1  ;;  %v7238_v1 = vld [vmem:[#allocation11 + $0x110] ss:$8 sps:$4 sm:$0xff]  }
 0x34c   :  { %5420 = vmatpush1.bf16.msra.mxu1 %v7136_v55  ;;  %v7243_v55 = vld [vmem:[#allocation11 + $0x104] ss:$8 sps:$4 sm:$0xff]  }
 0x34d   :  { %5421 = vmatprep.subr.bf16.mxu1 %v7141_v31  ;;  %5881 = vmatpush2.bf16.msra.mxu0 %v7196_v40  ;;  %v7241_v31 = vld [vmem:[#allocation11 + $0x100] ss:$8 sps:$4 sm:$0xff]   ;;  %v7246_v40 = vld [vmem:[#allocation11 + $0x1f4] ss:$8 sps:$4 sm:$0xff]  }
 0x34e   :  { %5882 = vmatprep.subr.bf16.mxu0 %v7201_v51  ;;  %v7244_v51 = vld [vmem:[#allocation11 + $0x1f0] ss:$8 sps:$4 sm:$0xff]  }
 0x350   :  { %5422 = vmatpush1.bf16.msra.mxu1 %v7139_v52  ;;  %v7249_v52 = vld [vmem:[#allocation11 + $0x1e4] ss:$8 sps:$4 sm:$0xff]  }
 0x351   :  { %5423 = vmatprep.subr.bf16.mxu1 %v7144_v54  ;;  %5883 = vmatpush2.bf16.msra.mxu0 %v7199_v56  ;;  %v7247_v54 = vld [vmem:[#allocation11 + $0x1e0] ss:$8 sps:$4 sm:$0xff]   ;;  %v7252_v56 = vld [vmem:[#allocation11 + $0x1d4] ss:$8 sps:$4 sm:$0xff]  }
 0x352   :  { %5884 = vmatprep.subr.bf16.mxu0 %v7204_v53  ;;  %v7250_v53 = vld [vmem:[#allocation11 + $0x1d0] ss:$8 sps:$4 sm:$0xff]  }
 0x354   :  { %5424 = vmatpush1.bf16.msra.mxu1 %v7142_v57  ;;  %v7255_v57 = vld [vmem:[#allocation11 + $0x1c4] ss:$8 sps:$4 sm:$0xff]  }
 0x355   :  { %5425 = vmatprep.subr.bf16.mxu1 %v7147_v45  ;;  %5885 = vmatpush2.bf16.msra.mxu0 %v7202_v62  ;;  %v7253_v45 = vld [vmem:[#allocation11 + $0x1c0] ss:$8 sps:$4 sm:$0xff]  }
 0x356   :  { %5886 = vmatprep.subr.bf16.mxu0 %v7207_v49  ;;  %v7258_v49 = vld [vmem:[#allocation11 + $0x1b4] ss:$8 sps:$4 sm:$0xff]  }
 0x358   :  { %5426 = vmatpush1.bf16.msra.mxu1 %v7145_v63 }
 0x359   :  { %5427 = vmatprep.subr.bf16.mxu1 %v7150_v0  ;;  %5887 = vmatpush2.bf16.msra.mxu0 %v7205_v2  ;;  %v7256_v0 = vld [vmem:[#allocation11 + $0x1b0] ss:$8 sps:$4 sm:$0xff]  }
 0x35a   :  { %5888 = vmatprep.subr.bf16.mxu0 %v7210_v44  ;;  %v7261_v44 = vld [vmem:[#allocation11 + $0x1a4] ss:$8 sps:$4 sm:$0xff]  }
 0x35c   :  { %5428 = vmatpush2.bf16.msra.mxu1 %v7148_v3 }
 0x35d   :  { %5429 = vmatprep.subr.bf16.mxu1 %v7153_v4  ;;  %5889 = vmatpush2.bf16.msra.mxu0 %v7208_v27  ;;  %v7259_v4 = vld [vmem:[#allocation11 + $0x1a0] ss:$8 sps:$4 sm:$0xff]  }
 0x35e   :  { %5890 = vmatprep.subr.bf16.mxu0 %v7213_v10 }
 0x360   :  { %5430 = vmatpush2.bf16.msra.mxu1 %v7151_v12  ;;  %v7264_v12 = vld [vmem:[#allocation11 + $0x194] ss:$8 sps:$4 sm:$0xff]  }
 0x361   :  { %5431 = vmatprep.subr.bf16.mxu1 %v7156_v13  ;;  %5891 = vmatpush2.bf16.msra.mxu0 %v7211_v14  ;;  %v7262_v14 = vld [vmem:[#allocation11 + $0x190] ss:$8 sps:$4 sm:$0xff]  }
 0x362   :  { %5892 = vmatprep.subr.bf16.mxu0 %v7216_v16 }
 0x364   :  { %5432 = vmatpush2.bf16.msra.mxu1 %v7154_v33 }
 0x365   :  { %5433 = vmatprep.subr.bf16.mxu1 %v7159_v36  ;;  %5893 = vmatpush2.bf16.msra.mxu0 %v7214_v19 }
 0x366   :  { %5894 = vmatprep.subr.bf16.mxu0 %v7219_v21  ;;  %v7267_v21 = vld [vmem:[#allocation11 + $0x184] ss:$8 sps:$4 sm:$0xff]  }
 0x368   :  { %5434 = vmatpush2.bf16.msra.mxu1 %v7157_v22 }
 0x369   :  { %5435 = vmatprep.subr.bf16.mxu1 %v7162_v17  ;;  %5895 = vmatpush2.bf16.msra.mxu0 %v7217_v50  ;;  %v7265_v50 = vld [vmem:[#allocation11 + $0x180] ss:$8 sps:$4 sm:$0xff]  }
 0x36c   :  { %5436 = vmatpush2.bf16.msra.mxu1 %v7160_v23  ;;  %v5240_v26 = vpop.f32.mrf.mxu0 }
 0x36d   :  { %5437 = vmatprep.subr.bf16.mxu1 %v7165_v24  ;;  %v7719_v29 = vadd.f32 %v5240_v26, %v7712_v28  ;;  %v7225_v28 = vld [vmem:[#allocation11 + $0x164] ss:$8 sps:$4 sm:$0xff]  }
 0x36e   :  { %v5242_v34 = vpop.f32.mrf.mxu0 }
 0x36f   :  { %v7722_v37 = vadd.f32 %v5242_v34, %v7714_v47  ;;  %v7228_v47 = vld [vmem:[#allocation11 + $0x154] ss:$8 sps:$4 sm:$0xff]  }
 0x370   :  { %5438 = vmatpush2.bf16.msra.mxu1 %v7163_v25  ;;  %v5244_v20 = vpop.f32.mrf.mxu0 }
 0x371   :  { %5439 = vmatprep.subr.bf16.mxu1 %v7168_v9 }
 0x372   :  { %v5245_v41 = vpop.f32.mrf.mxu0 }
 0x374   :  { %5440 = vmatpush2.bf16.msra.mxu1 %v7166_v35  ;;  %v3839_v35 = vrot.slane %v7705_v60, %v612_v5 }
 0x375   :  { %5441 = vmatprep.subr.bf16.mxu1 %v7171_v30 }
 0x378   :  { %5442 = vmatpush2.bf16.msra.mxu1 %v7169_v58 }
 0x379   :  { %5905 = vmatprep.subr.bf16.mxu1 %v7222_v48 }
 0x37b   :  { %5444 = vmatmul.mubr.bf16.vlgmr.msra.gmra.mxu1 %v7700_v7  ;;  %v7237_v7 = vld [vmem:[#allocation11 + $0x124] ss:$8 sps:$4 sm:$0xff]  }
 0x37c   :  { %5906 = vmatpush1.bf16.msra.mxu1 %v7220_v43 }
 0x37d   :  { %5907 = vmatprep.subr.bf16.mxu1 %v7225_v28 }
 0x380   :  { %5908 = vmatpush1.bf16.msra.mxu1 %v7223_v32 }
 0x381   :  { %5909 = vmatprep.subr.bf16.mxu1 %v7228_v47 }
 0x384   :  { %5910 = vmatpush1.bf16.msra.mxu1 %v7226_v39 }
 0x385   :  { %5911 = vmatprep.subr.bf16.mxu1 %v7231_v46 }
 0x388   :  { %5912 = vmatpush1.bf16.msra.mxu1 %v7229_v59 }
 0x389   :  { %5913 = vmatprep.subr.bf16.mxu1 %v7234_v15 }
 0x38c   :  { %5914 = vmatpush1.bf16.msra.mxu1 %v7232_v38 }
 0x38d   :  { %5915 = vmatprep.subr.bf16.mxu1 %v7237_v7 }
 0x390   :  { %5916 = vmatpush1.bf16.msra.mxu1 %v7235_v18 }
 0x391   :  { %5917 = vmatprep.subr.bf16.mxu1 %v7240_v8 }
 0x394   :  { %5918 = vmatpush1.bf16.msra.mxu1 %v7238_v1 }
 0x395   :  { %5919 = vmatprep.subr.bf16.mxu1 %v7243_v55 }
 0x398   :  { %5920 = vmatpush1.bf16.msra.mxu1 %v7241_v31 }
 0x399   :  { %5921 = vmatprep.subr.bf16.mxu1 %v7246_v40 }
 0x39c   :  { %5922 = vmatpush2.bf16.msra.mxu1 %v7244_v51 }
 0x39d   :  { %5923 = vmatprep.subr.bf16.mxu1 %v7249_v52 }
 0x3a0   :  { %5924 = vmatpush2.bf16.msra.mxu1 %v7247_v54  ;;  %v5532_v54 = vld [vmem:[#allocation13] sm:$0x3] }
 0x3a1   :  { %5925 = vmatprep.subr.bf16.mxu1 %v7252_v56  ;;  %v5952_v56 = vld [vmem:[#allocation14] sm:$0x3] }
 0x3a4   :  { %5926 = vmatpush2.bf16.msra.mxu1 %v7250_v53  ;;  %v5537_v53 = vrot.slane %v5532_v54, %v7570_v6 }
 0x3a5   :  { %5927 = vmatprep.subr.bf16.mxu1 %v7255_v57  ;;  %v5953_v57 = vunpack.c.l.bf16 %v5952_v56 }
 0x3a8   :  { %5928 = vmatpush2.bf16.msra.mxu1 %v7253_v45  ;;  %v5541_v45 = vrot.slane %v5532_v54, %v7575_v11 }
 0x3a9   :  { %5929 = vmatprep.subr.bf16.mxu1 %v7258_v49 }
 0x3ac   :  { %v5322_v62 = vpop.f32.mrf.mxu0  ;;  %5930 = vmatpush2.bf16.msra.mxu1 %v7256_v0  ;;  %v5962_v0 = vrot.slane %v5953_v57, %v7610_v42 }
 0x3ad   :  { %5931 = vmatprep.subr.bf16.mxu1 %v7261_v44 }
 0x3ae   :  { %v5324_v63 = vpop.f32.mrf.mxu0 }
 0x3af   :  { %v5325_v41 = vadd.f32 %v5324_v63, %v3839_v35  ;;  %v5958_v63 = vrot.slane %v5953_v57, %v7570_v6 }
 0x3b0   :  { %v5326_v2 = vpop.f32.mrf.mxu0  ;;  %5932 = vmatpush2.bf16.msra.mxu1 %v7259_v4 }
 0x3b1   :  { %5933 = vmatprep.subr.bf16.mxu1 %v7264_v12  ;;  %v5968_v12 = vrot.slane %v5958_v63, %v7570_v6 }
 0x3b2   :  { %v5327_v3 = vpop.f32.mrf.mxu0 }
 0x3b4   :  { %5934 = vmatpush2.bf16.msra.mxu1 %v7262_v14 }
 0x3b5   :  { %5935 = vmatprep.subr.bf16.mxu1 %v7267_v21 }
 0x3b8   :  { %5936 = vmatpush2.bf16.msra.mxu1 %v7265_v50 }
 0x3bb   :  { %v5281_v27 = vpop.f32.mrf.mxu1 }
 0x3bc   :  { %v5282_v10 = vadd.f32 %v5281_v27, %v7719_v29 }
 0x3bd   :  { %v5283_v13 = vpop.f32.mrf.mxu1 }
 0x3be   :  { %vm5452_vm8 = vcmp.gt.f32.partialorder %v5282_v10, 0.0  ;;  %v5456_v16 = vmul.f32 0.2, %v5282_v10  ;;  %v5284_v33 = vadd.f32 %v5283_v13, %v7722_v37  ;;  %v3835_v37 = vrot.slane %v7705_v60, %v7610_v42  ;;  %v6771_v42 = vld [vmem:[#allocation2] ss:$0 sm:$0xff] }
 0x3bf   :  { %v5285_v36 = vpop.f32.mrf.mxu1  ;;  %v5972_v13 = vrot.slane %v5962_v0, %v7570_v6 }
 0x3c0   :  { %vm5453_vm9 = vcmp.gt.f32.partialorder %v5284_v33, 0.0  ;;  %v5457_v19 = vmul.f32 0.2, %v5284_v33  ;;  %v5460_v22 = vsel %vm5452_vm8, %v5282_v10, %v5456_v16  ;;  %v5323_v20 = vadd.f32 %v5322_v62, %v3835_v37 }
 0x3c1   :  { %v5286_v17 = vpop.f32.mrf.mxu1  ;;  %v5464_v25 = vpack.c.bf16 %v5460_v22, %v5460_v22 }
 0x3c2   :  { %v5461_v23 = vsel %vm5453_vm9, %v5284_v33, %v5457_v19 }
 0x3c3   :  { %v5465_v24 = vpack.c.bf16 %v5461_v23, %v5461_v23 }
 0x3c5   :  { %5896 = vmatprep.mubr.bf16.mxu0 %v5465_v24 }
 0x3c6   :  { %5897 = vmatmul.mubr.bf16.vlgmr.msra.gmra.mxu0 %v5464_v25 }
 0x3ec   :  { %v5404_v26 = vpop.f32.mrf.mxu0 }
 0x3ee   :  { %v5406_v9 = vpop.f32.mrf.mxu0 }
 0x3f0   :  { %v5408_v29 = vpop.f32.mrf.mxu0 }
 0x3f2   :  { %v5409_v34 = vpop.f32.mrf.mxu0 }
 0x3fb   :  { %v5363_v30 = vpop.f32.mrf.mxu1 }
 0x3fc   :  { %v5364_v58 = vadd.f32 %v5363_v30, %v5323_v20 }
 0x3fd   :  { %v5365_v43 = vpop.f32.mrf.mxu1 }
 0x3fe   :  { %v5366_v48 = vadd.f32 %v5365_v43, %v5325_v41  ;;  %v5405_v28 = vadd.f32 %v5404_v26, %v5364_v58 }
 0x3ff   :  { %v5367_v32 = vpop.f32.mrf.mxu1 }
 0x400   :  { %v5407_v47 = vadd.f32 %v5406_v9, %v5366_v48 }
 0x401   :  { %v5368_v39 = vpop.f32.mrf.mxu1 }
 0x43b   :  { %v5445_v46 = vpop.f32.mrf.mxu1 }
 0x43c   :  { %v5446_v59 = vadd.f32 %v5445_v46, %v5405_v28 }
 0x43d   :  { %v5447_v15 = vpop.f32.mrf.mxu1 }
 0x43e   :  { %vm5454_vm10 = vcmp.gt.f32.partialorder %v5446_v59, 0.0  ;;  %v5458_v38 = vmul.f32 0.2, %v5446_v59  ;;  %v5448_v7 = vadd.f32 %v5447_v15, %v5407_v47 }
 0x43f   :  { %v5449_v18 = vpop.f32.mrf.mxu1 }
 0x440   :  { %vm5455_vm11 = vcmp.gt.f32.partialorder %v5448_v7, 0.0  ;;  %v5459_v61 = vmul.f32 0.2, %v5448_v7  ;;  %v5462_v5 = vsel %vm5454_vm10, %v5446_v59, %v5458_v38 }
 0x441   :  { %v5450_v60 = vpop.f32.mrf.mxu1  ;;  %v5466_v55 = vpack.c.bf16 %v5462_v5, %v5462_v5 }
 0x442   :  { %v5463_v8 = vsel %vm5455_vm11, %v5448_v7, %v5459_v61 }
 0x443   :  { %v5467_v1 = vpack.c.bf16 %v5463_v8, %v5463_v8 }
 0x445   :  { %5937 = vmatprep.mubr.bf16.mxu1 %v5467_v1 }
 0x446   :  { %5938 = vmatmul.mubr.bf16.vlgmr.msra.gmra.mxu1 %v5466_v55 }
 0x486   :  { %v5898_v31 = vpop.f32.mrf.mxu0 }
 0x487   :  { %v5899_v62 = vadd.f32 %v5898_v31, %v5537_v53 }
 0x488   :  { %v5900_v40 = vpop.f32.mrf.mxu0 }
 0x489   :  { %v5901_v2 = vadd.f32 %v5900_v40, %v5541_v45 }
 0x48a   :  { %v5902_v51 = vpop.f32.mrf.mxu0 }
 0x48c   :  { %v5903_v52 = vpop.f32.mrf.mxu0 }
 0x506   :  { %v5939_v49 = vpop.f32.mrf.mxu1 }
 0x507   :  { %v5940_v44 = vadd.f32 %v5939_v49, %v5899_v62 }
 0x508   :  { %v5941_v3 = vpop.f32.mrf.mxu1 }
 0x509   :  { %vm5946_vm12 = vcmp.gt.f32.partialorder %v5940_v44, 0.0  ;;  %v5948_v4 = vmul.f32 0.2, %v5940_v44  ;;  %v5942_v27 = vadd.f32 %v5941_v3, %v5901_v2 }
 0x50a   :  { %v5943_v10 = vpop.f32.mrf.mxu1 }
 0x50b   :  { %vm5947_vm13 = vcmp.gt.f32.partialorder %v5942_v27, 0.0  ;;  %v5949_v14 = vmul.f32 0.2, %v5942_v27  ;;  %v5950_v11 = vsel %vm5946_vm12, %v5940_v44, %v5948_v4 }
 0x50c   :  { %v5944_v16 = vpop.f32.mrf.mxu1  ;;  %v5973_v36 = vmul.f32 %v5968_v12, %v5950_v11 }
 0x50d   :  { %v5951_v33 = vsel %vm5947_vm13, %v5942_v27, %v5949_v14 }
 0x50e   :  { %v5974_v19 = vmul.f32 %v5972_v13, %v5951_v33 }
 0x510   :  { %v5975_v21 = vadd.f32 %v5974_v19, %v5973_v36 }
 0x512   :  { %5976 = vadd.xlane.f32.xlu0 %v5975_v21 }
 0x59b   :  { %v5977_v22 = vpop.xlane.xlu0 %5976 }
 0x59c   :  { %v5985_v17 = vadd.f32 %v6771_v42, %v5977_v22 }
 0x59e   :  { %v6772_v50 = vmul.f32 -1.442695, %v5985_v17 }
 0x5a0   :  { %7268 = vpow2.f32 %v6772_v50 }
 0x5ad   :  { %v7269_v23 = vpop.eup %7268 }
 0x5ae   :  { %v5989_v24 = vadd.f32 1.0, %v7269_v23 }
 0x5b0   :  { %7270 = vrcp.f32 %v5989_v24 }
 0x5bd   :  { %v7271_v25 = vpop.eup %7270 }
 0x5be   :  { %5993 = vst.msk [vmem:[%s7750_s9] sm:$0xff] %vm5992_vm14, %v7271_v25 }
 0x5bf   :  { %5998 = vsyncpa [#allocation4], 1 }
 0x5c0   :  { %5999 = vsyncpa [#allocation6], 1 }
 0x5c1   :  { %6000 = vsyncpa [#allocation9], 1 }
 0x5c2   :  { %6001 = vsyncpa [#allocation12], 1 }
 0x5c3   :  { %6002 = vsyncpa [#allocation15], 1 }

</bundles_post_ra>
